<compile_context>
chip_gen: v7x
topology: tpu7x:2x2x1
jax: 0.10.0
libtpu: 0.0.40
codegen_flags: <defaults>
</compile_context>

<pallas_src>
import math
import jax
import jax.numpy as jnp
from jax.experimental import pallas as pl
from jax.experimental.pallas import tpu as pltpu

_UNROLL_T = 32   # fully unroll the time loop up to this many steps
_SUBLANE = 8
_LANE = 128


def _round_up(x, m):
    return ((x + m - 1) // m) * m


def _unroll_factor(T):
    if T <= _UNROLL_T:
        return True
    for k in (8, 4, 2):
        if T % k == 0:
            return k
    return 1


def _padded_bytes(shape, dtype):
    shape = tuple(shape)
    if len(shape) == 1:
        shape = (1,) + shape
    lead = 1
    for d in shape[:-2]:
        lead *= int(d)
    sub = _round_up(int(shape[-2]), _SUBLANE)
    lane = _round_up(int(shape[-1]), _LANE)
    return lead * sub * lane * jnp.dtype(dtype).itemsize


# ----------------------------------------------------------------------------
# Fused forward kernel factory.
# PyTorch GRU cell semantics (gate order r, z, n):
#   r = sigmoid(x W_ir^T + b_ir + h W_hr^T + b_hr)
#   z = sigmoid(x W_iz^T + b_iz + h W_hz^T + b_hz)
#   n = tanh   (x W_in^T + b_in + r * (h W_hn^T + b_hn))
#   h' = (1 - z) * n + z * h
# The wrapper provides gate-concatenated (D, 3H_pad) / (H, 3H_pad) weights and
# folded biases; only b_hn stays inside the r-gated term.
# ----------------------------------------------------------------------------
def _make_fused_kernel(num_layers, T, Bp, unroll):
    n_in = 1 + 4 * num_layers + 2   # x, per-layer (wi, wh, bg, bhn), wo, bo

    def kernel(*refs):
        x_ref = refs[0]                                            # (T*Bp, D_in)
        layer_refs = [refs[1 + 4 * l: 1 + 4 * (l + 1)] for l in range(num_layers)]
        wo_ref = refs[n_in - 2]                                    # (H_last, K)
        bo_ref = refs[n_in - 1]                                    # (1, K)
        out_ref = refs[n_in]                                       # (Bp, K)
        scratch = refs[n_in + 1:]
        gi_scrs = scratch[:num_layers]                             # (T*Bp, 3H_pad)
        seq_scrs = scratch[num_layers:]                            # (T*Bp, H_l), l < L-1

        h_last = None
        for l in range(num_layers):
            wi_ref, wh_ref, bg_ref, bhn_ref = layer_refs[l]
            H = bhn_ref.shape[-1]
            mm_dt = wh_ref.dtype
            gi_ref = gi_scrs[l]

            # ---- hoisted input projection: ONE matmul for all T steps/gates ----
            x_flat = x_ref[...] if l == 0 else seq_scrs[l - 1][...]
            gi_ref[...] = (jnp.dot(x_flat.astype(mm_dt), wi_ref[...],
                                   preferred_element_type=jnp.float32)
                           + bg_ref[...])

            # ---- serial recurrence: one h @ W_h_cat + fused gate math / step ----
            wh_cat = wh_ref[...]                                   # (H, 3H_pad)
            b_hn = jnp.broadcast_to(bhn_ref[...], (Bp, H))         # hoisted bcast
            seq_ref = seq_scrs[l] if l < num_layers - 1 else None

            def step(t, h):
                start = pl.multiple_of(t * Bp, _SUBLANE)
                gi = gi_ref[pl.ds(start, Bp), :]                   # (Bp, 3H_pad)
                gh = jnp.dot(h.astype(mm_dt), wh_cat,
                             preferred_element_type=jnp.float32)   # (Bp, 3H_pad)
                # r and z: single fused sigmoid push on lane-concatenated 2H.
                rz = jax.nn.sigmoid(gi[:, 0:2 * H] + gh[:, 0:2 * H])
                r = rz[:, 0:H]
                z = rz[:, H:2 * H]
                n = jnp.tanh(gi[:, 2 * H:3 * H] + r * (gh[:, 2 * H:3 * H] + b_hn))
                h_new = n + z * (h - n)          # == (1 - z) * n + z * h
                if seq_ref is not None:
                    seq_ref[pl.ds(start, Bp), :] = h_new
                return h_new

            h0 = jnp.zeros((Bp, H), jnp.float32)
            h_last = jax.lax.fori_loop(0, T, step, h0, unroll=unroll)

        # ---- hidden2keyword Linear + log_softmax on the last timestep ----
        logits = jnp.dot(h_last.astype(wo_ref.dtype), wo_ref[...],
                         preferred_element_type=jnp.float32) + bo_ref[...]
        m = jnp.max(logits, axis=-1, keepdims=True)
        s = logits - m
        lse = jnp.log(jnp.sum(jnp.exp(s), axis=-1, keepdims=True))
        out_ref[...] = (s - lse).astype(out_ref.dtype)

    return kernel


# ----------------------------------------------------------------------------
# Wrapper: parameter repacking + single pallas_call
# ----------------------------------------------------------------------------
def _pack_gru_params(w_ih, w_hh, b_ih, b_hh, matmul_dtype):
    """PyTorch GRU weights (gate order r, z, n) -> gate-concatenated,
    pre-transposed, lane-padded, bias-folded tensors for the fused kernel."""
    H = w_hh.shape[1]
    G3 = 3 * H
    G3p = _round_up(G3, _LANE)

    def cat_gates_t(w):                           # (3H, D) -> (D, 3H)
        return jnp.concatenate([w[0:H].T, w[H:2 * H].T, w[2 * H:3 * H].T], axis=1)

    def pad_lanes(a):
        pad = G3p - a.shape[-1]
        return jnp.pad(a, ((0, 0), (0, pad))) if pad else a

    wi = pad_lanes(cat_gates_t(w_ih)).astype(matmul_dtype)        # (D_in, 3H_pad)
    wh = pad_lanes(cat_gates_t(w_hh)).astype(matmul_dtype)        # (H,    3H_pad)
    bg = jnp.concatenate([b_ih[0:H] + b_hh[0:H],                  # folded r bias
                          b_ih[H:2 * H] + b_hh[H:2 * H],          # folded z bias
                          b_ih[2 * H:3 * H]])                     # input-side n bias
    bg = pad_lanes(bg.reshape(1, G3).astype(jnp.float32))          # (1, 3H_pad)
    bhn = b_hh[2 * H:3 * H].reshape(1, H).astype(jnp.float32)      # (1, H)
    return wi, wh, bg, bhn


def gru_keyword_spotter_forward(params, x, *, matmul_dtype=jnp.float32):
    """x: (T, B, input_dim) -> (B, num_keywords) log-probabilities."""
    T, B, D_in = x.shape
    Bp = _round_up(B, _SUBLANE)
    layer_names = [k for k in ("gru1", "gru2", "gru3") if k in params]
    num_layers = len(layer_names)

    packed, hids = [], []
    for name in layer_names:
        p = params[name]
        wi, wh, bg, bhn = _pack_gru_params(p["w_ih"], p["w_hh"],
                                           p["b_ih"], p["b_hh"], matmul_dtype)
        packed += [wi, wh, bg, bhn]
        hids.append(bhn.shape[-1])

    hp = params["hidden2keyword"]
    K = hp["w"].shape[0]
    wo = jnp.transpose(hp["w"]).astype(matmul_dtype)               # (H_last, K)
    bo = hp["b"].reshape(1, K).astype(jnp.float32)

    # Pad batch to a full 8-sublane tile and flatten time into sublanes (free).
    x_p = jnp.pad(x.astype(jnp.float32), ((0, 0), (0, Bp - B), (0, 0)))
    x_flat = x_p.reshape(T * Bp, D_in)
    inputs = [x_flat] + packed + [wo, bo]

    # VMEM scratch: per-layer lane-dense hoisted gate slabs + intermediate
    # layer output sequences (kept on-chip; never round-trip HBM).
    g3ps = [_round_up(3 * h, _LANE) for h in hids]
    scratch_shapes = [pltpu.VMEM((T * Bp, g), jnp.float32) for g in g3ps]
    scratch_shapes += [pltpu.VMEM((T * Bp, h), jnp.float32) for h in hids[:-1]]

    # Explicit VMEM budget derived from the actual padded footprint.
    vmem_bytes = sum(_padded_bytes(a.shape, a.dtype) for a in inputs)
    vmem_bytes += _padded_bytes((Bp, K), jnp.float32)
    vmem_bytes += sum(_padded_bytes((T * Bp, g), jnp.float32) for g in g3ps)
    vmem_bytes += sum(_padded_bytes((T * Bp, h), jnp.float32) for h in hids[:-1])
    vmem_limit = int(min(max(4 * vmem_bytes, 16 << 20), 64 << 20))

    vmem = pl.BlockSpec(memory_space=pltpu.MemorySpace.VMEM)
    out = pl.pallas_call(
        _make_fused_kernel(num_layers, T, Bp, _unroll_factor(T)),
        out_shape=jax.ShapeDtypeStruct((Bp, K), jnp.float32),
        in_specs=[vmem] * len(inputs),
        out_specs=vmem,
        scratch_shapes=scratch_shapes,
        compiler_params=pltpu.CompilerParams(vmem_limit_bytes=vmem_limit),
    )(*inputs)
    return out[:B]


# ----------------------------------------------------------------------------
# Parameter construction (matches PyTorch default init)
# ----------------------------------------------------------------------------
def init_gru_params(key, in_dim, hid):
    k = 1.0 / math.sqrt(hid)
    k1, k2, k3, k4 = jax.random.split(key, 4)
    return dict(
        w_ih=jax.random.uniform(k1, (3 * hid, in_dim), jnp.float32, -k, k),
        w_hh=jax.random.uniform(k2, (3 * hid, hid), jnp.float32, -k, k),
        b_ih=jax.random.uniform(k3, (3 * hid,), jnp.float32, -k, k),
        b_hh=jax.random.uniform(k4, (3 * hid,), jnp.float32, -k, k),
    )


def init_linear_params(key, in_dim, out_dim):
    k = 1.0 / math.sqrt(in_dim)
    k1, k2 = jax.random.split(key)
    return dict(
        w=jax.random.uniform(k1, (out_dim, in_dim), jnp.float32, -k, k),
        b=jax.random.uniform(k2, (out_dim,), jnp.float32, -k, k),
    )


def make_gru_keyword_spotter(key, input_dim, num_keywords, hidden_units, num_layers):
    keys = jax.random.split(key, 4)
    params = {"gru1": init_gru_params(keys[0], input_dim, hidden_units)}
    last = hidden_units
    if num_layers > 1:
        params["gru2"] = init_gru_params(keys[1], hidden_units, hidden_units)
    if num_layers > 2:
        params["gru3"] = init_gru_params(keys[2], hidden_units, num_keywords)
        last = num_keywords
    params["hidden2keyword"] = init_linear_params(keys[3], last, num_keywords)
    return params


# ----------------------------------------------------------------------------
# Pure-JAX reference (correctness checking only)
# ----------------------------------------------------------------------------
def _gru_layer_ref(x, w_ih, w_hh, b_ih, b_hh):
    T, B, _ = x.shape
    H = w_hh.shape[1]
    h0 = jnp.zeros((B, H), jnp.float32)

    def step(h, xt):
        gi = xt @ w_ih.T + b_ih
        gh = h @ w_hh.T + b_hh
        i_r, i_z, i_n = jnp.split(gi, 3, axis=-1)
        h_r, h_z, h_n = jnp.split(gh, 3, axis=-1)
        r = jax.nn.sigmoid(i_r + h_r)
        z = jax.nn.sigmoid(i_z + h_z)
        n = jnp.tanh(i_n + r * h_n)
        h_new = (1.0 - z) * n + z * h
        return h_new, h_new

    _, outs = jax.lax.scan(step, h0, x)
    return outs


def _forward_ref(params, x):
    out = x
    for name in ("gru1", "gru2", "gru3"):
        if name in params:
            p = params[name]
            out = _gru_layer_ref(out, p["w_ih"], p["w_hh"], p["b_ih"], p["b_hh"])
    hp = params["hidden2keyword"]
    logits = out[-1] @ hp["w"].T + hp["b"]
    return jax.nn.log_softmax(logits, axis=1)


if __name__ == "__main__":
    # Small shapes consistent with the module: audio as (T, B, input_dim).
    B = 2
    input_dim, hidden_units, num_keywords, num_layers = 16, 32, 16, 3

    key = jax.random.PRNGKey(0)
    kx, kx2, kp = jax.random.split(key, 3)
    params = make_gru_keyword_spotter(kp, input_dim, num_keywords,
                                      hidden_units, num_layers)

    # Short sequence: exercises the fully-unrolled (unroll=True) path.
    T = 8
    x = jax.random.normal(kx, (T, B, input_dim), dtype=jnp.float32)
    out = jax.block_until_ready(gru_keyword_spotter_forward(params, x))
    ref = jax.block_until_ready(_forward_ref(params, x))
    assert out.shape == (B, num_keywords)
    assert jnp.allclose(out, ref, atol=1e-4, rtol=1e-4), (
        f"short-T max abs diff = {jnp.max(jnp.abs(out - ref))}")

    # Long sequence: exercises the rolled fori_loop path (dynamic pl.ds starts).
    T_long = 40
    x_long = jax.random.normal(kx2, (T_long, B, input_dim), dtype=jnp.float32)
    out_l = jax.block_until_ready(gru_keyword_spotter_forward(params, x_long))
    ref_l = jax.block_until_ready(_forward_ref(params, x_long))
    assert out_l.shape == (B, num_keywords)
    assert jnp.allclose(out_l, ref_l, atol=1e-4, rtol=1e-4), (
        f"long-T max abs diff = {jnp.max(jnp.abs(out_l - ref_l))}")

    print("KERNEL_OK")
</pallas_src>

<mosaic_0001>
module attributes {stable_mosaic.version = 11 : i64} {
  func.func @kernel(%arg0: memref<64x16xf32, #tpu.memory_space<vmem>>, %arg1: memref<16x128xf32, #tpu.memory_space<vmem>>, %arg2: memref<32x128xf32, #tpu.memory_space<vmem>>, %arg3: memref<1x128xf32, #tpu.memory_space<vmem>>, %arg4: memref<1x32xf32, #tpu.memory_space<vmem>>, %arg5: memref<32x128xf32, #tpu.memory_space<vmem>>, %arg6: memref<32x128xf32, #tpu.memory_space<vmem>>, %arg7: memref<1x128xf32, #tpu.memory_space<vmem>>, %arg8: memref<1x32xf32, #tpu.memory_space<vmem>>, %arg9: memref<32x128xf32, #tpu.memory_space<vmem>>, %arg10: memref<16x128xf32, #tpu.memory_space<vmem>>, %arg11: memref<1x128xf32, #tpu.memory_space<vmem>>, %arg12: memref<1x16xf32, #tpu.memory_space<vmem>>, %arg13: memref<16x16xf32, #tpu.memory_space<vmem>>, %arg14: memref<1x16xf32, #tpu.memory_space<vmem>>, %arg15: memref<8x16xf32, #tpu.memory_space<vmem>>, %arg16: memref<64x128xf32, #tpu.memory_space<vmem>>, %arg17: memref<64x128xf32, #tpu.memory_space<vmem>>, %arg18: memref<64x128xf32, #tpu.memory_space<vmem>>, %arg19: memref<64x32xf32, #tpu.memory_space<vmem>>, %arg20: memref<64x32xf32, #tpu.memory_space<vmem>>) attributes {dimension_semantics = [], scalar_prefetch = 0 : i64, scratch_operands = 5 : i64, tpu.core_type = #tpu.core_type<tc>} {
    %c0 = arith.constant 0 : index
    %c0_0 = arith.constant 0 : index
    %0 = vector.load %arg0[%c0, %c0_0] : memref<64x16xf32, #tpu.memory_space<vmem>>, vector<64x16xf32>
    %c0_1 = arith.constant 0 : index
    %c0_2 = arith.constant 0 : index
    %1 = vector.load %arg1[%c0_1, %c0_2] : memref<16x128xf32, #tpu.memory_space<vmem>>, vector<16x128xf32>
    %cst = arith.constant dense<0.000000e+00> : vector<64x128xf32>
    %2 = tpu.matmul %0, %1, %cst {dimension_numbers = #tpu.dot_dimension_numbers<[1], [0], [0], [1], [0, 0, 1, 1], [], []>} : vector<64x16xf32>, vector<16x128xf32>, vector<64x128xf32> -> vector<64x128xf32>
    %c0_3 = arith.constant 0 : index
    %c0_4 = arith.constant 0 : index
    %3 = vector.load %arg3[%c0_3, %c0_4] : memref<1x128xf32, #tpu.memory_space<vmem>>, vector<1x128xf32>
    %4 = vector.broadcast %3 : vector<1x128xf32> to vector<64x128xf32>
    %5 = arith.addf %2, %4 : vector<64x128xf32>
    %c0_5 = arith.constant 0 : index
    %c0_6 = arith.constant 0 : index
    %6 = vector.load %arg16[%c0_5, %c0_6] : memref<64x128xf32, #tpu.memory_space<vmem>>, vector<64x128xf32>
    tpu.vector_store %arg16[%c0_5, %c0_6], %5 {strides = array<i32>} : memref<64x128xf32, #tpu.memory_space<vmem>>, vector<64x128xf32>,
    %c0_7 = arith.constant 0 : index
    %c0_8 = arith.constant 0 : index
    %7 = vector.load %arg2[%c0_7, %c0_8] : memref<32x128xf32, #tpu.memory_space<vmem>>, vector<32x128xf32>
    %c0_9 = arith.constant 0 : index
    %c0_10 = arith.constant 0 : index
    %8 = vector.load %arg4[%c0_9, %c0_10] : memref<1x32xf32, #tpu.memory_space<vmem>>, vector<1x32xf32>
    %9 = vector.shape_cast %8 : vector<1x32xf32> to vector<1x32xf32>
    %10 = vector.broadcast %9 : vector<1x32xf32> to vector<8x32xf32>
    %cst_11 = arith.constant 0.000000e+00 : f32
    %11 = vector.broadcast %cst_11 : f32 to vector<8x32xf32>
    %c0_i32 = arith.constant 0 : i32
    %c8_i32 = arith.constant 8 : i32
    %12 = arith.muli %c0_i32, %c8_i32 : i32
    %13 = tpu.assume_multiple %12, 8 : i32
    %14 = arith.index_cast %13 : i32 to index
    %c0_12 = arith.constant 0 : index
    %15 = vector.load %arg16[%14, %c0_12] : memref<64x128xf32, #tpu.memory_space<vmem>>, vector<8x128xf32>
    %cst_13 = arith.constant dense<0.000000e+00> : vector<8x128xf32>
    %16 = tpu.matmul %11, %7, %cst_13 {dimension_numbers = #tpu.dot_dimension_numbers<[1], [0], [0], [1], [0, 0, 1, 1], [], []>} : vector<8x32xf32>, vector<32x128xf32>, vector<8x128xf32> -> vector<8x128xf32>
    %17 = vector.extract_strided_slice %15 {offsets = [0, 0], sizes = [8, 64], strides = [1, 1]} : vector<8x128xf32> to vector<8x64xf32>
    %18 = vector.extract_strided_slice %16 {offsets = [0, 0], sizes = [8, 64], strides = [1, 1]} : vector<8x128xf32> to vector<8x64xf32>
    %19 = arith.addf %17, %18 : vector<8x64xf32>
    %20 = arith.negf %19 : vector<8x64xf32>
    %21 = math.exp %20 : vector<8x64xf32>
    %cst_14 = arith.constant 1.000000e+00 : f32
    %22 = vector.broadcast %cst_14 : f32 to vector<8x64xf32>
    %23 = arith.addf %22, %21 : vector<8x64xf32>
    %24 = arith.divf %22, %23 : vector<8x64xf32>
    %25 = vector.extract_strided_slice %24 {offsets = [0, 0], sizes = [8, 32], strides = [1, 1]} : vector<8x64xf32> to vector<8x32xf32>
    %26 = vector.extract_strided_slice %24 {offsets = [0, 32], sizes = [8, 32], strides = [1, 1]} : vector<8x64xf32> to vector<8x32xf32>
    %27 = vector.extract_strided_slice %15 {offsets = [0, 64], sizes = [8, 32], strides = [1, 1]} : vector<8x128xf32> to vector<8x32xf32>
    %28 = vector.extract_strided_slice %16 {offsets = [0, 64], sizes = [8, 32], strides = [1, 1]} : vector<8x128xf32> to vector<8x32xf32>
    %29 = arith.addf %28, %10 : vector<8x32xf32>
    %30 = arith.mulf %25, %29 : vector<8x32xf32>
    %31 = arith.addf %27, %30 : vector<8x32xf32>
    %32 = math.tanh %31 : vector<8x32xf32>
    %33 = arith.subf %11, %32 : vector<8x32xf32>
    %34 = arith.mulf %26, %33 : vector<8x32xf32>
    %35 = arith.addf %32, %34 : vector<8x32xf32>
    %36 = arith.index_cast %13 : i32 to index
    %c0_15 = arith.constant 0 : index
    %37 = vector.load %arg19[%36, %c0_15] : memref<64x32xf32, #tpu.memory_space<vmem>>, vector<8x32xf32>
    tpu.vector_store %arg19[%36, %c0_15], %35 {strides = array<i32>} : memref<64x32xf32, #tpu.memory_space<vmem>>, vector<8x32xf32>,
    %c1_i32 = arith.constant 1 : i32
    %c8_i32_16 = arith.constant 8 : i32
    %38 = arith.muli %c1_i32, %c8_i32_16 : i32
    %39 = tpu.assume_multiple %38, 8 : i32
    %40 = arith.index_cast %39 : i32 to index
    %c0_17 = arith.constant 0 : index
    %41 = vector.load %arg16[%40, %c0_17] : memref<64x128xf32, #tpu.memory_space<vmem>>, vector<8x128xf32>
    %cst_18 = arith.constant dense<0.000000e+00> : vector<8x128xf32>
    %42 = tpu.matmul %35, %7, %cst_18 {dimension_numbers = #tpu.dot_dimension_numbers<[1], [0], [0], [1], [0, 0, 1, 1], [], []>} : vector<8x32xf32>, vector<32x128xf32>, vector<8x128xf32> -> vector<8x128xf32>
    %43 = vector.extract_strided_slice %41 {offsets = [0, 0], sizes = [8, 64], strides = [1, 1]} : vector<8x128xf32> to vector<8x64xf32>
    %44 = vector.extract_strided_slice %42 {offsets = [0, 0], sizes = [8, 64], strides = [1, 1]} : vector<8x128xf32> to vector<8x64xf32>
    %45 = arith.addf %43, %44 : vector<8x64xf32>
    %46 = arith.negf %45 : vector<8x64xf32>
    %47 = math.exp %46 : vector<8x64xf32>
    %cst_19 = arith.constant 1.000000e+00 : f32
    %48 = vector.broadcast %cst_19 : f32 to vector<8x64xf32>
    %49 = arith.addf %48, %47 : vector<8x64xf32>
    %50 = arith.divf %48, %49 : vector<8x64xf32>
    %51 = vector.extract_strided_slice %50 {offsets = [0, 0], sizes = [8, 32], strides = [1, 1]} : vector<8x64xf32> to vector<8x32xf32>
    %52 = vector.extract_strided_slice %50 {offsets = [0, 32], sizes = [8, 32], strides = [1, 1]} : vector<8x64xf32> to vector<8x32xf32>
    %53 = vector.extract_strided_slice %41 {offsets = [0, 64], sizes = [8, 32], strides = [1, 1]} : vector<8x128xf32> to vector<8x32xf32>
    %54 = vector.extract_strided_slice %42 {offsets = [0, 64], sizes = [8, 32], strides = [1, 1]} : vector<8x128xf32> to vector<8x32xf32>
    %55 = arith.addf %54, %10 : vector<8x32xf32>
    %56 = arith.mulf %51, %55 : vector<8x32xf32>
    %57 = arith.addf %53, %56 : vector<8x32xf32>
    %58 = math.tanh %57 : vector<8x32xf32>
    %59 = arith.subf %35, %58 : vector<8x32xf32>
    %60 = arith.mulf %52, %59 : vector<8x32xf32>
    %61 = arith.addf %58, %60 : vector<8x32xf32>
    %62 = arith.index_cast %39 : i32 to index
    %c0_20 = arith.constant 0 : index
    %63 = vector.load %arg19[%62, %c0_20] : memref<64x32xf32, #tpu.memory_space<vmem>>, vector<8x32xf32>
    tpu.vector_store %arg19[%62, %c0_20], %61 {strides = array<i32>} : memref<64x32xf32, #tpu.memory_space<vmem>>, vector<8x32xf32>,
    %c2_i32 = arith.constant 2 : i32
    %c8_i32_21 = arith.constant 8 : i32
    %64 = arith.muli %c2_i32, %c8_i32_21 : i32
    %65 = tpu.assume_multiple %64, 8 : i32
    %66 = arith.index_cast %65 : i32 to index
    %c0_22 = arith.constant 0 : index
    %67 = vector.load %arg16[%66, %c0_22] : memref<64x128xf32, #tpu.memory_space<vmem>>, vector<8x128xf32>
    %cst_23 = arith.constant dense<0.000000e+00> : vector<8x128xf32>
    %68 = tpu.matmul %61, %7, %cst_23 {dimension_numbers = #tpu.dot_dimension_numbers<[1], [0], [0], [1], [0, 0, 1, 1], [], []>} : vector<8x32xf32>, vector<32x128xf32>, vector<8x128xf32> -> vector<8x128xf32>
    %69 = vector.extract_strided_slice %67 {offsets = [0, 0], sizes = [8, 64], strides = [1, 1]} : vector<8x128xf32> to vector<8x64xf32>
    %70 = vector.extract_strided_slice %68 {offsets = [0, 0], sizes = [8, 64], strides = [1, 1]} : vector<8x128xf32> to vector<8x64xf32>
    %71 = arith.addf %69, %70 : vector<8x64xf32>
    %72 = arith.negf %71 : vector<8x64xf32>
    %73 = math.exp %72 : vector<8x64xf32>
    %cst_24 = arith.constant 1.000000e+00 : f32
    %74 = vector.broadcast %cst_24 : f32 to vector<8x64xf32>
    %75 = arith.addf %74, %73 : vector<8x64xf32>
    %76 = arith.divf %74, %75 : vector<8x64xf32>
    %77 = vector.extract_strided_slice %76 {offsets = [0, 0], sizes = [8, 32], strides = [1, 1]} : vector<8x64xf32> to vector<8x32xf32>
    %78 = vector.extract_strided_slice %76 {offsets = [0, 32], sizes = [8, 32], strides = [1, 1]} : vector<8x64xf32> to vector<8x32xf32>
    %79 = vector.extract_strided_slice %67 {offsets = [0, 64], sizes = [8, 32], strides = [1, 1]} : vector<8x128xf32> to vector<8x32xf32>
    %80 = vector.extract_strided_slice %68 {offsets = [0, 64], sizes = [8, 32], strides = [1, 1]} : vector<8x128xf32> to vector<8x32xf32>
    %81 = arith.addf %80, %10 : vector<8x32xf32>
    %82 = arith.mulf %77, %81 : vector<8x32xf32>
    %83 = arith.addf %79, %82 : vector<8x32xf32>
    %84 = math.tanh %83 : vector<8x32xf32>
    %85 = arith.subf %61, %84 : vector<8x32xf32>
    %86 = arith.mulf %78, %85 : vector<8x32xf32>
    %87 = arith.addf %84, %86 : vector<8x32xf32>
    %88 = arith.index_cast %65 : i32 to index
    %c0_25 = arith.constant 0 : index
    %89 = vector.load %arg19[%88, %c0_25] : memref<64x32xf32, #tpu.memory_space<vmem>>, vector<8x32xf32>
    tpu.vector_store %arg19[%88, %c0_25], %87 {strides = array<i32>} : memref<64x32xf32, #tpu.memory_space<vmem>>, vector<8x32xf32>,
    %c3_i32 = arith.constant 3 : i32
    %c8_i32_26 = arith.constant 8 : i32
    %90 = arith.muli %c3_i32, %c8_i32_26 : i32
    %91 = tpu.assume_multiple %90, 8 : i32
    %92 = arith.index_cast %91 : i32 to index
    %c0_27 = arith.constant 0 : index
    %93 = vector.load %arg16[%92, %c0_27] : memref<64x128xf32, #tpu.memory_space<vmem>>, vector<8x128xf32>
    %cst_28 = arith.constant dense<0.000000e+00> : vector<8x128xf32>
    %94 = tpu.matmul %87, %7, %cst_28 {dimension_numbers = #tpu.dot_dimension_numbers<[1], [0], [0], [1], [0, 0, 1, 1], [], []>} : vector<8x32xf32>, vector<32x128xf32>, vector<8x128xf32> -> vector<8x128xf32>
    %95 = vector.extract_strided_slice %93 {offsets = [0, 0], sizes = [8, 64], strides = [1, 1]} : vector<8x128xf32> to vector<8x64xf32>
    %96 = vector.extract_strided_slice %94 {offsets = [0, 0], sizes = [8, 64], strides = [1, 1]} : vector<8x128xf32> to vector<8x64xf32>
    %97 = arith.addf %95, %96 : vector<8x64xf32>
    %98 = arith.negf %97 : vector<8x64xf32>
    %99 = math.exp %98 : vector<8x64xf32>
    %cst_29 = arith.constant 1.000000e+00 : f32
    %100 = vector.broadcast %cst_29 : f32 to vector<8x64xf32>
    %101 = arith.addf %100, %99 : vector<8x64xf32>
    %102 = arith.divf %100, %101 : vector<8x64xf32>
    %103 = vector.extract_strided_slice %102 {offsets = [0, 0], sizes = [8, 32], strides = [1, 1]} : vector<8x64xf32> to vector<8x32xf32>
    %104 = vector.extract_strided_slice %102 {offsets = [0, 32], sizes = [8, 32], strides = [1, 1]} : vector<8x64xf32> to vector<8x32xf32>
    %105 = vector.extract_strided_slice %93 {offsets = [0, 64], sizes = [8, 32], strides = [1, 1]} : vector<8x128xf32> to vector<8x32xf32>
    %106 = vector.extract_strided_slice %94 {offsets = [0, 64], sizes = [8, 32], strides = [1, 1]} : vector<8x128xf32> to vector<8x32xf32>
    %107 = arith.addf %106, %10 : vector<8x32xf32>
    %108 = arith.mulf %103, %107 : vector<8x32xf32>
    %109 = arith.addf %105, %108 : vector<8x32xf32>
    %110 = math.tanh %109 : vector<8x32xf32>
    %111 = arith.subf %87, %110 : vector<8x32xf32>
    %112 = arith.mulf %104, %111 : vector<8x32xf32>
    %113 = arith.addf %110, %112 : vector<8x32xf32>
    %114 = arith.index_cast %91 : i32 to index
    %c0_30 = arith.constant 0 : index
    %115 = vector.load %arg19[%114, %c0_30] : memref<64x32xf32, #tpu.memory_space<vmem>>, vector<8x32xf32>
    tpu.vector_store %arg19[%114, %c0_30], %113 {strides = array<i32>} : memref<64x32xf32, #tpu.memory_space<vmem>>, vector<8x32xf32>,
    %c4_i32 = arith.constant 4 : i32
    %c8_i32_31 = arith.constant 8 : i32
    %116 = arith.muli %c4_i32, %c8_i32_31 : i32
    %117 = tpu.assume_multiple %116, 8 : i32
    %118 = arith.index_cast %117 : i32 to index
    %c0_32 = arith.constant 0 : index
    %119 = vector.load %arg16[%118, %c0_32] : memref<64x128xf32, #tpu.memory_space<vmem>>, vector<8x128xf32>
    %cst_33 = arith.constant dense<0.000000e+00> : vector<8x128xf32>
    %120 = tpu.matmul %113, %7, %cst_33 {dimension_numbers = #tpu.dot_dimension_numbers<[1], [0], [0], [1], [0, 0, 1, 1], [], []>} : vector<8x32xf32>, vector<32x128xf32>, vector<8x128xf32> -> vector<8x128xf32>
    %121 = vector.extract_strided_slice %119 {offsets = [0, 0], sizes = [8, 64], strides = [1, 1]} : vector<8x128xf32> to vector<8x64xf32>
    %122 = vector.extract_strided_slice %120 {offsets = [0, 0], sizes = [8, 64], strides = [1, 1]} : vector<8x128xf32> to vector<8x64xf32>
    %123 = arith.addf %121, %122 : vector<8x64xf32>
    %124 = arith.negf %123 : vector<8x64xf32>
    %125 = math.exp %124 : vector<8x64xf32>
    %cst_34 = arith.constant 1.000000e+00 : f32
    %126 = vector.broadcast %cst_34 : f32 to vector<8x64xf32>
    %127 = arith.addf %126, %125 : vector<8x64xf32>
    %128 = arith.divf %126, %127 : vector<8x64xf32>
    %129 = vector.extract_strided_slice %128 {offsets = [0, 0], sizes = [8, 32], strides = [1, 1]} : vector<8x64xf32> to vector<8x32xf32>
    %130 = vector.extract_strided_slice %128 {offsets = [0, 32], sizes = [8, 32], strides = [1, 1]} : vector<8x64xf32> to vector<8x32xf32>
    %131 = vector.extract_strided_slice %119 {offsets = [0, 64], sizes = [8, 32], strides = [1, 1]} : vector<8x128xf32> to vector<8x32xf32>
    %132 = vector.extract_strided_slice %120 {offsets = [0, 64], sizes = [8, 32], strides = [1, 1]} : vector<8x128xf32> to vector<8x32xf32>
    %133 = arith.addf %132, %10 : vector<8x32xf32>
    %134 = arith.mulf %129, %133 : vector<8x32xf32>
    %135 = arith.addf %131, %134 : vector<8x32xf32>
    %136 = math.tanh %135 : vector<8x32xf32>
    %137 = arith.subf %113, %136 : vector<8x32xf32>
    %138 = arith.mulf %130, %137 : vector<8x32xf32>
    %139 = arith.addf %136, %138 : vector<8x32xf32>
    %140 = arith.index_cast %117 : i32 to index
    %c0_35 = arith.constant 0 : index
    %141 = vector.load %arg19[%140, %c0_35] : memref<64x32xf32, #tpu.memory_space<vmem>>, vector<8x32xf32>
    tpu.vector_store %arg19[%140, %c0_35], %139 {strides = array<i32>} : memref<64x32xf32, #tpu.memory_space<vmem>>, vector<8x32xf32>,
    %c5_i32 = arith.constant 5 : i32
    %c8_i32_36 = arith.constant 8 : i32
    %142 = arith.muli %c5_i32, %c8_i32_36 : i32
    %143 = tpu.assume_multiple %142, 8 : i32
    %144 = arith.index_cast %143 : i32 to index
    %c0_37 = arith.constant 0 : index
    %145 = vector.load %arg16[%144, %c0_37] : memref<64x128xf32, #tpu.memory_space<vmem>>, vector<8x128xf32>
    %cst_38 = arith.constant dense<0.000000e+00> : vector<8x128xf32>
    %146 = tpu.matmul %139, %7, %cst_38 {dimension_numbers = #tpu.dot_dimension_numbers<[1], [0], [0], [1], [0, 0, 1, 1], [], []>} : vector<8x32xf32>, vector<32x128xf32>, vector<8x128xf32> -> vector<8x128xf32>
    %147 = vector.extract_strided_slice %145 {offsets = [0, 0], sizes = [8, 64], strides = [1, 1]} : vector<8x128xf32> to vector<8x64xf32>
    %148 = vector.extract_strided_slice %146 {offsets = [0, 0], sizes = [8, 64], strides = [1, 1]} : vector<8x128xf32> to vector<8x64xf32>
    %149 = arith.addf %147, %148 : vector<8x64xf32>
    %150 = arith.negf %149 : vector<8x64xf32>
    %151 = math.exp %150 : vector<8x64xf32>
    %cst_39 = arith.constant 1.000000e+00 : f32
    %152 = vector.broadcast %cst_39 : f32 to vector<8x64xf32>
    %153 = arith.addf %152, %151 : vector<8x64xf32>
    %154 = arith.divf %152, %153 : vector<8x64xf32>
    %155 = vector.extract_strided_slice %154 {offsets = [0, 0], sizes = [8, 32], strides = [1, 1]} : vector<8x64xf32> to vector<8x32xf32>
    %156 = vector.extract_strided_slice %154 {offsets = [0, 32], sizes = [8, 32], strides = [1, 1]} : vector<8x64xf32> to vector<8x32xf32>
    %157 = vector.extract_strided_slice %145 {offsets = [0, 64], sizes = [8, 32], strides = [1, 1]} : vector<8x128xf32> to vector<8x32xf32>
    %158 = vector.extract_strided_slice %146 {offsets = [0, 64], sizes = [8, 32], strides = [1, 1]} : vector<8x128xf32> to vector<8x32xf32>
    %159 = arith.addf %158, %10 : vector<8x32xf32>
    %160 = arith.mulf %155, %159 : vector<8x32xf32>
    %161 = arith.addf %157, %160 : vector<8x32xf32>
    %162 = math.tanh %161 : vector<8x32xf32>
    %163 = arith.subf %139, %162 : vector<8x32xf32>
    %164 = arith.mulf %156, %163 : vector<8x32xf32>
    %165 = arith.addf %162, %164 : vector<8x32xf32>
    %166 = arith.index_cast %143 : i32 to index
    %c0_40 = arith.constant 0 : index
    %167 = vector.load %arg19[%166, %c0_40] : memref<64x32xf32, #tpu.memory_space<vmem>>, vector<8x32xf32>
    tpu.vector_store %arg19[%166, %c0_40], %165 {strides = array<i32>} : memref<64x32xf32, #tpu.memory_space<vmem>>, vector<8x32xf32>,
    %c6_i32 = arith.constant 6 : i32
    %c8_i32_41 = arith.constant 8 : i32
    %168 = arith.muli %c6_i32, %c8_i32_41 : i32
    %169 = tpu.assume_multiple %168, 8 : i32
    %170 = arith.index_cast %169 : i32 to index
    %c0_42 = arith.constant 0 : index
    %171 = vector.load %arg16[%170, %c0_42] : memref<64x128xf32, #tpu.memory_space<vmem>>, vector<8x128xf32>
    %cst_43 = arith.constant dense<0.000000e+00> : vector<8x128xf32>
    %172 = tpu.matmul %165, %7, %cst_43 {dimension_numbers = #tpu.dot_dimension_numbers<[1], [0], [0], [1], [0, 0, 1, 1], [], []>} : vector<8x32xf32>, vector<32x128xf32>, vector<8x128xf32> -> vector<8x128xf32>
    %173 = vector.extract_strided_slice %171 {offsets = [0, 0], sizes = [8, 64], strides = [1, 1]} : vector<8x128xf32> to vector<8x64xf32>
    %174 = vector.extract_strided_slice %172 {offsets = [0, 0], sizes = [8, 64], strides = [1, 1]} : vector<8x128xf32> to vector<8x64xf32>
    %175 = arith.addf %173, %174 : vector<8x64xf32>
    %176 = arith.negf %175 : vector<8x64xf32>
    %177 = math.exp %176 : vector<8x64xf32>
    %cst_44 = arith.constant 1.000000e+00 : f32
    %178 = vector.broadcast %cst_44 : f32 to vector<8x64xf32>
    %179 = arith.addf %178, %177 : vector<8x64xf32>
    %180 = arith.divf %178, %179 : vector<8x64xf32>
    %181 = vector.extract_strided_slice %180 {offsets = [0, 0], sizes = [8, 32], strides = [1, 1]} : vector<8x64xf32> to vector<8x32xf32>
    %182 = vector.extract_strided_slice %180 {offsets = [0, 32], sizes = [8, 32], strides = [1, 1]} : vector<8x64xf32> to vector<8x32xf32>
    %183 = vector.extract_strided_slice %171 {offsets = [0, 64], sizes = [8, 32], strides = [1, 1]} : vector<8x128xf32> to vector<8x32xf32>
    %184 = vector.extract_strided_slice %172 {offsets = [0, 64], sizes = [8, 32], strides = [1, 1]} : vector<8x128xf32> to vector<8x32xf32>
    %185 = arith.addf %184, %10 : vector<8x32xf32>
    %186 = arith.mulf %181, %185 : vector<8x32xf32>
    %187 = arith.addf %183, %186 : vector<8x32xf32>
    %188 = math.tanh %187 : vector<8x32xf32>
    %189 = arith.subf %165, %188 : vector<8x32xf32>
    %190 = arith.mulf %182, %189 : vector<8x32xf32>
    %191 = arith.addf %188, %190 : vector<8x32xf32>
    %192 = arith.index_cast %169 : i32 to index
    %c0_45 = arith.constant 0 : index
    %193 = vector.load %arg19[%192, %c0_45] : memref<64x32xf32, #tpu.memory_space<vmem>>, vector<8x32xf32>
    tpu.vector_store %arg19[%192, %c0_45], %191 {strides = array<i32>} : memref<64x32xf32, #tpu.memory_space<vmem>>, vector<8x32xf32>,
    %c7_i32 = arith.constant 7 : i32
    %c8_i32_46 = arith.constant 8 : i32
    %194 = arith.muli %c7_i32, %c8_i32_46 : i32
    %195 = tpu.assume_multiple %194, 8 : i32
    %196 = arith.index_cast %195 : i32 to index
    %c0_47 = arith.constant 0 : index
    %197 = vector.load %arg16[%196, %c0_47] : memref<64x128xf32, #tpu.memory_space<vmem>>, vector<8x128xf32>
    %cst_48 = arith.constant dense<0.000000e+00> : vector<8x128xf32>
    %198 = tpu.matmul %191, %7, %cst_48 {dimension_numbers = #tpu.dot_dimension_numbers<[1], [0], [0], [1], [0, 0, 1, 1], [], []>} : vector<8x32xf32>, vector<32x128xf32>, vector<8x128xf32> -> vector<8x128xf32>
    %199 = vector.extract_strided_slice %197 {offsets = [0, 0], sizes = [8, 64], strides = [1, 1]} : vector<8x128xf32> to vector<8x64xf32>
    %200 = vector.extract_strided_slice %198 {offsets = [0, 0], sizes = [8, 64], strides = [1, 1]} : vector<8x128xf32> to vector<8x64xf32>
    %201 = arith.addf %199, %200 : vector<8x64xf32>
    %202 = arith.negf %201 : vector<8x64xf32>
    %203 = math.exp %202 : vector<8x64xf32>
    %cst_49 = arith.constant 1.000000e+00 : f32
    %204 = vector.broadcast %cst_49 : f32 to vector<8x64xf32>
    %205 = arith.addf %204, %203 : vector<8x64xf32>
    %206 = arith.divf %204, %205 : vector<8x64xf32>
    %207 = vector.extract_strided_slice %206 {offsets = [0, 0], sizes = [8, 32], strides = [1, 1]} : vector<8x64xf32> to vector<8x32xf32>
    %208 = vector.extract_strided_slice %206 {offsets = [0, 32], sizes = [8, 32], strides = [1, 1]} : vector<8x64xf32> to vector<8x32xf32>
    %209 = vector.extract_strided_slice %197 {offsets = [0, 64], sizes = [8, 32], strides = [1, 1]} : vector<8x128xf32> to vector<8x32xf32>
    %210 = vector.extract_strided_slice %198 {offsets = [0, 64], sizes = [8, 32], strides = [1, 1]} : vector<8x128xf32> to vector<8x32xf32>
    %211 = arith.addf %210, %10 : vector<8x32xf32>
    %212 = arith.mulf %207, %211 : vector<8x32xf32>
    %213 = arith.addf %209, %212 : vector<8x32xf32>
    %214 = math.tanh %213 : vector<8x32xf32>
    %215 = arith.subf %191, %214 : vector<8x32xf32>
    %216 = arith.mulf %208, %215 : vector<8x32xf32>
    %217 = arith.addf %214, %216 : vector<8x32xf32>
    %218 = arith.index_cast %195 : i32 to index
    %c0_50 = arith.constant 0 : index
    %219 = vector.load %arg19[%218, %c0_50] : memref<64x32xf32, #tpu.memory_space<vmem>>, vector<8x32xf32>
    tpu.vector_store %arg19[%218, %c0_50], %217 {strides = array<i32>} : memref<64x32xf32, #tpu.memory_space<vmem>>, vector<8x32xf32>,
    %c8_i32_51 = arith.constant 8 : i32
    %c0_52 = arith.constant 0 : index
    %c0_53 = arith.constant 0 : index
    %220 = vector.load %arg19[%c0_52, %c0_53] : memref<64x32xf32, #tpu.memory_space<vmem>>, vector<64x32xf32>
    %c0_54 = arith.constant 0 : index
    %c0_55 = arith.constant 0 : index
    %221 = vector.load %arg5[%c0_54, %c0_55] : memref<32x128xf32, #tpu.memory_space<vmem>>, vector<32x128xf32>
    %cst_56 = arith.constant dense<0.000000e+00> : vector<64x128xf32>
    %222 = tpu.matmul %220, %221, %cst_56 {dimension_numbers = #tpu.dot_dimension_numbers<[1], [0], [0], [1], [0, 0, 1, 1], [], []>} : vector<64x32xf32>, vector<32x128xf32>, vector<64x128xf32> -> vector<64x128xf32>
    %c0_57 = arith.constant 0 : index
    %c0_58 = arith.constant 0 : index
    %223 = vector.load %arg7[%c0_57, %c0_58] : memref<1x128xf32, #tpu.memory_space<vmem>>, vector<1x128xf32>
    %224 = vector.broadcast %223 : vector<1x128xf32> to vector<64x128xf32>
    %225 = arith.addf %222, %224 : vector<64x128xf32>
    %c0_59 = arith.constant 0 : index
    %c0_60 = arith.constant 0 : index
    %226 = vector.load %arg17[%c0_59, %c0_60] : memref<64x128xf32, #tpu.memory_space<vmem>>, vector<64x128xf32>
    tpu.vector_store %arg17[%c0_59, %c0_60], %225 {strides = array<i32>} : memref<64x128xf32, #tpu.memory_space<vmem>>, vector<64x128xf32>,
    %c0_61 = arith.constant 0 : index
    %c0_62 = arith.constant 0 : index
    %227 = vector.load %arg6[%c0_61, %c0_62] : memref<32x128xf32, #tpu.memory_space<vmem>>, vector<32x128xf32>
    %c0_63 = arith.constant 0 : index
    %c0_64 = arith.constant 0 : index
    %228 = vector.load %arg8[%c0_63, %c0_64] : memref<1x32xf32, #tpu.memory_space<vmem>>, vector<1x32xf32>
    %229 = vector.shape_cast %228 : vector<1x32xf32> to vector<1x32xf32>
    %230 = vector.broadcast %229 : vector<1x32xf32> to vector<8x32xf32>
    %cst_65 = arith.constant 0.000000e+00 : f32
    %231 = vector.broadcast %cst_65 : f32 to vector<8x32xf32>
    %c0_i32_66 = arith.constant 0 : i32
    %c8_i32_67 = arith.constant 8 : i32
    %232 = arith.muli %c0_i32_66, %c8_i32_67 : i32
    %233 = tpu.assume_multiple %232, 8 : i32
    %234 = arith.index_cast %233 : i32 to index
    %c0_68 = arith.constant 0 : index
    %235 = vector.load %arg17[%234, %c0_68] : memref<64x128xf32, #tpu.memory_space<vmem>>, vector<8x128xf32>
    %cst_69 = arith.constant dense<0.000000e+00> : vector<8x128xf32>
    %236 = tpu.matmul %231, %227, %cst_69 {dimension_numbers = #tpu.dot_dimension_numbers<[1], [0], [0], [1], [0, 0, 1, 1], [], []>} : vector<8x32xf32>, vector<32x128xf32>, vector<8x128xf32> -> vector<8x128xf32>
    %237 = vector.extract_strided_slice %235 {offsets = [0, 0], sizes = [8, 64], strides = [1, 1]} : vector<8x128xf32> to vector<8x64xf32>
    %238 = vector.extract_strided_slice %236 {offsets = [0, 0], sizes = [8, 64], strides = [1, 1]} : vector<8x128xf32> to vector<8x64xf32>
    %239 = arith.addf %237, %238 : vector<8x64xf32>
    %240 = arith.negf %239 : vector<8x64xf32>
    %241 = math.exp %240 : vector<8x64xf32>
    %cst_70 = arith.constant 1.000000e+00 : f32
    %242 = vector.broadcast %cst_70 : f32 to vector<8x64xf32>
    %243 = arith.addf %242, %241 : vector<8x64xf32>
    %244 = arith.divf %242, %243 : vector<8x64xf32>
    %245 = vector.extract_strided_slice %244 {offsets = [0, 0], sizes = [8, 32], strides = [1, 1]} : vector<8x64xf32> to vector<8x32xf32>
    %246 = vector.extract_strided_slice %244 {offsets = [0, 32], sizes = [8, 32], strides = [1, 1]} : vector<8x64xf32> to vector<8x32xf32>
    %247 = vector.extract_strided_slice %235 {offsets = [0, 64], sizes = [8, 32], strides = [1, 1]} : vector<8x128xf32> to vector<8x32xf32>
    %248 = vector.extract_strided_slice %236 {offsets = [0, 64], sizes = [8, 32], strides = [1, 1]} : vector<8x128xf32> to vector<8x32xf32>
    %249 = arith.addf %248, %230 : vector<8x32xf32>
    %250 = arith.mulf %245, %249 : vector<8x32xf32>
    %251 = arith.addf %247, %250 : vector<8x32xf32>
    %252 = math.tanh %251 : vector<8x32xf32>
    %253 = arith.subf %231, %252 : vector<8x32xf32>
    %254 = arith.mulf %246, %253 : vector<8x32xf32>
    %255 = arith.addf %252, %254 : vector<8x32xf32>
    %256 = arith.index_cast %233 : i32 to index
    %c0_71 = arith.constant 0 : index
    %257 = vector.load %arg20[%256, %c0_71] : memref<64x32xf32, #tpu.memory_space<vmem>>, vector<8x32xf32>
    tpu.vector_store %arg20[%256, %c0_71], %255 {strides = array<i32>} : memref<64x32xf32, #tpu.memory_space<vmem>>, vector<8x32xf32>,
    %c1_i32_72 = arith.constant 1 : i32
    %c8_i32_73 = arith.constant 8 : i32
    %258 = arith.muli %c1_i32_72, %c8_i32_73 : i32
    %259 = tpu.assume_multiple %258, 8 : i32
    %260 = arith.index_cast %259 : i32 to index
    %c0_74 = arith.constant 0 : index
    %261 = vector.load %arg17[%260, %c0_74] : memref<64x128xf32, #tpu.memory_space<vmem>>, vector<8x128xf32>
    %cst_75 = arith.constant dense<0.000000e+00> : vector<8x128xf32>
    %262 = tpu.matmul %255, %227, %cst_75 {dimension_numbers = #tpu.dot_dimension_numbers<[1], [0], [0], [1], [0, 0, 1, 1], [], []>} : vector<8x32xf32>, vector<32x128xf32>, vector<8x128xf32> -> vector<8x128xf32>
    %263 = vector.extract_strided_slice %261 {offsets = [0, 0], sizes = [8, 64], strides = [1, 1]} : vector<8x128xf32> to vector<8x64xf32>
    %264 = vector.extract_strided_slice %262 {offsets = [0, 0], sizes = [8, 64], strides = [1, 1]} : vector<8x128xf32> to vector<8x64xf32>
    %265 = arith.addf %263, %264 : vector<8x64xf32>
    %266 = arith.negf %265 : vector<8x64xf32>
    %267 = math.exp %266 : vector<8x64xf32>
    %cst_76 = arith.constant 1.000000e+00 : f32
    %268 = vector.broadcast %cst_76 : f32 to vector<8x64xf32>
    %269 = arith.addf %268, %267 : vector<8x64xf32>
    %270 = arith.divf %268, %269 : vector<8x64xf32>
    %271 = vector.extract_strided_slice %270 {offsets = [0, 0], sizes = [8, 32], strides = [1, 1]} : vector<8x64xf32> to vector<8x32xf32>
    %272 = vector.extract_strided_slice %270 {offsets = [0, 32], sizes = [8, 32], strides = [1, 1]} : vector<8x64xf32> to vector<8x32xf32>
    %273 = vector.extract_strided_slice %261 {offsets = [0, 64], sizes = [8, 32], strides = [1, 1]} : vector<8x128xf32> to vector<8x32xf32>
    %274 = vector.extract_strided_slice %262 {offsets = [0, 64], sizes = [8, 32], strides = [1, 1]} : vector<8x128xf32> to vector<8x32xf32>
    %275 = arith.addf %274, %230 : vector<8x32xf32>
    %276 = arith.mulf %271, %275 : vector<8x32xf32>
    %277 = arith.addf %273, %276 : vector<8x32xf32>
    %278 = math.tanh %277 : vector<8x32xf32>
    %279 = arith.subf %255, %278 : vector<8x32xf32>
    %280 = arith.mulf %272, %279 : vector<8x32xf32>
    %281 = arith.addf %278, %280 : vector<8x32xf32>
    %282 = arith.index_cast %259 : i32 to index
    %c0_77 = arith.constant 0 : index
    %283 = vector.load %arg20[%282, %c0_77] : memref<64x32xf32, #tpu.memory_space<vmem>>, vector<8x32xf32>
    tpu.vector_store %arg20[%282, %c0_77], %281 {strides = array<i32>} : memref<64x32xf32, #tpu.memory_space<vmem>>, vector<8x32xf32>,
    %c2_i32_78 = arith.constant 2 : i32
    %c8_i32_79 = arith.constant 8 : i32
    %284 = arith.muli %c2_i32_78, %c8_i32_79 : i32
    %285 = tpu.assume_multiple %284, 8 : i32
    %286 = arith.index_cast %285 : i32 to index
    %c0_80 = arith.constant 0 : index
    %287 = vector.load %arg17[%286, %c0_80] : memref<64x128xf32, #tpu.memory_space<vmem>>, vector<8x128xf32>
    %cst_81 = arith.constant dense<0.000000e+00> : vector<8x128xf32>
    %288 = tpu.matmul %281, %227, %cst_81 {dimension_numbers = #tpu.dot_dimension_numbers<[1], [0], [0], [1], [0, 0, 1, 1], [], []>} : vector<8x32xf32>, vector<32x128xf32>, vector<8x128xf32> -> vector<8x128xf32>
    %289 = vector.extract_strided_slice %287 {offsets = [0, 0], sizes = [8, 64], strides = [1, 1]} : vector<8x128xf32> to vector<8x64xf32>
    %290 = vector.extract_strided_slice %288 {offsets = [0, 0], sizes = [8, 64], strides = [1, 1]} : vector<8x128xf32> to vector<8x64xf32>
    %291 = arith.addf %289, %290 : vector<8x64xf32>
    %292 = arith.negf %291 : vector<8x64xf32>
    %293 = math.exp %292 : vector<8x64xf32>
    %cst_82 = arith.constant 1.000000e+00 : f32
    %294 = vector.broadcast %cst_82 : f32 to vector<8x64xf32>
    %295 = arith.addf %294, %293 : vector<8x64xf32>
    %296 = arith.divf %294, %295 : vector<8x64xf32>
    %297 = vector.extract_strided_slice %296 {offsets = [0, 0], sizes = [8, 32], strides = [1, 1]} : vector<8x64xf32> to vector<8x32xf32>
    %298 = vector.extract_strided_slice %296 {offsets = [0, 32], sizes = [8, 32], strides = [1, 1]} : vector<8x64xf32> to vector<8x32xf32>
    %299 = vector.extract_strided_slice %287 {offsets = [0, 64], sizes = [8, 32], strides = [1, 1]} : vector<8x128xf32> to vector<8x32xf32>
    %300 = vector.extract_strided_slice %288 {offsets = [0, 64], sizes = [8, 32], strides = [1, 1]} : vector<8x128xf32> to vector<8x32xf32>
    %301 = arith.addf %300, %230 : vector<8x32xf32>
    %302 = arith.mulf %297, %301 : vector<8x32xf32>
    %303 = arith.addf %299, %302 : vector<8x32xf32>
    %304 = math.tanh %303 : vector<8x32xf32>
    %305 = arith.subf %281, %304 : vector<8x32xf32>
    %306 = arith.mulf %298, %305 : vector<8x32xf32>
    %307 = arith.addf %304, %306 : vector<8x32xf32>
    %308 = arith.index_cast %285 : i32 to index
    %c0_83 = arith.constant 0 : index
    %309 = vector.load %arg20[%308, %c0_83] : memref<64x32xf32, #tpu.memory_space<vmem>>, vector<8x32xf32>
    tpu.vector_store %arg20[%308, %c0_83], %307 {strides = array<i32>} : memref<64x32xf32, #tpu.memory_space<vmem>>, vector<8x32xf32>,
    %c3_i32_84 = arith.constant 3 : i32
    %c8_i32_85 = arith.constant 8 : i32
    %310 = arith.muli %c3_i32_84, %c8_i32_85 : i32
    %311 = tpu.assume_multiple %310, 8 : i32
    %312 = arith.index_cast %311 : i32 to index
    %c0_86 = arith.constant 0 : index
    %313 = vector.load %arg17[%312, %c0_86] : memref<64x128xf32, #tpu.memory_space<vmem>>, vector<8x128xf32>
    %cst_87 = arith.constant dense<0.000000e+00> : vector<8x128xf32>
    %314 = tpu.matmul %307, %227, %cst_87 {dimension_numbers = #tpu.dot_dimension_numbers<[1], [0], [0], [1], [0, 0, 1, 1], [], []>} : vector<8x32xf32>, vector<32x128xf32>, vector<8x128xf32> -> vector<8x128xf32>
    %315 = vector.extract_strided_slice %313 {offsets = [0, 0], sizes = [8, 64], strides = [1, 1]} : vector<8x128xf32> to vector<8x64xf32>
    %316 = vector.extract_strided_slice %314 {offsets = [0, 0], sizes = [8, 64], strides = [1, 1]} : vector<8x128xf32> to vector<8x64xf32>
    %317 = arith.addf %315, %316 : vector<8x64xf32>
    %318 = arith.negf %317 : vector<8x64xf32>
    %319 = math.exp %318 : vector<8x64xf32>
    %cst_88 = arith.constant 1.000000e+00 : f32
    %320 = vector.broadcast %cst_88 : f32 to vector<8x64xf32>
    %321 = arith.addf %320, %319 : vector<8x64xf32>
    %322 = arith.divf %320, %321 : vector<8x64xf32>
    %323 = vector.extract_strided_slice %322 {offsets = [0, 0], sizes = [8, 32], strides = [1, 1]} : vector<8x64xf32> to vector<8x32xf32>
    %324 = vector.extract_strided_slice %322 {offsets = [0, 32], sizes = [8, 32], strides = [1, 1]} : vector<8x64xf32> to vector<8x32xf32>
    %325 = vector.extract_strided_slice %313 {offsets = [0, 64], sizes = [8, 32], strides = [1, 1]} : vector<8x128xf32> to vector<8x32xf32>
    %326 = vector.extract_strided_slice %314 {offsets = [0, 64], sizes = [8, 32], strides = [1, 1]} : vector<8x128xf32> to vector<8x32xf32>
    %327 = arith.addf %326, %230 : vector<8x32xf32>
    %328 = arith.mulf %323, %327 : vector<8x32xf32>
    %329 = arith.addf %325, %328 : vector<8x32xf32>
    %330 = math.tanh %329 : vector<8x32xf32>
    %331 = arith.subf %307, %330 : vector<8x32xf32>
    %332 = arith.mulf %324, %331 : vector<8x32xf32>
    %333 = arith.addf %330, %332 : vector<8x32xf32>
    %334 = arith.index_cast %311 : i32 to index
    %c0_89 = arith.constant 0 : index
    %335 = vector.load %arg20[%334, %c0_89] : memref<64x32xf32, #tpu.memory_space<vmem>>, vector<8x32xf32>
    tpu.vector_store %arg20[%334, %c0_89], %333 {strides = array<i32>} : memref<64x32xf32, #tpu.memory_space<vmem>>, vector<8x32xf32>,
    %c4_i32_90 = arith.constant 4 : i32
    %c8_i32_91 = arith.constant 8 : i32
    %336 = arith.muli %c4_i32_90, %c8_i32_91 : i32
    %337 = tpu.assume_multiple %336, 8 : i32
    %338 = arith.index_cast %337 : i32 to index
    %c0_92 = arith.constant 0 : index
    %339 = vector.load %arg17[%338, %c0_92] : memref<64x128xf32, #tpu.memory_space<vmem>>, vector<8x128xf32>
    %cst_93 = arith.constant dense<0.000000e+00> : vector<8x128xf32>
    %340 = tpu.matmul %333, %227, %cst_93 {dimension_numbers = #tpu.dot_dimension_numbers<[1], [0], [0], [1], [0, 0, 1, 1], [], []>} : vector<8x32xf32>, vector<32x128xf32>, vector<8x128xf32> -> vector<8x128xf32>
    %341 = vector.extract_strided_slice %339 {offsets = [0, 0], sizes = [8, 64], strides = [1, 1]} : vector<8x128xf32> to vector<8x64xf32>
    %342 = vector.extract_strided_slice %340 {offsets = [0, 0], sizes = [8, 64], strides = [1, 1]} : vector<8x128xf32> to vector<8x64xf32>
    %343 = arith.addf %341, %342 : vector<8x64xf32>
    %344 = arith.negf %343 : vector<8x64xf32>
    %345 = math.exp %344 : vector<8x64xf32>
    %cst_94 = arith.constant 1.000000e+00 : f32
    %346 = vector.broadcast %cst_94 : f32 to vector<8x64xf32>
    %347 = arith.addf %346, %345 : vector<8x64xf32>
    %348 = arith.divf %346, %347 : vector<8x64xf32>
    %349 = vector.extract_strided_slice %348 {offsets = [0, 0], sizes = [8, 32], strides = [1, 1]} : vector<8x64xf32> to vector<8x32xf32>
    %350 = vector.extract_strided_slice %348 {offsets = [0, 32], sizes = [8, 32], strides = [1, 1]} : vector<8x64xf32> to vector<8x32xf32>
    %351 = vector.extract_strided_slice %339 {offsets = [0, 64], sizes = [8, 32], strides = [1, 1]} : vector<8x128xf32> to vector<8x32xf32>
    %352 = vector.extract_strided_slice %340 {offsets = [0, 64], sizes = [8, 32], strides = [1, 1]} : vector<8x128xf32> to vector<8x32xf32>
    %353 = arith.addf %352, %230 : vector<8x32xf32>
    %354 = arith.mulf %349, %353 : vector<8x32xf32>
    %355 = arith.addf %351, %354 : vector<8x32xf32>
    %356 = math.tanh %355 : vector<8x32xf32>
    %357 = arith.subf %333, %356 : vector<8x32xf32>
    %358 = arith.mulf %350, %357 : vector<8x32xf32>
    %359 = arith.addf %356, %358 : vector<8x32xf32>
    %360 = arith.index_cast %337 : i32 to index
    %c0_95 = arith.constant 0 : index
    %361 = vector.load %arg20[%360, %c0_95] : memref<64x32xf32, #tpu.memory_space<vmem>>, vector<8x32xf32>
    tpu.vector_store %arg20[%360, %c0_95], %359 {strides = array<i32>} : memref<64x32xf32, #tpu.memory_space<vmem>>, vector<8x32xf32>,
    %c5_i32_96 = arith.constant 5 : i32
    %c8_i32_97 = arith.constant 8 : i32
    %362 = arith.muli %c5_i32_96, %c8_i32_97 : i32
    %363 = tpu.assume_multiple %362, 8 : i32
    %364 = arith.index_cast %363 : i32 to index
    %c0_98 = arith.constant 0 : index
    %365 = vector.load %arg17[%364, %c0_98] : memref<64x128xf32, #tpu.memory_space<vmem>>, vector<8x128xf32>
    %cst_99 = arith.constant dense<0.000000e+00> : vector<8x128xf32>
    %366 = tpu.matmul %359, %227, %cst_99 {dimension_numbers = #tpu.dot_dimension_numbers<[1], [0], [0], [1], [0, 0, 1, 1], [], []>} : vector<8x32xf32>, vector<32x128xf32>, vector<8x128xf32> -> vector<8x128xf32>
    %367 = vector.extract_strided_slice %365 {offsets = [0, 0], sizes = [8, 64], strides = [1, 1]} : vector<8x128xf32> to vector<8x64xf32>
    %368 = vector.extract_strided_slice %366 {offsets = [0, 0], sizes = [8, 64], strides = [1, 1]} : vector<8x128xf32> to vector<8x64xf32>
    %369 = arith.addf %367, %368 : vector<8x64xf32>
    %370 = arith.negf %369 : vector<8x64xf32>
    %371 = math.exp %370 : vector<8x64xf32>
    %cst_100 = arith.constant 1.000000e+00 : f32
    %372 = vector.broadcast %cst_100 : f32 to vector<8x64xf32>
    %373 = arith.addf %372, %371 : vector<8x64xf32>
    %374 = arith.divf %372, %373 : vector<8x64xf32>
    %375 = vector.extract_strided_slice %374 {offsets = [0, 0], sizes = [8, 32], strides = [1, 1]} : vector<8x64xf32> to vector<8x32xf32>
    %376 = vector.extract_strided_slice %374 {offsets = [0, 32], sizes = [8, 32], strides = [1, 1]} : vector<8x64xf32> to vector<8x32xf32>
    %377 = vector.extract_strided_slice %365 {offsets = [0, 64], sizes = [8, 32], strides = [1, 1]} : vector<8x128xf32> to vector<8x32xf32>
    %378 = vector.extract_strided_slice %366 {offsets = [0, 64], sizes = [8, 32], strides = [1, 1]} : vector<8x128xf32> to vector<8x32xf32>
    %379 = arith.addf %378, %230 : vector<8x32xf32>
    %380 = arith.mulf %375, %379 : vector<8x32xf32>
    %381 = arith.addf %377, %380 : vector<8x32xf32>
    %382 = math.tanh %381 : vector<8x32xf32>
    %383 = arith.subf %359, %382 : vector<8x32xf32>
    %384 = arith.mulf %376, %383 : vector<8x32xf32>
    %385 = arith.addf %382, %384 : vector<8x32xf32>
    %386 = arith.index_cast %363 : i32 to index
    %c0_101 = arith.constant 0 : index
    %387 = vector.load %arg20[%386, %c0_101] : memref<64x32xf32, #tpu.memory_space<vmem>>, vector<8x32xf32>
    tpu.vector_store %arg20[%386, %c0_101], %385 {strides = array<i32>} : memref<64x32xf32, #tpu.memory_space<vmem>>, vector<8x32xf32>,
    %c6_i32_102 = arith.constant 6 : i32
    %c8_i32_103 = arith.constant 8 : i32
    %388 = arith.muli %c6_i32_102, %c8_i32_103 : i32
    %389 = tpu.assume_multiple %388, 8 : i32
    %390 = arith.index_cast %389 : i32 to index
    %c0_104 = arith.constant 0 : index
    %391 = vector.load %arg17[%390, %c0_104] : memref<64x128xf32, #tpu.memory_space<vmem>>, vector<8x128xf32>
    %cst_105 = arith.constant dense<0.000000e+00> : vector<8x128xf32>
    %392 = tpu.matmul %385, %227, %cst_105 {dimension_numbers = #tpu.dot_dimension_numbers<[1], [0], [0], [1], [0, 0, 1, 1], [], []>} : vector<8x32xf32>, vector<32x128xf32>, vector<8x128xf32> -> vector<8x128xf32>
    %393 = vector.extract_strided_slice %391 {offsets = [0, 0], sizes = [8, 64], strides = [1, 1]} : vector<8x128xf32> to vector<8x64xf32>
    %394 = vector.extract_strided_slice %392 {offsets = [0, 0], sizes = [8, 64], strides = [1, 1]} : vector<8x128xf32> to vector<8x64xf32>
    %395 = arith.addf %393, %394 : vector<8x64xf32>
    %396 = arith.negf %395 : vector<8x64xf32>
    %397 = math.exp %396 : vector<8x64xf32>
    %cst_106 = arith.constant 1.000000e+00 : f32
    %398 = vector.broadcast %cst_106 : f32 to vector<8x64xf32>
    %399 = arith.addf %398, %397 : vector<8x64xf32>
    %400 = arith.divf %398, %399 : vector<8x64xf32>
    %401 = vector.extract_strided_slice %400 {offsets = [0, 0], sizes = [8, 32], strides = [1, 1]} : vector<8x64xf32> to vector<8x32xf32>
    %402 = vector.extract_strided_slice %400 {offsets = [0, 32], sizes = [8, 32], strides = [1, 1]} : vector<8x64xf32> to vector<8x32xf32>
    %403 = vector.extract_strided_slice %391 {offsets = [0, 64], sizes = [8, 32], strides = [1, 1]} : vector<8x128xf32> to vector<8x32xf32>
    %404 = vector.extract_strided_slice %392 {offsets = [0, 64], sizes = [8, 32], strides = [1, 1]} : vector<8x128xf32> to vector<8x32xf32>
    %405 = arith.addf %404, %230 : vector<8x32xf32>
    %406 = arith.mulf %401, %405 : vector<8x32xf32>
    %407 = arith.addf %403, %406 : vector<8x32xf32>
    %408 = math.tanh %407 : vector<8x32xf32>
    %409 = arith.subf %385, %408 : vector<8x32xf32>
    %410 = arith.mulf %402, %409 : vector<8x32xf32>
    %411 = arith.addf %408, %410 : vector<8x32xf32>
    %412 = arith.index_cast %389 : i32 to index
    %c0_107 = arith.constant 0 : index
    %413 = vector.load %arg20[%412, %c0_107] : memref<64x32xf32, #tpu.memory_space<vmem>>, vector<8x32xf32>
    tpu.vector_store %arg20[%412, %c0_107], %411 {strides = array<i32>} : memref<64x32xf32, #tpu.memory_space<vmem>>, vector<8x32xf32>,
    %c7_i32_108 = arith.constant 7 : i32
    %c8_i32_109 = arith.constant 8 : i32
    %414 = arith.muli %c7_i32_108, %c8_i32_109 : i32
    %415 = tpu.assume_multiple %414, 8 : i32
    %416 = arith.index_cast %415 : i32 to index
    %c0_110 = arith.constant 0 : index
    %417 = vector.load %arg17[%416, %c0_110] : memref<64x128xf32, #tpu.memory_space<vmem>>, vector<8x128xf32>
    %cst_111 = arith.constant dense<0.000000e+00> : vector<8x128xf32>
    %418 = tpu.matmul %411, %227, %cst_111 {dimension_numbers = #tpu.dot_dimension_numbers<[1], [0], [0], [1], [0, 0, 1, 1], [], []>} : vector<8x32xf32>, vector<32x128xf32>, vector<8x128xf32> -> vector<8x128xf32>
    %419 = vector.extract_strided_slice %417 {offsets = [0, 0], sizes = [8, 64], strides = [1, 1]} : vector<8x128xf32> to vector<8x64xf32>
    %420 = vector.extract_strided_slice %418 {offsets = [0, 0], sizes = [8, 64], strides = [1, 1]} : vector<8x128xf32> to vector<8x64xf32>
    %421 = arith.addf %419, %420 : vector<8x64xf32>
    %422 = arith.negf %421 : vector<8x64xf32>
    %423 = math.exp %422 : vector<8x64xf32>
    %cst_112 = arith.constant 1.000000e+00 : f32
    %424 = vector.broadcast %cst_112 : f32 to vector<8x64xf32>
    %425 = arith.addf %424, %423 : vector<8x64xf32>
    %426 = arith.divf %424, %425 : vector<8x64xf32>
    %427 = vector.extract_strided_slice %426 {offsets = [0, 0], sizes = [8, 32], strides = [1, 1]} : vector<8x64xf32> to vector<8x32xf32>
    %428 = vector.extract_strided_slice %426 {offsets = [0, 32], sizes = [8, 32], strides = [1, 1]} : vector<8x64xf32> to vector<8x32xf32>
    %429 = vector.extract_strided_slice %417 {offsets = [0, 64], sizes = [8, 32], strides = [1, 1]} : vector<8x128xf32> to vector<8x32xf32>
    %430 = vector.extract_strided_slice %418 {offsets = [0, 64], sizes = [8, 32], strides = [1, 1]} : vector<8x128xf32> to vector<8x32xf32>
    %431 = arith.addf %430, %230 : vector<8x32xf32>
    %432 = arith.mulf %427, %431 : vector<8x32xf32>
    %433 = arith.addf %429, %432 : vector<8x32xf32>
    %434 = math.tanh %433 : vector<8x32xf32>
    %435 = arith.subf %411, %434 : vector<8x32xf32>
    %436 = arith.mulf %428, %435 : vector<8x32xf32>
    %437 = arith.addf %434, %436 : vector<8x32xf32>
    %438 = arith.index_cast %415 : i32 to index
    %c0_113 = arith.constant 0 : index
    %439 = vector.load %arg20[%438, %c0_113] : memref<64x32xf32, #tpu.memory_space<vmem>>, vector<8x32xf32>
    tpu.vector_store %arg20[%438, %c0_113], %437 {strides = array<i32>} : memref<64x32xf32, #tpu.memory_space<vmem>>, vector<8x32xf32>,
    %c8_i32_114 = arith.constant 8 : i32
    %c0_115 = arith.constant 0 : index
    %c0_116 = arith.constant 0 : index
    %440 = vector.load %arg20[%c0_115, %c0_116] : memref<64x32xf32, #tpu.memory_space<vmem>>, vector<64x32xf32>
    %c0_117 = arith.constant 0 : index
    %c0_118 = arith.constant 0 : index
    %441 = vector.load %arg9[%c0_117, %c0_118] : memref<32x128xf32, #tpu.memory_space<vmem>>, vector<32x128xf32>
    %cst_119 = arith.constant dense<0.000000e+00> : vector<64x128xf32>
    %442 = tpu.matmul %440, %441, %cst_119 {dimension_numbers = #tpu.dot_dimension_numbers<[1], [0], [0], [1], [0, 0, 1, 1], [], []>} : vector<64x32xf32>, vector<32x128xf32>, vector<64x128xf32> -> vector<64x128xf32>
    %c0_120 = arith.constant 0 : index
    %c0_121 = arith.constant 0 : index
    %443 = vector.load %arg11[%c0_120, %c0_121] : memref<1x128xf32, #tpu.memory_space<vmem>>, vector<1x128xf32>
    %444 = vector.broadcast %443 : vector<1x128xf32> to vector<64x128xf32>
    %445 = arith.addf %442, %444 : vector<64x128xf32>
    %c0_122 = arith.constant 0 : index
    %c0_123 = arith.constant 0 : index
    %446 = vector.load %arg18[%c0_122, %c0_123] : memref<64x128xf32, #tpu.memory_space<vmem>>, vector<64x128xf32>
    tpu.vector_store %arg18[%c0_122, %c0_123], %445 {strides = array<i32>} : memref<64x128xf32, #tpu.memory_space<vmem>>, vector<64x128xf32>,
    %c0_124 = arith.constant 0 : index
    %c0_125 = arith.constant 0 : index
    %447 = vector.load %arg10[%c0_124, %c0_125] : memref<16x128xf32, #tpu.memory_space<vmem>>, vector<16x128xf32>
    %c0_126 = arith.constant 0 : index
    %c0_127 = arith.constant 0 : index
    %448 = vector.load %arg12[%c0_126, %c0_127] : memref<1x16xf32, #tpu.memory_space<vmem>>, vector<1x16xf32>
    %449 = vector.shape_cast %448 : vector<1x16xf32> to vector<1x16xf32>
    %450 = vector.broadcast %449 : vector<1x16xf32> to vector<8x16xf32>
    %cst_128 = arith.constant 0.000000e+00 : f32
    %451 = vector.broadcast %cst_128 : f32 to vector<8x16xf32>
    %c0_i32_129 = arith.constant 0 : i32
    %c8_i32_130 = arith.constant 8 : i32
    %452 = arith.muli %c0_i32_129, %c8_i32_130 : i32
    %453 = tpu.assume_multiple %452, 8 : i32
    %454 = arith.index_cast %453 : i32 to index
    %c0_131 = arith.constant 0 : index
    %455 = vector.load %arg18[%454, %c0_131] : memref<64x128xf32, #tpu.memory_space<vmem>>, vector<8x128xf32>
    %cst_132 = arith.constant dense<0.000000e+00> : vector<8x128xf32>
    %456 = tpu.matmul %451, %447, %cst_132 {dimension_numbers = #tpu.dot_dimension_numbers<[1], [0], [0], [1], [0, 0, 1, 1], [], []>} : vector<8x16xf32>, vector<16x128xf32>, vector<8x128xf32> -> vector<8x128xf32>
    %457 = vector.extract_strided_slice %455 {offsets = [0, 0], sizes = [8, 32], strides = [1, 1]} : vector<8x128xf32> to vector<8x32xf32>
    %458 = vector.extract_strided_slice %456 {offsets = [0, 0], sizes = [8, 32], strides = [1, 1]} : vector<8x128xf32> to vector<8x32xf32>
    %459 = arith.addf %457, %458 : vector<8x32xf32>
    %460 = arith.negf %459 : vector<8x32xf32>
    %461 = math.exp %460 : vector<8x32xf32>
    %cst_133 = arith.constant 1.000000e+00 : f32
    %462 = vector.broadcast %cst_133 : f32 to vector<8x32xf32>
    %463 = arith.addf %462, %461 : vector<8x32xf32>
    %464 = arith.divf %462, %463 : vector<8x32xf32>
    %465 = vector.extract_strided_slice %464 {offsets = [0, 0], sizes = [8, 16], strides = [1, 1]} : vector<8x32xf32> to vector<8x16xf32>
    %466 = vector.extract_strided_slice %464 {offsets = [0, 16], sizes = [8, 16], strides = [1, 1]} : vector<8x32xf32> to vector<8x16xf32>
    %467 = vector.extract_strided_slice %455 {offsets = [0, 32], sizes = [8, 16], strides = [1, 1]} : vector<8x128xf32> to vector<8x16xf32>
    %468 = vector.extract_strided_slice %456 {offsets = [0, 32], sizes = [8, 16], strides = [1, 1]} : vector<8x128xf32> to vector<8x16xf32>
    %469 = arith.addf %468, %450 : vector<8x16xf32>
    %470 = arith.mulf %465, %469 : vector<8x16xf32>
    %471 = arith.addf %467, %470 : vector<8x16xf32>
    %472 = math.tanh %471 : vector<8x16xf32>
    %473 = arith.subf %451, %472 : vector<8x16xf32>
    %474 = arith.mulf %466, %473 : vector<8x16xf32>
    %475 = arith.addf %472, %474 : vector<8x16xf32>
    %c1_i32_134 = arith.constant 1 : i32
    %c8_i32_135 = arith.constant 8 : i32
    %476 = arith.muli %c1_i32_134, %c8_i32_135 : i32
    %477 = tpu.assume_multiple %476, 8 : i32
    %478 = arith.index_cast %477 : i32 to index
    %c0_136 = arith.constant 0 : index
    %479 = vector.load %arg18[%478, %c0_136] : memref<64x128xf32, #tpu.memory_space<vmem>>, vector<8x128xf32>
    %cst_137 = arith.constant dense<0.000000e+00> : vector<8x128xf32>
    %480 = tpu.matmul %475, %447, %cst_137 {dimension_numbers = #tpu.dot_dimension_numbers<[1], [0], [0], [1], [0, 0, 1, 1], [], []>} : vector<8x16xf32>, vector<16x128xf32>, vector<8x128xf32> -> vector<8x128xf32>
    %481 = vector.extract_strided_slice %479 {offsets = [0, 0], sizes = [8, 32], strides = [1, 1]} : vector<8x128xf32> to vector<8x32xf32>
    %482 = vector.extract_strided_slice %480 {offsets = [0, 0], sizes = [8, 32], strides = [1, 1]} : vector<8x128xf32> to vector<8x32xf32>
    %483 = arith.addf %481, %482 : vector<8x32xf32>
    %484 = arith.negf %483 : vector<8x32xf32>
    %485 = math.exp %484 : vector<8x32xf32>
    %cst_138 = arith.constant 1.000000e+00 : f32
    %486 = vector.broadcast %cst_138 : f32 to vector<8x32xf32>
    %487 = arith.addf %486, %485 : vector<8x32xf32>
    %488 = arith.divf %486, %487 : vector<8x32xf32>
    %489 = vector.extract_strided_slice %488 {offsets = [0, 0], sizes = [8, 16], strides = [1, 1]} : vector<8x32xf32> to vector<8x16xf32>
    %490 = vector.extract_strided_slice %488 {offsets = [0, 16], sizes = [8, 16], strides = [1, 1]} : vector<8x32xf32> to vector<8x16xf32>
    %491 = vector.extract_strided_slice %479 {offsets = [0, 32], sizes = [8, 16], strides = [1, 1]} : vector<8x128xf32> to vector<8x16xf32>
    %492 = vector.extract_strided_slice %480 {offsets = [0, 32], sizes = [8, 16], strides = [1, 1]} : vector<8x128xf32> to vector<8x16xf32>
    %493 = arith.addf %492, %450 : vector<8x16xf32>
    %494 = arith.mulf %489, %493 : vector<8x16xf32>
    %495 = arith.addf %491, %494 : vector<8x16xf32>
    %496 = math.tanh %495 : vector<8x16xf32>
    %497 = arith.subf %475, %496 : vector<8x16xf32>
    %498 = arith.mulf %490, %497 : vector<8x16xf32>
    %499 = arith.addf %496, %498 : vector<8x16xf32>
    %c2_i32_139 = arith.constant 2 : i32
    %c8_i32_140 = arith.constant 8 : i32
    %500 = arith.muli %c2_i32_139, %c8_i32_140 : i32
    %501 = tpu.assume_multiple %500, 8 : i32
    %502 = arith.index_cast %501 : i32 to index
    %c0_141 = arith.constant 0 : index
    %503 = vector.load %arg18[%502, %c0_141] : memref<64x128xf32, #tpu.memory_space<vmem>>, vector<8x128xf32>
    %cst_142 = arith.constant dense<0.000000e+00> : vector<8x128xf32>
    %504 = tpu.matmul %499, %447, %cst_142 {dimension_numbers = #tpu.dot_dimension_numbers<[1], [0], [0], [1], [0, 0, 1, 1], [], []>} : vector<8x16xf32>, vector<16x128xf32>, vector<8x128xf32> -> vector<8x128xf32>
    %505 = vector.extract_strided_slice %503 {offsets = [0, 0], sizes = [8, 32], strides = [1, 1]} : vector<8x128xf32> to vector<8x32xf32>
    %506 = vector.extract_strided_slice %504 {offsets = [0, 0], sizes = [8, 32], strides = [1, 1]} : vector<8x128xf32> to vector<8x32xf32>
    %507 = arith.addf %505, %506 : vector<8x32xf32>
    %508 = arith.negf %507 : vector<8x32xf32>
    %509 = math.exp %508 : vector<8x32xf32>
    %cst_143 = arith.constant 1.000000e+00 : f32
    %510 = vector.broadcast %cst_143 : f32 to vector<8x32xf32>
    %511 = arith.addf %510, %509 : vector<8x32xf32>
    %512 = arith.divf %510, %511 : vector<8x32xf32>
    %513 = vector.extract_strided_slice %512 {offsets = [0, 0], sizes = [8, 16], strides = [1, 1]} : vector<8x32xf32> to vector<8x16xf32>
    %514 = vector.extract_strided_slice %512 {offsets = [0, 16], sizes = [8, 16], strides = [1, 1]} : vector<8x32xf32> to vector<8x16xf32>
    %515 = vector.extract_strided_slice %503 {offsets = [0, 32], sizes = [8, 16], strides = [1, 1]} : vector<8x128xf32> to vector<8x16xf32>
    %516 = vector.extract_strided_slice %504 {offsets = [0, 32], sizes = [8, 16], strides = [1, 1]} : vector<8x128xf32> to vector<8x16xf32>
    %517 = arith.addf %516, %450 : vector<8x16xf32>
    %518 = arith.mulf %513, %517 : vector<8x16xf32>
    %519 = arith.addf %515, %518 : vector<8x16xf32>
    %520 = math.tanh %519 : vector<8x16xf32>
    %521 = arith.subf %499, %520 : vector<8x16xf32>
    %522 = arith.mulf %514, %521 : vector<8x16xf32>
    %523 = arith.addf %520, %522 : vector<8x16xf32>
    %c3_i32_144 = arith.constant 3 : i32
    %c8_i32_145 = arith.constant 8 : i32
    %524 = arith.muli %c3_i32_144, %c8_i32_145 : i32
    %525 = tpu.assume_multiple %524, 8 : i32
    %526 = arith.index_cast %525 : i32 to index
    %c0_146 = arith.constant 0 : index
    %527 = vector.load %arg18[%526, %c0_146] : memref<64x128xf32, #tpu.memory_space<vmem>>, vector<8x128xf32>
    %cst_147 = arith.constant dense<0.000000e+00> : vector<8x128xf32>
    %528 = tpu.matmul %523, %447, %cst_147 {dimension_numbers = #tpu.dot_dimension_numbers<[1], [0], [0], [1], [0, 0, 1, 1], [], []>} : vector<8x16xf32>, vector<16x128xf32>, vector<8x128xf32> -> vector<8x128xf32>
    %529 = vector.extract_strided_slice %527 {offsets = [0, 0], sizes = [8, 32], strides = [1, 1]} : vector<8x128xf32> to vector<8x32xf32>
    %530 = vector.extract_strided_slice %528 {offsets = [0, 0], sizes = [8, 32], strides = [1, 1]} : vector<8x128xf32> to vector<8x32xf32>
    %531 = arith.addf %529, %530 : vector<8x32xf32>
    %532 = arith.negf %531 : vector<8x32xf32>
    %533 = math.exp %532 : vector<8x32xf32>
    %cst_148 = arith.constant 1.000000e+00 : f32
    %534 = vector.broadcast %cst_148 : f32 to vector<8x32xf32>
    %535 = arith.addf %534, %533 : vector<8x32xf32>
    %536 = arith.divf %534, %535 : vector<8x32xf32>
    %537 = vector.extract_strided_slice %536 {offsets = [0, 0], sizes = [8, 16], strides = [1, 1]} : vector<8x32xf32> to vector<8x16xf32>
    %538 = vector.extract_strided_slice %536 {offsets = [0, 16], sizes = [8, 16], strides = [1, 1]} : vector<8x32xf32> to vector<8x16xf32>
    %539 = vector.extract_strided_slice %527 {offsets = [0, 32], sizes = [8, 16], strides = [1, 1]} : vector<8x128xf32> to vector<8x16xf32>
    %540 = vector.extract_strided_slice %528 {offsets = [0, 32], sizes = [8, 16], strides = [1, 1]} : vector<8x128xf32> to vector<8x16xf32>
    %541 = arith.addf %540, %450 : vector<8x16xf32>
    %542 = arith.mulf %537, %541 : vector<8x16xf32>
    %543 = arith.addf %539, %542 : vector<8x16xf32>
    %544 = math.tanh %543 : vector<8x16xf32>
    %545 = arith.subf %523, %544 : vector<8x16xf32>
    %546 = arith.mulf %538, %545 : vector<8x16xf32>
    %547 = arith.addf %544, %546 : vector<8x16xf32>
    %c4_i32_149 = arith.constant 4 : i32
    %c8_i32_150 = arith.constant 8 : i32
    %548 = arith.muli %c4_i32_149, %c8_i32_150 : i32
    %549 = tpu.assume_multiple %548, 8 : i32
    %550 = arith.index_cast %549 : i32 to index
    %c0_151 = arith.constant 0 : index
    %551 = vector.load %arg18[%550, %c0_151] : memref<64x128xf32, #tpu.memory_space<vmem>>, vector<8x128xf32>
    %cst_152 = arith.constant dense<0.000000e+00> : vector<8x128xf32>
    %552 = tpu.matmul %547, %447, %cst_152 {dimension_numbers = #tpu.dot_dimension_numbers<[1], [0], [0], [1], [0, 0, 1, 1], [], []>} : vector<8x16xf32>, vector<16x128xf32>, vector<8x128xf32> -> vector<8x128xf32>
    %553 = vector.extract_strided_slice %551 {offsets = [0, 0], sizes = [8, 32], strides = [1, 1]} : vector<8x128xf32> to vector<8x32xf32>
    %554 = vector.extract_strided_slice %552 {offsets = [0, 0], sizes = [8, 32], strides = [1, 1]} : vector<8x128xf32> to vector<8x32xf32>
    %555 = arith.addf %553, %554 : vector<8x32xf32>
    %556 = arith.negf %555 : vector<8x32xf32>
    %557 = math.exp %556 : vector<8x32xf32>
    %cst_153 = arith.constant 1.000000e+00 : f32
    %558 = vector.broadcast %cst_153 : f32 to vector<8x32xf32>
    %559 = arith.addf %558, %557 : vector<8x32xf32>
    %560 = arith.divf %558, %559 : vector<8x32xf32>
    %561 = vector.extract_strided_slice %560 {offsets = [0, 0], sizes = [8, 16], strides = [1, 1]} : vector<8x32xf32> to vector<8x16xf32>
    %562 = vector.extract_strided_slice %560 {offsets = [0, 16], sizes = [8, 16], strides = [1, 1]} : vector<8x32xf32> to vector<8x16xf32>
    %563 = vector.extract_strided_slice %551 {offsets = [0, 32], sizes = [8, 16], strides = [1, 1]} : vector<8x128xf32> to vector<8x16xf32>
    %564 = vector.extract_strided_slice %552 {offsets = [0, 32], sizes = [8, 16], strides = [1, 1]} : vector<8x128xf32> to vector<8x16xf32>
    %565 = arith.addf %564, %450 : vector<8x16xf32>
    %566 = arith.mulf %561, %565 : vector<8x16xf32>
    %567 = arith.addf %563, %566 : vector<8x16xf32>
    %568 = math.tanh %567 : vector<8x16xf32>
    %569 = arith.subf %547, %568 : vector<8x16xf32>
    %570 = arith.mulf %562, %569 : vector<8x16xf32>
    %571 = arith.addf %568, %570 : vector<8x16xf32>
    %c5_i32_154 = arith.constant 5 : i32
    %c8_i32_155 = arith.constant 8 : i32
    %572 = arith.muli %c5_i32_154, %c8_i32_155 : i32
    %573 = tpu.assume_multiple %572, 8 : i32
    %574 = arith.index_cast %573 : i32 to index
    %c0_156 = arith.constant 0 : index
    %575 = vector.load %arg18[%574, %c0_156] : memref<64x128xf32, #tpu.memory_space<vmem>>, vector<8x128xf32>
    %cst_157 = arith.constant dense<0.000000e+00> : vector<8x128xf32>
    %576 = tpu.matmul %571, %447, %cst_157 {dimension_numbers = #tpu.dot_dimension_numbers<[1], [0], [0], [1], [0, 0, 1, 1], [], []>} : vector<8x16xf32>, vector<16x128xf32>, vector<8x128xf32> -> vector<8x128xf32>
    %577 = vector.extract_strided_slice %575 {offsets = [0, 0], sizes = [8, 32], strides = [1, 1]} : vector<8x128xf32> to vector<8x32xf32>
    %578 = vector.extract_strided_slice %576 {offsets = [0, 0], sizes = [8, 32], strides = [1, 1]} : vector<8x128xf32> to vector<8x32xf32>
    %579 = arith.addf %577, %578 : vector<8x32xf32>
    %580 = arith.negf %579 : vector<8x32xf32>
    %581 = math.exp %580 : vector<8x32xf32>
    %cst_158 = arith.constant 1.000000e+00 : f32
    %582 = vector.broadcast %cst_158 : f32 to vector<8x32xf32>
    %583 = arith.addf %582, %581 : vector<8x32xf32>
    %584 = arith.divf %582, %583 : vector<8x32xf32>
    %585 = vector.extract_strided_slice %584 {offsets = [0, 0], sizes = [8, 16], strides = [1, 1]} : vector<8x32xf32> to vector<8x16xf32>
    %586 = vector.extract_strided_slice %584 {offsets = [0, 16], sizes = [8, 16], strides = [1, 1]} : vector<8x32xf32> to vector<8x16xf32>
    %587 = vector.extract_strided_slice %575 {offsets = [0, 32], sizes = [8, 16], strides = [1, 1]} : vector<8x128xf32> to vector<8x16xf32>
    %588 = vector.extract_strided_slice %576 {offsets = [0, 32], sizes = [8, 16], strides = [1, 1]} : vector<8x128xf32> to vector<8x16xf32>
    %589 = arith.addf %588, %450 : vector<8x16xf32>
    %590 = arith.mulf %585, %589 : vector<8x16xf32>
    %591 = arith.addf %587, %590 : vector<8x16xf32>
    %592 = math.tanh %591 : vector<8x16xf32>
    %593 = arith.subf %571, %592 : vector<8x16xf32>
    %594 = arith.mulf %586, %593 : vector<8x16xf32>
    %595 = arith.addf %592, %594 : vector<8x16xf32>
    %c6_i32_159 = arith.constant 6 : i32
    %c8_i32_160 = arith.constant 8 : i32
    %596 = arith.muli %c6_i32_159, %c8_i32_160 : i32
    %597 = tpu.assume_multiple %596, 8 : i32
    %598 = arith.index_cast %597 : i32 to index
    %c0_161 = arith.constant 0 : index
    %599 = vector.load %arg18[%598, %c0_161] : memref<64x128xf32, #tpu.memory_space<vmem>>, vector<8x128xf32>
    %cst_162 = arith.constant dense<0.000000e+00> : vector<8x128xf32>
    %600 = tpu.matmul %595, %447, %cst_162 {dimension_numbers = #tpu.dot_dimension_numbers<[1], [0], [0], [1], [0, 0, 1, 1], [], []>} : vector<8x16xf32>, vector<16x128xf32>, vector<8x128xf32> -> vector<8x128xf32>
    %601 = vector.extract_strided_slice %599 {offsets = [0, 0], sizes = [8, 32], strides = [1, 1]} : vector<8x128xf32> to vector<8x32xf32>
    %602 = vector.extract_strided_slice %600 {offsets = [0, 0], sizes = [8, 32], strides = [1, 1]} : vector<8x128xf32> to vector<8x32xf32>
    %603 = arith.addf %601, %602 : vector<8x32xf32>
    %604 = arith.negf %603 : vector<8x32xf32>
    %605 = math.exp %604 : vector<8x32xf32>
    %cst_163 = arith.constant 1.000000e+00 : f32
    %606 = vector.broadcast %cst_163 : f32 to vector<8x32xf32>
    %607 = arith.addf %606, %605 : vector<8x32xf32>
    %608 = arith.divf %606, %607 : vector<8x32xf32>
    %609 = vector.extract_strided_slice %608 {offsets = [0, 0], sizes = [8, 16], strides = [1, 1]} : vector<8x32xf32> to vector<8x16xf32>
    %610 = vector.extract_strided_slice %608 {offsets = [0, 16], sizes = [8, 16], strides = [1, 1]} : vector<8x32xf32> to vector<8x16xf32>
    %611 = vector.extract_strided_slice %599 {offsets = [0, 32], sizes = [8, 16], strides = [1, 1]} : vector<8x128xf32> to vector<8x16xf32>
    %612 = vector.extract_strided_slice %600 {offsets = [0, 32], sizes = [8, 16], strides = [1, 1]} : vector<8x128xf32> to vector<8x16xf32>
    %613 = arith.addf %612, %450 : vector<8x16xf32>
    %614 = arith.mulf %609, %613 : vector<8x16xf32>
    %615 = arith.addf %611, %614 : vector<8x16xf32>
    %616 = math.tanh %615 : vector<8x16xf32>
    %617 = arith.subf %595, %616 : vector<8x16xf32>
    %618 = arith.mulf %610, %617 : vector<8x16xf32>
    %619 = arith.addf %616, %618 : vector<8x16xf32>
    %c7_i32_164 = arith.constant 7 : i32
    %c8_i32_165 = arith.constant 8 : i32
    %620 = arith.muli %c7_i32_164, %c8_i32_165 : i32
    %621 = tpu.assume_multiple %620, 8 : i32
    %622 = arith.index_cast %621 : i32 to index
    %c0_166 = arith.constant 0 : index
    %623 = vector.load %arg18[%622, %c0_166] : memref<64x128xf32, #tpu.memory_space<vmem>>, vector<8x128xf32>
    %cst_167 = arith.constant dense<0.000000e+00> : vector<8x128xf32>
    %624 = tpu.matmul %619, %447, %cst_167 {dimension_numbers = #tpu.dot_dimension_numbers<[1], [0], [0], [1], [0, 0, 1, 1], [], []>} : vector<8x16xf32>, vector<16x128xf32>, vector<8x128xf32> -> vector<8x128xf32>
    %625 = vector.extract_strided_slice %623 {offsets = [0, 0], sizes = [8, 32], strides = [1, 1]} : vector<8x128xf32> to vector<8x32xf32>
    %626 = vector.extract_strided_slice %624 {offsets = [0, 0], sizes = [8, 32], strides = [1, 1]} : vector<8x128xf32> to vector<8x32xf32>
    %627 = arith.addf %625, %626 : vector<8x32xf32>
    %628 = arith.negf %627 : vector<8x32xf32>
    %629 = math.exp %628 : vector<8x32xf32>
    %cst_168 = arith.constant 1.000000e+00 : f32
    %630 = vector.broadcast %cst_168 : f32 to vector<8x32xf32>
    %631 = arith.addf %630, %629 : vector<8x32xf32>
    %632 = arith.divf %630, %631 : vector<8x32xf32>
    %633 = vector.extract_strided_slice %632 {offsets = [0, 0], sizes = [8, 16], strides = [1, 1]} : vector<8x32xf32> to vector<8x16xf32>
    %634 = vector.extract_strided_slice %632 {offsets = [0, 16], sizes = [8, 16], strides = [1, 1]} : vector<8x32xf32> to vector<8x16xf32>
    %635 = vector.extract_strided_slice %623 {offsets = [0, 32], sizes = [8, 16], strides = [1, 1]} : vector<8x128xf32> to vector<8x16xf32>
    %636 = vector.extract_strided_slice %624 {offsets = [0, 32], sizes = [8, 16], strides = [1, 1]} : vector<8x128xf32> to vector<8x16xf32>
    %637 = arith.addf %636, %450 : vector<8x16xf32>
    %638 = arith.mulf %633, %637 : vector<8x16xf32>
    %639 = arith.addf %635, %638 : vector<8x16xf32>
    %640 = math.tanh %639 : vector<8x16xf32>
    %641 = arith.subf %619, %640 : vector<8x16xf32>
    %642 = arith.mulf %634, %641 : vector<8x16xf32>
    %643 = arith.addf %640, %642 : vector<8x16xf32>
    %c8_i32_169 = arith.constant 8 : i32
    %c0_170 = arith.constant 0 : index
    %c0_171 = arith.constant 0 : index
    %644 = vector.load %arg13[%c0_170, %c0_171] : memref<16x16xf32, #tpu.memory_space<vmem>>, vector<16x16xf32>
    %cst_172 = arith.constant dense<0.000000e+00> : vector<8x16xf32>
    %645 = tpu.matmul %643, %644, %cst_172 {dimension_numbers = #tpu.dot_dimension_numbers<[1], [0], [0], [1], [0, 0, 1, 1], [], []>} : vector<8x16xf32>, vector<16x16xf32>, vector<8x16xf32> -> vector<8x16xf32>
    %c0_173 = arith.constant 0 : index
    %c0_174 = arith.constant 0 : index
    %646 = vector.load %arg14[%c0_173, %c0_174] : memref<1x16xf32, #tpu.memory_space<vmem>>, vector<1x16xf32>
    %647 = vector.broadcast %646 : vector<1x16xf32> to vector<8x16xf32>
    %648 = arith.addf %645, %647 : vector<8x16xf32>
    %cst_175 = arith.constant dense<0xFF800000> : vector<8xf32>
    %649 = vector.multi_reduction <maximumf>, %648, %cst_175 [1] : vector<8x16xf32> to vector<8xf32>
    %650 = vector.shape_cast %649 : vector<8xf32> to vector<8x1xf32>
    %651 = vector.broadcast %650 : vector<8x1xf32> to vector<8x16xf32>
    %652 = arith.subf %648, %651 : vector<8x16xf32>
    %653 = math.exp %652 : vector<8x16xf32>
    %cst_176 = arith.constant dense<0.000000e+00> : vector<8xf32>
    %654 = vector.multi_reduction <add>, %653, %cst_176 [1] : vector<8x16xf32> to vector<8xf32>
    %655 = vector.shape_cast %654 : vector<8xf32> to vector<8x1xf32>
    %656 = math.log %655 : vector<8x1xf32>
    %657 = vector.broadcast %656 : vector<8x1xf32> to vector<8x16xf32>
    %658 = arith.subf %652, %657 : vector<8x16xf32>
    %c0_177 = arith.constant 0 : index
    %c0_178 = arith.constant 0 : index
    %659 = vector.load %arg15[%c0_177, %c0_178] : memref<8x16xf32, #tpu.memory_space<vmem>>, vector<8x16xf32>
    tpu.vector_store %arg15[%c0_177, %c0_178], %658 {strides = array<i32>} : memref<8x16xf32, #tpu.memory_space<vmem>>, vector<8x16xf32>,
    return
  }
}

</mosaic_0001>

<bundles_post_ra>
// kernel: tpu_custom_call.1
= control target key start
LH: loop header
LB: loop body
LE: loop exit
PB: predicated region body
PF: predicated region fallthrough
CT: control target
= control target key end

     0   :  { %20 = vsyncpa [#allocation8], 0  ;;  %s5124_s0 = inlined_call_operand.vmem [shape: f32[64,16], index: 0, kind: input, shape index: {}]   ;;  %s5125_s1 = inlined_call_operand.hbm [shape: f32[16,128], index: 1, kind: input, shape index: {}]   ;;  %s5126_s2 = inlined_call_operand.vmem [shape: f32[32,128], index: 2, kind: input, shape index: {}]   ;;  %s5127_s3 = inlined_call_operand.vmem [shape: f32[1,128], index: 3, kind: input, shape index: {}]   ;;  %s5128_s4 = inlined_call_operand.hbm [shape: f32[1,32], index: 4, kind: input, shape index: {}]   ;;  %s5129_s5 = inlined_call_operand.vmem [shape: f32[32,128], index: 5, kind: input, shape index: {}]   ;;  %s5130_s6 = inlined_call_operand.vmem [shape: f32[32,128], index: 6, kind: input, shape index: {}]   ;;  %s5131_s7 = inlined_call_operand.hbm [shape: f32[1,128], index: 7, kind: input, shape index: {}]   ;;  %s5132_s8 = inlined_call_operand.hbm [shape: f32[1,32], index: 8, kind: input, shape index: {}]   ;;  %s5133_s9 = inlined_call_operand.hbm [shape: f32[32,128], index: 9, kind: input, shape index: {}]   ;;  %s5134_s10 = inlined_call_operand.vmem [shape: f32[16,128], index: 10, kind: input, shape index: {}]   ;;  %s5135_s11 = inlined_call_operand.hbm [shape: f32[1,128], index: 11, kind: input, shape index: {}]   ;;  %s5136_s12 = inlined_call_operand.hbm [shape: f32[1,16], index: 12, kind: input, shape index: {}]   ;;  %s5137_s13 = inlined_call_operand.vmem [shape: f32[16,16], index: 13, kind: input, shape index: {}]   ;;  %s5138_s14 = inlined_call_operand.vmem [shape: f32[1,16], index: 14, kind: input, shape index: {}]   ;;  %s5139_s15 = inlined_call_operand.hbm [shape: f32[8,16], index: 15, kind: output, shape index: {}]  }
   0x1   :  { %21 = vsyncpa [#allocation11], 0 }
   0x2   :  { %22 = vsyncpa [#allocation14], 0 }
   0x3   :  { %23 = vsyncpa [#allocation17], 0 }
   0x4   :  { %24 = vsyncpa [#allocation9], 0  ;;  %s4371_s18 = smov [#allocation10]   ;;  %s4372_s20 = smov [#allocation13]  }
   0x5   :  { %s49_s19 = sshll.u32 %s4371_s18, 4  ;;  %s73_s21 = sshll.u32 %s4372_s20, 4  ;;  %s50_s19 = int_to_ptr.vmem [resolvable:$true] %s49_s19  ;;  %s74_s21 = int_to_ptr.vmem [resolvable:$true] %s73_s21 }
   0x6   :  { %s4185_s24 = scalar_lea.hbm %s5128_s4, 16 }
   0x7   :  { %p4186_p0 = scmp.ne.s32.totalorder %s5128_s4, %s4185_s24  ;;  %p4189_p1 = scmp.lt.u32.totalorder %s4185_s24, %s5128_s4 }
   0x9   :  { %p4191_p2 = pnand %p4189_p1, %p4186_p0 }
   0xb   :  { %4194 = shalt.err (!%p4191_p2)
}
   0xc   :  { %s4195_s29 = scalar_lea.vmem %s50_s19, 16  ;;  %s4199_s30 = scalar_lea.vmem %s50_s19, 32 }
   0xd   :  { %p4196_p3 = scmp.ne.s32.totalorder %s50_s19, %s4195_s29  ;;  %p4200_p4 = scmp.lt.s32.totalorder %s50_s19, %s50_s19 }
   0xe   :  { %p4201_p5 = scmp.lt.s32.totalorder %s4199_s30, %s4195_s29 }
  0x10   :  { %p4202_p6 = por %p4201_p5, %p4200_p4 }
  0x12   :  { %p4203_p7 = pnand %p4202_p6, %p4196_p3 }
  0x14   :  { %4206 = shalt.err (!%p4203_p7)
}
  0x15   :  { %52 = dma.hbm_to_vmem [thread:$0]  %s5128_s4, 16, %s50_s19, [#allocation11]  }
  0x16   :  { %s4207_s22 = scalar_lea.hbm %s5132_s8, 16 }
  0x17   :  { %p4208_p8 = scmp.ne.s32.totalorder %s5132_s8, %s4207_s22  ;;  %p4211_p9 = scmp.lt.u32.totalorder %s4207_s22, %s5132_s8 }
  0x19   :  { %p4213_p10 = pnand %p4211_p9, %p4208_p8 }
  0x1b   :  { %4216 = shalt.err (!%p4213_p10)
}
  0x1c   :  { %s4217_s27 = scalar_lea.vmem %s74_s21, 16  ;;  %s4221_s28 = scalar_lea.vmem %s74_s21, 32 }
  0x1d   :  { %p4218_p11 = scmp.ne.s32.totalorder %s74_s21, %s4217_s27  ;;  %p4222_p12 = scmp.lt.s32.totalorder %s74_s21, %s74_s21 }
  0x1e   :  { %p4223_p13 = scmp.lt.s32.totalorder %s4221_s28, %s4217_s27 }
  0x20   :  { %p4224_p0 = por %p4223_p13, %p4222_p12 }
  0x22   :  { %p4225_p1 = pnand %p4224_p0, %p4218_p11 }
  0x24   :  { %4228 = shalt.err (!%p4225_p1)
}
  0x25   :  { %76 = dma.hbm_to_vmem [thread:$0]  %s5132_s8, 16, %s74_s21, [#allocation14]  }
  0x26   :  { %s4373_s29 = smov [#allocation16]   ;;  %s4374_s16 = smov [#allocation7]  }
  0x27   :  { %s97_s30 = sshll.u32 %s4373_s29, 4  ;;  %s32_s17 = sshll.u32 %s4374_s16, 4  ;;  %s98_s30 = int_to_ptr.vmem [resolvable:$true] %s97_s30  ;;  %s4493_s17 = int_to_ptr.vmem [resolvable:$true] %s32_s17 }
  0x28   :  { %s4229_s22 = scalar_lea.hbm %s5135_s11, 16 }
  0x29   :  { %p4230_p2 = scmp.ne.s32.totalorder %s5135_s11, %s4229_s22  ;;  %p4233_p3 = scmp.lt.u32.totalorder %s4229_s22, %s5135_s11 }
  0x2b   :  { %p4235_p4 = pnand %p4233_p3, %p4230_p2 }
  0x2d   :  { %4238 = shalt.err (!%p4235_p4)
}
  0x2e   :  { %s4239_s8 = scalar_lea.vmem %s98_s30, 16  ;;  %s4243_s21 = scalar_lea.vmem %s98_s30, 32 }
  0x2f   :  { %p4240_p5 = scmp.ne.s32.totalorder %s98_s30, %s4239_s8  ;;  %p4244_p6 = scmp.lt.s32.totalorder %s98_s30, %s98_s30 }
  0x30   :  { %p4245_p7 = scmp.lt.s32.totalorder %s4243_s21, %s4239_s8 }
  0x32   :  { %p4246_p8 = por %p4245_p7, %p4244_p6 }
  0x34   :  { %p4247_p9 = pnand %p4246_p8, %p4240_p5 }
  0x36   :  { %4250 = shalt.err (!%p4247_p9)
}
  0x37   :  { %100 = dma.hbm_to_vmem [thread:$0]  %s5135_s11, 16, %s98_s30, [#allocation17]  }
  0x38   :  { %s4251_s29 = scalar_lea.hbm %s5125_s1, 256 }
  0x39   :  { %p4252_p10 = scmp.ne.s32.totalorder %s5125_s1, %s4251_s29  ;;  %p4255_p11 = scmp.lt.u32.totalorder %s4251_s29, %s5125_s1 }
  0x3b   :  { %p4257_p12 = pnand %p4255_p11, %p4252_p10 }
  0x3d   :  { %4260 = shalt.err (!%p4257_p12)
}
  0x3e   :  { %s4261_s23 = scalar_lea.vmem %s4493_s17, 256  ;;  %p4266_p0 = scmp.lt.s32.totalorder %s4493_s17, %s4493_s17 }
  0x3f   :  { %p4262_p13 = scmp.ne.s32.totalorder %s4493_s17, %s4261_s23  ;;  %p4267_p1 = scmp.lt.s32.totalorder %s4261_s23, %s4261_s23 }
  0x41   :  { %p4268_p2 = por %p4267_p1, %p4266_p0 }
  0x43   :  { %p4269_p3 = pnand %p4268_p2, %p4262_p13 }
  0x45   :  { %4272 = shalt.err (!%p4269_p3)
}
  0x46   :  { %s4375_s11 = smov 128   ;;  %s4376_s30 = smov 8  }
  0x47   :  { %38 = dma.hbm_to_vmem [thread:$0]  %s5125_s1, 256, %s4493_s17, [#allocation8], %s4375_s11, %s4375_s11, %s4376_s30  }
  0x48   :  { %s4377_s26 = smov [#allocation12]   ;;  %s4378_s21 = smov [#allocation15]  }
  0x49   :  { %s63_s8 = sshll.u32 %s4377_s26, 4  ;;  %s82_s27 = sshll.u32 %s4378_s21, 4  ;;  %s64_s8 = int_to_ptr.vmem [resolvable:$true] %s63_s8  ;;  %s4527_s27 = int_to_ptr.vmem [resolvable:$true] %s82_s27 }
  0x4a   :  { %s4273_s19 = scalar_lea.hbm %s5131_s7, 16 }
  0x4b   :  { %p4274_p4 = scmp.ne.s32.totalorder %s5131_s7, %s4273_s19  ;;  %p4277_p5 = scmp.lt.u32.totalorder %s4273_s19, %s5131_s7 }
  0x4d   :  { %p4279_p6 = pnand %p4277_p5, %p4274_p4 }
  0x4f   :  { %4282 = shalt.err (!%p4279_p6)
}
  0x50   :  { %s4283_s1 = scalar_lea.vmem %s64_s8, 16  ;;  %s4287_s17 = scalar_lea.vmem %s64_s8, 32 }
  0x51   :  { %p4284_p7 = scmp.ne.s32.totalorder %s64_s8, %s4283_s1  ;;  %p4288_p8 = scmp.lt.s32.totalorder %s64_s8, %s64_s8 }
  0x52   :  { %p4289_p9 = scmp.lt.s32.totalorder %s4287_s17, %s4283_s1 }
  0x54   :  { %p4290_p10 = por %p4289_p9, %p4288_p8 }
  0x56   :  { %p4291_p11 = pnand %p4290_p10, %p4284_p7 }
  0x58   :  { %4294 = shalt.err (!%p4291_p11)
}
  0x59   :  { %66 = dma.hbm_to_vmem [thread:$0]  %s5131_s7, 16, %s64_s8, [#allocation11]  }
  0x5a   :  { %s4295_s26 = scalar_lea.hbm %s5133_s9, 512 }
  0x5b   :  { %p4296_p12 = scmp.ne.s32.totalorder %s5133_s9, %s4295_s26  ;;  %p4299_p13 = scmp.lt.u32.totalorder %s4295_s26, %s5133_s9 }
  0x5d   :  { %p4301_p0 = pnand %p4299_p13, %p4296_p12 }
  0x5f   :  { %4304 = shalt.err (!%p4301_p0)
}
  0x60   :  { %s4305_s29 = scalar_lea.vmem %s4527_s27, 512  ;;  %p4310_p2 = scmp.lt.s32.totalorder %s4527_s27, %s4527_s27 }
  0x61   :  { %p4306_p1 = scmp.ne.s32.totalorder %s4527_s27, %s4305_s29  ;;  %p4311_p3 = scmp.lt.s32.totalorder %s4305_s29, %s4305_s29 }
  0x63   :  { %p4312_p4 = por %p4311_p3, %p4310_p2 }
  0x65   :  { %p4313_p5 = pnand %p4312_p4, %p4306_p1 }
  0x67   :  { %4316 = shalt.err (!%p4313_p5)
}
  0x68   :  { %88 = dma.hbm_to_vmem [thread:$0]  %s5133_s9, 512, %s4527_s27, [#allocation14], %s4375_s11, %s4375_s11, %s4376_s30  }
  0x69   :  { %s4379_s16 = smov [#allocation18]   ;;  %s4317_s17 = scalar_lea.hbm %s5136_s12, 16 }
  0x6a   :  { %s107_s18 = sshll.u32 %s4379_s16, 4  ;;  %p4318_p6 = scmp.ne.s32.totalorder %s5136_s12, %s4317_s17  ;;  %s108_s18 = int_to_ptr.vmem [resolvable:$true] %s107_s18 }
  0x6b   :  { %p4321_p7 = scmp.lt.u32.totalorder %s4317_s17, %s5136_s12 }
  0x6d   :  { %p4323_p8 = pnand %p4321_p7, %p4318_p6 }
  0x6f   :  { %4326 = shalt.err (!%p4323_p8)
}
  0x70   :  { %s4327_s26 = scalar_lea.vmem %s108_s18, 16  ;;  %s4331_s9 = scalar_lea.vmem %s108_s18, 32 }
  0x71   :  { %p4328_p9 = scmp.ne.s32.totalorder %s108_s18, %s4327_s26  ;;  %p4332_p10 = scmp.lt.s32.totalorder %s108_s18, %s108_s18 }
  0x72   :  { %p4333_p11 = scmp.lt.s32.totalorder %s4331_s9, %s4327_s26 }
  0x74   :  { %p4334_p12 = por %p4333_p11, %p4332_p10 }
  0x76   :  { %p4335_p13 = pnand %p4334_p12, %p4328_p9 }
  0x78   :  { %4338 = shalt.err (!%p4335_p13)
}
  0x79   :  { %110 = dma.hbm_to_vmem [thread:$0]  %s5136_s12, 16, %s108_s18, [#allocation17]  }
  0x7a   :  { %4361 = dma.done.wait [#allocation8], 256  }
  0x7b   :  { %4362 = vsyncadd [#allocation8], 4294967040 }
  0x7c   :  { %4363 = dma.done.wait [#allocation11], 32  }
  0x7d   :  { %4364 = vsyncadd [#allocation11], 4294967264 }
  0x7e   :  { %4365 = dma.done.wait [#allocation14], 528  }
  0x7f   :  { %4366 = vsyncadd [#allocation14], 4294966768 }
  0x80   :  { %4367 = dma.done.wait [#allocation17], 32  }
  0x81   :  { %4368 = vsyncadd [#allocation17], 4294967264  ;;  %v4380_v0 = vmov 0.0|0.0   ;;  %vm4381_vm0 = vmmov 0   ;;  %v4382_v1 = vmov 0.0   ;;  %vm153_vm1 = vcmask 130048  }
  0x82   :  { %3880 = vmatprep.subr.bf16.mxu1 %v4380_v0  ;;  %3605 = vmatprep.mubr.msk.f32.mxu1 %vm4381_vm0, %v4382_v1  ;;  %v144_v2 = vld [vmem:[#allocation7] sm:$0xff]  ;;  %v145_v3 = vld [vmem:[#allocation7 + $0x8] sm:$0xff]  ;;  %v293_v9 = vld [vmem:[%s5126_s2 + $0x10] sm:$0xff]  ;;  %s4383_s18 = smov 64   ;;  %s4385_s22 = smov 32   ;;  %vm302_vm2 = vcmask 261120  }
  0x83   :  { %v291_v4 = vld [vmem:[%s5126_s2] sm:$0xff]  ;;  %v3876_v5 = vpack.c.bf16 %v145_v3, %v144_v2  ;;  %v292_v6 = vld [vmem:[%s5126_s2 + $0x8] sm:$0xff]  ;;  %v294_v10 = vld [vmem:[%s5126_s2 + $0x18] sm:$0xff]  ;;  %s4387_s27 = smov 16  }
  0x84   :  { %v136_v7 = vld [vmem:[%s5124_s0] sm:$0xff]  ;;  %v4585_v8 = vpack.c.bf16 %v292_v6, %v291_v4  ;;  %v3372_v11 = vld [vmem:[#allocation10] ss:$0 sm:$0xff]  ;;  %v137_v12 = vld [vmem:[%s5124_s0 + $0x8] sm:$0xff]  ;;  %v4599_v13 = vpack.c.bf16 %v294_v10, %v293_v9 }
  0x85   :  { %3585 = vmatprep.mubr.msk.f32.mxu0 %vm153_vm1, %v136_v7  ;;  %3877 = vmatprep.subr.bf16.mxu0 %v3876_v5  ;;  %v4624_v20 = vld [vmem:[%s5127_s3] ss:$0 sm:$0xff]  ;;  %s4384_s3 = smov 96   ;;  %v138_v53 = vld [vmem:[%s5124_s0 + $0x10] sm:$0xff]  ;;  %v139_v54 = vld [vmem:[%s5124_s0 + $0x18] sm:$0xff] }
  0x86   :  { %383 = vrot.lane.b32.xlu0 %v3372_v11, %s4383_s18  ;;  %3882 = vmatpush3.bf16.msra.mxu1 %v4585_v8  ;;  %v140_v55 = vld [vmem:[%s5124_s0 + $0x20] sm:$0xff]  ;;  %v141_v56 = vld [vmem:[%s5124_s0 + $0x28] sm:$0xff]  ;;  %v142_v57 = vld [vmem:[%s5124_s0 + $0x30] sm:$0xff] }
  0x87   :  { %3879 = vmatpush3.bf16.msra.mxu0 %v3876_v5  ;;  %3883 = vmatprep.subr.bf16.mxu1 %v4380_v0  ;;  %v143_v58 = vld [vmem:[%s5124_s0 + $0x38] sm:$0xff] }
  0x88   :  { %3892 = vmatprep.subr.bf16.mxu0 %v4380_v0 }
  0x8a   :  { %3586 = vmatmul.mubr.msk.f32.vlgmr.msra.gmra.mrb[0].mxu0 %vm153_vm1, %v137_v12  ;;  %3885 = vmatpush3.bf16.msra.mxu1 %v4599_v13 }
  0x8b   :  { %3894 = vmatpush3.bf16.msra.mxu0 %v4585_v8  ;;  %3886 = vmatprep.subr.bf16.mxu1 %v4380_v0 }
  0x8c   :  { %3895 = vmatprep.subr.bf16.mxu0 %v4380_v0  ;;  %3588 = vmatprep.mubr.msk.f32.mxu0 %vm153_vm1, %v138_v53 }
  0x8d   :  { %3606 = vmatmul.mubr.f32.vlgmr.msra.gmra.mrb[0].mxu1 %v4382_v1 }
  0x8e   :  { %3888 = vmatpush3.bf16.msra.mxu1 %v4585_v8  ;;  %3616 = vmatprep.mubr.msk.f32.mxu1 %vm4381_vm0, %v4382_v1 }
  0x8f   :  { %3889 = vmatprep.subr.bf16.mxu1 %v4380_v0  ;;  %3897 = vmatpush3.bf16.msra.mxu0 %v4599_v13 }
  0x90   :  { %3904 = vmatprep.subr.bf16.mxu0 %v4380_v0  ;;  %3589 = vmatmul.mubr.msk.f32.gmra.mrb[2].mxu0 %vm153_vm1, %v139_v54 }
  0x91   :  { %3591 = vmatprep.mubr.msk.f32.mxu0 %vm153_vm1, %v140_v55 }
  0x92   :  { %3891 = vmatpush3.bf16.msra.mxu1 %v4599_v13 }
  0x93   :  { %3898 = vmatprep.subr.bf16.mxu1 %v4380_v0 }
  0x94   :  { %3592 = vmatmul.mubr.msk.f32.gmra.mrb[4].mxu0 %vm153_vm1, %v141_v56 }
  0x95   :  { %3594 = vmatprep.mubr.msk.f32.mxu0 %vm153_vm1, %v142_v57 }
  0x98   :  { %3595 = vmatmul.mubr.msk.f32.gmra.mrb[6].mxu0 %vm153_vm1, %v143_v58 }
  0x99   :  { %3627 = vmatprep.mubr.msk.f32.mxu0 %vm4381_vm0, %v4382_v1 }
  0xf8   :  { %v4617_v16 = vpop.permute.xlu0 %383 }
 0x15d   :  { %v3587_v14 = vpop.f32.mrb[0].mxu0 }
 0x15e   :  { %v244_v15 = vpop.f32.mrb[1].mxu0  ;;  %v250_v41 = vadd.f32 %v3587_v14, %v4624_v20 }
 0x15f   :  { %v245_v21 = vadd.f32 %v4624_v20, %v244_v15 }
 0x160   :  { %v372_v17 = vpop.f32.mrb[0].mxu1 }
 0x161   :  { %v386_v18 = vadd.f32 %v4617_v16, %v372_v17  ;;  %v3607_v19 = vpop.f32.mrb[1].mxu1  ;;  %v376_v22 = vadd.f32 %v372_v17, %v245_v21 }
 0x163   :  { %388 = vrot.lane.b32.xlu0 %v386_v18, %s4383_s18  ;;  %v3373_v23 = vmul.f32 -1.442695, %v376_v22  ;;  %v3590_v63 = vpop.f32.mrb[2].mxu0 }
 0x164   :  { %v254_v2 = vpop.f32.mrb[3].mxu0 }
 0x165   :  { %4037 = vpow2.f32 %v3373_v23  ;;  %v255_v12 = vadd.f32 %v4624_v20, %v254_v2 }
 0x167   :  { %v4672_v3 = vpop.f32.mrb[4].mxu0 }
 0x168   :  { %v4674_v4 = vpop.f32.mrb[5].mxu0 }
 0x169   :  { %v265_v55 = vadd.f32 %v4624_v20, %v4674_v4 }
 0x16b   :  { %v4676_v5 = vpop.f32.mrb[6].mxu0 }
 0x16c   :  { %v4678_v6 = vpop.f32.mrb[7].mxu0 }
 0x16f   :  { %v4038_v24 = vpop.eup %4037 }
 0x170   :  { %v380_v25 = vadd.f32 1.0, %v4038_v24 }
 0x172   :  { %4039 = vrcp.f32 %v380_v25 }
 0x17c   :  { %v4040_v26 = vpop.eup %4039 }
 0x1d5   :  { %v389_v27 = vpop.permute.xlu0 %388 }
 0x1d6   :  { %v391_v28 = vmul.f32 %v4040_v26, %v389_v27 }
 0x1d8   :  { %393 = vrot.lane.b32.xlu1 %v391_v28, %s4383_s18 }
 0x24a   :  { %v394_v29 = vpop.permute.xlu1 %393 }
 0x24b   :  { %v396_v30 = vadd.f32 %v394_v29, %v245_v21 }
 0x24d   :  { %4041 = vtanh.f32 %v396_v30 }
 0x257   :  { %v4042_v31 = vpop.eup %4041 }
 0x258   :  { %v398_v32 = vsub.f32 0.0, %v4042_v31 }
 0x25a   :  { %400 = vrot.lane.b32.xlu1 %v398_v32, %s4384_s3 }
 0x2cc   :  { %v401_v33 = vpop.permute.xlu1 %400 }
 0x2cd   :  { %v403_v34 = vmul.f32 %v4040_v26, %v401_v33 }
 0x2cf   :  { %405 = vrot.lane.b32.xlu0 %v403_v34, %s4385_s22 }
 0x341   :  { %v406_v35 = vpop.permute.xlu0 %405 }
 0x342   :  { %v408_v36 = vadd.f32 %v4042_v31, %v406_v35  ;;  %v260_v35 = vadd.f32 %v3590_v63, %v4624_v20 }
 0x344   :  { %410 = vrot.lane.b32.xlu1 %v408_v36, %s4383_s18 }
 0x3b6   :  { %v411_v37 = vpop.permute.xlu1 %410 }
 0x3b7   :  { %413 = vst.msk [vmem:[#allocation5] sm:$0xff] %vm302_vm2, %v411_v37  ;;  %3617 = vmatmul.mubr.msk.f32.vlgmr.msra.gmra.mrb[2].mxu1 %vm302_vm2, %v411_v37 }
 0x3b8   :  { %3900 = vmatpush3.bf16.msra.mxu1 %v4585_v8  ;;  %3638 = vmatprep.mubr.msk.f32.mxu1 %vm4381_vm0, %v4382_v1 }
 0x3b9   :  { %3901 = vmatprep.subr.bf16.mxu1 %v4380_v0 }
 0x3bc   :  { %3903 = vmatpush3.bf16.msra.mxu1 %v4599_v13 }
 0x3bd   :  { %3910 = vmatprep.subr.bf16.mxu1 %v4380_v0 }
 0x48a   :  { %v484_v38 = vpop.f32.mrb[2].mxu1 }
 0x48b   :  { %v495_v39 = vadd.f32 %v484_v38, %v4617_v16  ;;  %v3618_v40 = vpop.f32.mrb[3].mxu1  ;;  %v488_v42 = vadd.f32 %v484_v38, %v250_v41 }
 0x48d   :  { %497 = vrot.lane.b32.xlu0 %v495_v39, %s4383_s18  ;;  %v3375_v43 = vmul.f32 -1.442695, %v488_v42 }
 0x48f   :  { %4043 = vpow2.f32 %v3375_v43 }
 0x499   :  { %v4044_v44 = vpop.eup %4043 }
 0x49a   :  { %v492_v45 = vadd.f32 1.0, %v4044_v44 }
 0x49c   :  { %4045 = vrcp.f32 %v492_v45 }
 0x4a6   :  { %v4046_v46 = vpop.eup %4045 }
 0x4ff   :  { %v498_v47 = vpop.permute.xlu0 %497 }
 0x500   :  { %v500_v48 = vmul.f32 %v4046_v46, %v498_v47 }
 0x502   :  { %502 = vrot.lane.b32.xlu1 %v500_v48, %s4383_s18 }
 0x574   :  { %v503_v49 = vpop.permute.xlu1 %502 }
 0x575   :  { %v505_v50 = vadd.f32 %v503_v49, %v250_v41 }
 0x577   :  { %4047 = vtanh.f32 %v505_v50 }
 0x581   :  { %v4048_v51 = vpop.eup %4047 }
 0x582   :  { %v507_v52 = vsub.f32 %v408_v36, %v4048_v51 }
 0x584   :  { %509 = vrot.lane.b32.xlu0 %v507_v52, %s4384_s3 }
 0x5f6   :  { %v510_v59 = vpop.permute.xlu0 %509 }
 0x5f7   :  { %v512_v60 = vmul.f32 %v4046_v46, %v510_v59 }
 0x5f9   :  { %514 = vrot.lane.b32.xlu1 %v512_v60, %s4385_s22 }
 0x66b   :  { %v515_v61 = vpop.permute.xlu1 %514 }
 0x66c   :  { %v517_v62 = vadd.f32 %v4048_v51, %v515_v61 }
 0x66e   :  { %519 = vrot.lane.b32.xlu0 %v517_v62, %s4383_s18 }
 0x6e0   :  { %v520_v7 = vpop.permute.xlu0 %519 }
 0x6e1   :  { %523 = vst.msk [vmem:[#allocation5 + $0x8] sm:$0xff] %vm302_vm2, %v520_v7  ;;  %3628 = vmatmul.mubr.msk.f32.vlgmr.msra.gmra.mrb[8].mxu0 %vm302_vm2, %v520_v7 }
 0x6e2   :  { %3906 = vmatpush3.bf16.msra.mxu0 %v4585_v8  ;;  %3649 = vmatprep.mubr.msk.f32.mxu0 %vm4381_vm0, %v4382_v1 }
 0x6e3   :  { %3907 = vmatprep.subr.bf16.mxu0 %v4380_v0 }
 0x6e6   :  { %3909 = vmatpush3.bf16.msra.mxu0 %v4599_v13 }
 0x6e7   :  { %3916 = vmatprep.subr.bf16.mxu0 %v4380_v0 }
 0x7b4   :  { %v594_v9 = vpop.f32.mrb[8].mxu0 }
 0x7b5   :  { %v605_v10 = vadd.f32 %v594_v9, %v4617_v16  ;;  %v3629_v11 = vpop.f32.mrb[9].mxu0  ;;  %v598_v14 = vadd.f32 %v594_v9, %v255_v12 }
 0x7b7   :  { %607 = vrot.lane.b32.xlu1 %v605_v10, %s4383_s18  ;;  %v3377_v15 = vmul.f32 -1.442695, %v598_v14 }
 0x7b9   :  { %4049 = vpow2.f32 %v3377_v15 }
 0x7c3   :  { %v4050_v17 = vpop.eup %4049 }
 0x7c4   :  { %v602_v18 = vadd.f32 1.0, %v4050_v17 }
 0x7c6   :  { %4051 = vrcp.f32 %v602_v18 }
 0x7d0   :  { %v4052_v19 = vpop.eup %4051 }
 0x829   :  { %v608_v21 = vpop.permute.xlu1 %607 }
 0x82a   :  { %v610_v22 = vmul.f32 %v4052_v19, %v608_v21 }
 0x82c   :  { %612 = vrot.lane.b32.xlu0 %v610_v22, %s4383_s18 }
 0x89e   :  { %v613_v23 = vpop.permute.xlu0 %612 }
 0x89f   :  { %v615_v24 = vadd.f32 %v613_v23, %v255_v12 }
 0x8a1   :  { %4053 = vtanh.f32 %v615_v24 }
 0x8ab   :  { %v4054_v25 = vpop.eup %4053 }
 0x8ac   :  { %v617_v26 = vsub.f32 %v517_v62, %v4054_v25 }
 0x8ae   :  { %619 = vrot.lane.b32.xlu1 %v617_v26, %s4384_s3 }
 0x920   :  { %v620_v27 = vpop.permute.xlu1 %619 }
 0x921   :  { %v622_v28 = vmul.f32 %v4052_v19, %v620_v27  ;;  %v270_v19 = vadd.f32 %v4672_v3, %v4624_v20  ;;  %v1192_v3 = vld [vmem:[%s5129_s5] sm:$0xff] }
 0x923   :  { %624 = vrot.lane.b32.xlu0 %v622_v28, %s4385_s22 }
 0x995   :  { %v625_v29 = vpop.permute.xlu0 %624 }
 0x996   :  { %v627_v30 = vadd.f32 %v4054_v25, %v625_v29 }
 0x998   :  { %629 = vrot.lane.b32.xlu1 %v627_v30, %s4383_s18 }
 0xa0a   :  { %v630_v31 = vpop.permute.xlu1 %629 }
 0xa0b   :  { %633 = vst.msk [vmem:[#allocation5 + $0x10] sm:$0xff] %vm302_vm2, %v630_v31  ;;  %3639 = vmatmul.mubr.msk.f32.vlgmr.msra.gmra.mrb[4].mxu1 %vm302_vm2, %v630_v31 }
 0xa0c   :  { %3912 = vmatpush3.bf16.msra.mxu1 %v4585_v8  ;;  %3660 = vmatprep.mubr.msk.f32.mxu1 %vm4381_vm0, %v4382_v1 }
 0xa0d   :  { %3913 = vmatprep.subr.bf16.mxu1 %v4380_v0 }
 0xa10   :  { %3915 = vmatpush3.bf16.msra.mxu1 %v4599_v13 }
 0xa11   :  { %3922 = vmatprep.subr.bf16.mxu1 %v4380_v0 }
 0xade   :  { %v704_v32 = vpop.f32.mrb[4].mxu1 }
 0xadf   :  { %v715_v33 = vadd.f32 %v704_v32, %v4617_v16  ;;  %v3640_v34 = vpop.f32.mrb[5].mxu1  ;;  %v708_v36 = vadd.f32 %v704_v32, %v260_v35 }
 0xae1   :  { %717 = vrot.lane.b32.xlu0 %v715_v33, %s4383_s18  ;;  %v3379_v37 = vmul.f32 -1.442695, %v708_v36  ;;  %v1194_v36 = vld [vmem:[%s5129_s5 + $0x10] sm:$0xff] }
 0xae3   :  { %4055 = vpow2.f32 %v3379_v37  ;;  %v1195_v37 = vld [vmem:[%s5129_s5 + $0x18] sm:$0xff] }
 0xaed   :  { %v4056_v38 = vpop.eup %4055 }
 0xaee   :  { %v712_v39 = vadd.f32 1.0, %v4056_v38  ;;  %v3932_v38 = vpack.c.bf16 %v1195_v37, %v1194_v36 }
 0xaf0   :  { %4057 = vrcp.f32 %v712_v39 }
 0xafa   :  { %v4058_v40 = vpop.eup %4057 }
 0xb53   :  { %v718_v41 = vpop.permute.xlu0 %717 }
 0xb54   :  { %v720_v42 = vmul.f32 %v4058_v40, %v718_v41  ;;  %v1185_v41 = vld [vmem:[#allocation5 + $0x8] sm:$0xff] }
 0xb56   :  { %722 = vrot.lane.b32.xlu1 %v720_v42, %s4383_s18  ;;  %v1186_v42 = vld [vmem:[#allocation5 + $0x10] sm:$0xff] }
 0xbc8   :  { %v723_v43 = vpop.permute.xlu1 %722 }
 0xbc9   :  { %v725_v44 = vadd.f32 %v723_v43, %v260_v35 }
 0xbcb   :  { %4059 = vtanh.f32 %v725_v44 }
 0xbd5   :  { %v4060_v45 = vpop.eup %4059 }
 0xbd6   :  { %v727_v46 = vsub.f32 %v627_v30, %v4060_v45  ;;  %v1193_v30 = vld [vmem:[%s5129_s5 + $0x8] sm:$0xff] }
 0xbd7   :  { %v3928_v31 = vpack.c.bf16 %v1193_v30, %v1192_v3 }
 0xbd8   :  { %729 = vrot.lane.b32.xlu0 %v727_v46, %s4384_s3 }
 0xc4a   :  { %v730_v47 = vpop.permute.xlu0 %729 }
 0xc4b   :  { %v732_v48 = vmul.f32 %v4058_v40, %v730_v47  ;;  %v1184_v40 = vld [vmem:[#allocation5] sm:$0xff] }
 0xc4d   :  { %734 = vrot.lane.b32.xlu1 %v732_v48, %s4385_s22 }
 0xcbf   :  { %v735_v49 = vpop.permute.xlu1 %734 }
 0xcc0   :  { %v737_v50 = vadd.f32 %v4060_v45, %v735_v49 }
 0xcc2   :  { %739 = vrot.lane.b32.xlu0 %v737_v50, %s4383_s18 }
 0xd34   :  { %v740_v51 = vpop.permute.xlu0 %739 }
 0xd35   :  { %743 = vst.msk [vmem:[#allocation5 + $0x18] sm:$0xff] %vm302_vm2, %v740_v51  ;;  %3650 = vmatmul.mubr.msk.f32.vlgmr.msra.gmra.mrb[10].mxu0 %vm302_vm2, %v740_v51 }
 0xd36   :  { %3918 = vmatpush3.bf16.msra.mxu0 %v4585_v8  ;;  %3671 = vmatprep.mubr.msk.f32.mxu0 %vm4381_vm0, %v4382_v1 }
 0xd37   :  { %3919 = vmatprep.subr.bf16.mxu0 %v4380_v0 }
 0xd3a   :  { %3921 = vmatpush3.bf16.msra.mxu0 %v4599_v13 }
 0xd3b   :  { %3929 = vmatprep.subr.bf16.mxu0 %v3928_v31 }
 0xd3c   :  { %v1187_v43 = vld [vmem:[#allocation5 + $0x18] sm:$0xff] }
 0xe08   :  { %v814_v52 = vpop.f32.mrb[10].mxu0 }
 0xe09   :  { %v825_v53 = vadd.f32 %v814_v52, %v4617_v16  ;;  %v3651_v54 = vpop.f32.mrb[11].mxu0  ;;  %v818_v56 = vadd.f32 %v814_v52, %v265_v55 }
 0xe0b   :  { %827 = vrot.lane.b32.xlu1 %v825_v53, %s4383_s18  ;;  %v3381_v57 = vmul.f32 -1.442695, %v818_v56 }
 0xe0d   :  { %4061 = vpow2.f32 %v3381_v57 }
 0xe17   :  { %v4062_v58 = vpop.eup %4061 }
 0xe18   :  { %v822_v59 = vadd.f32 1.0, %v4062_v58 }
 0xe1a   :  { %4063 = vrcp.f32 %v822_v59 }
 0xe24   :  { %v4064_v60 = vpop.eup %4063 }
 0xe7d   :  { %v828_v61 = vpop.permute.xlu1 %827 }
 0xe7e   :  { %v830_v62 = vmul.f32 %v4064_v60, %v828_v61 }
 0xe80   :  { %832 = vrot.lane.b32.xlu0 %v830_v62, %s4383_s18 }
 0xef2   :  { %v833_v63 = vpop.permute.xlu0 %832 }
 0xef3   :  { %v835_v2 = vadd.f32 %v833_v63, %v265_v55  ;;  %v275_v55 = vadd.f32 %v4624_v20, %v4678_v6 }
 0xef5   :  { %4065 = vtanh.f32 %v835_v2 }
 0xeff   :  { %v4066_v7 = vpop.eup %4065 }
 0xf00   :  { %v837_v9 = vsub.f32 %v737_v50, %v4066_v7 }
 0xf02   :  { %839 = vrot.lane.b32.xlu1 %v837_v9, %s4384_s3 }
 0xf74   :  { %v840_v10 = vpop.permute.xlu1 %839 }
 0xf75   :  { %v842_v4 = vmul.f32 %v4064_v60, %v840_v10 }
 0xf77   :  { %844 = vrot.lane.b32.xlu0 %v842_v4, %s4385_s22  ;;  %v1340_v4 = vld [vmem:[%s5130_s6] sm:$0xff] }
 0xfe9   :  { %v845_v11 = vpop.permute.xlu0 %844 }
 0xfea   :  { %v847_v12 = vadd.f32 %v4066_v7, %v845_v11  ;;  %v1341_v11 = vld [vmem:[%s5130_s6 + $0x8] sm:$0xff] }
 0xfec   :  { %849 = vrot.lane.b32.xlu1 %v847_v12, %s4383_s18 }
0x105e   :  { %v850_v14 = vpop.permute.xlu1 %849 }
0x105f   :  { %853 = vst.msk [vmem:[#allocation5 + $0x20] sm:$0xff] %vm302_vm2, %v850_v14  ;;  %3661 = vmatmul.mubr.msk.f32.vlgmr.msra.gmra.mrb[6].mxu1 %vm302_vm2, %v850_v14  ;;  %v1342_v14 = vld [vmem:[%s5130_s6 + $0x10] sm:$0xff] }
0x1060   :  { %3924 = vmatpush3.bf16.msra.mxu1 %v4585_v8  ;;  %3682 = vmatprep.mubr.msk.f32.mxu1 %vm4381_vm0, %v4382_v1 }
0x1061   :  { %3925 = vmatprep.subr.bf16.mxu1 %v4380_v0 }
0x1064   :  { %3927 = vmatpush3.bf16.msra.mxu1 %v4599_v13 }
0x1065   :  { %3936 = vmatprep.subr.bf16.mxu1 %v4380_v0 }
0x1066   :  { %v1188_v44 = vld [vmem:[#allocation5 + $0x20] sm:$0xff] }
0x1132   :  { %v924_v15 = vpop.f32.mrb[6].mxu1 }
0x1133   :  { %v935_v17 = vadd.f32 %v924_v15, %v4617_v16  ;;  %v3662_v18 = vpop.f32.mrb[7].mxu1  ;;  %v928_v21 = vadd.f32 %v924_v15, %v270_v19  ;;  %v1343_v15 = vld [vmem:[%s5130_s6 + $0x18] sm:$0xff] }
0x1134   :  { %v3397_v18 = vld [vmem:[#allocation13] ss:$0 sm:$0xff] }
0x1135   :  { %937 = vrot.lane.b32.xlu0 %v935_v17, %s4383_s18  ;;  %v3383_v8 = vmul.f32 -1.442695, %v928_v21  ;;  %v4797_v17 = vpack.c.bf16 %v1343_v15, %v1342_v14 }
0x1137   :  { %4067 = vpow2.f32 %v3383_v8 }
0x1141   :  { %v4068_v22 = vpop.eup %4067 }
0x1142   :  { %v932_v23 = vadd.f32 1.0, %v4068_v22 }
0x1144   :  { %4069 = vrcp.f32 %v932_v23 }
0x114e   :  { %v4070_v24 = vpop.eup %4069 }
0x11a7   :  { %v938_v25 = vpop.permute.xlu0 %937 }
0x11a8   :  { %v940_v13 = vmul.f32 %v4070_v24, %v938_v25 }
0x11aa   :  { %942 = vrot.lane.b32.xlu1 %v940_v13, %s4383_s18 }
0x121c   :  { %v943_v26 = vpop.permute.xlu1 %942 }
0x121d   :  { %v945_v27 = vadd.f32 %v943_v26, %v270_v19 }
0x121f   :  { %4071 = vtanh.f32 %v945_v27 }
0x1229   :  { %v4072_v28 = vpop.eup %4071 }
0x122a   :  { %v947_v29 = vsub.f32 %v847_v12, %v4072_v28  ;;  %v4787_v12 = vpack.c.bf16 %v1341_v11, %v1340_v4 }
0x122c   :  { %949 = vrot.lane.b32.xlu0 %v947_v29, %s4384_s3 }
0x129e   :  { %v950_v32 = vpop.permute.xlu0 %949 }
0x129f   :  { %v952_v33 = vmul.f32 %v4070_v24, %v950_v32 }
0x12a1   :  { %954 = vrot.lane.b32.xlu1 %v952_v33, %s4385_s22 }
0x1313   :  { %v955_v34 = vpop.permute.xlu1 %954 }
0x1314   :  { %v957_v35 = vadd.f32 %v4072_v28, %v955_v34  ;;  %v4826_v28 = vld [vmem:[#allocation12] ss:$0 sm:$0xff] }
0x1316   :  { %959 = vrot.lane.b32.xlu0 %v957_v35, %s4383_s18 }
0x1388   :  { %v960_v39 = vpop.permute.xlu0 %959 }
0x1389   :  { %963 = vst.msk [vmem:[#allocation5 + $0x28] sm:$0xff] %vm302_vm2, %v960_v39  ;;  %3672 = vmatmul.mubr.msk.f32.vlgmr.msra.gmra.mrb[12].mxu0 %vm302_vm2, %v960_v39 }
0x138a   :  { %3931 = vmatpush3.bf16.msra.mxu0 %v3928_v31  ;;  %3693 = vmatprep.mubr.msk.f32.mxu0 %vm302_vm2, %v1184_v40 }
0x138b   :  { %3933 = vmatprep.subr.bf16.mxu0 %v3932_v38 }
0x138e   :  { %3935 = vmatpush3.bf16.msra.mxu0 %v3932_v38 }
0x138f   :  { %3948 = vmatprep.subr.bf16.mxu0 %v4380_v0 }
0x1390   :  { %v1189_v45 = vld [vmem:[#allocation5 + $0x28] sm:$0xff] }
0x1391   :  { %3694 = vmatmul.mubr.msk.f32.vlgmr.msra.gmra.mrb[14].mxu0 %vm302_vm2, %v1185_v41 }
0x1392   :  { %3696 = vmatprep.mubr.msk.f32.mxu0 %vm302_vm2, %v1186_v42  ;;  %3950 = vmatpush3.bf16.msra.mxu0 %v4787_v12 }
0x1393   :  { %3951 = vmatprep.subr.bf16.mxu0 %v4380_v0 }
0x1395   :  { %3697 = vmatmul.mubr.msk.f32.gmra.mrb[16].mxu0 %vm302_vm2, %v1187_v43  ;;  %v280_v43 = vadd.f32 %v4676_v5, %v4624_v20 }
0x1396   :  { %3699 = vmatprep.mubr.msk.f32.mxu0 %vm302_vm2, %v1188_v44  ;;  %3953 = vmatpush3.bf16.msra.mxu0 %v4797_v17 }
0x1397   :  { %3960 = vmatprep.subr.bf16.mxu0 %v4380_v0 }
0x1399   :  { %3700 = vmatmul.mubr.msk.f32.gmra.mrb[18].mxu0 %vm302_vm2, %v1189_v45 }
0x145c   :  { %v1034_v46 = vpop.f32.mrb[12].mxu0 }
0x145d   :  { %v1045_v47 = vadd.f32 %v1034_v46, %v4617_v16  ;;  %v3673_v48 = vpop.f32.mrb[13].mxu0  ;;  %v1038_v56 = vadd.f32 %v1034_v46, %v275_v55 }
0x145f   :  { %1047 = vrot.lane.b32.xlu1 %v1045_v47, %s4383_s18  ;;  %v3385_v57 = vmul.f32 -1.442695, %v1038_v56 }
0x1461   :  { %4073 = vpow2.f32 %v3385_v57 }
0x1464   :  { %v4764_v49 = vpop.f32.mrb[14].mxu0 }
0x1465   :  { %v4766_v50 = vpop.f32.mrb[15].mxu0 }
0x1466   :  { %v1294_v29 = vadd.f32 %v4826_v28, %v4766_v50 }
0x1468   :  { %v4768_v51 = vpop.f32.mrb[16].mxu0 }
0x1469   :  { %v4770_v52 = vpop.f32.mrb[17].mxu0 }
0x146b   :  { %v4074_v58 = vpop.eup %4073 }
0x146c   :  { %v4772_v53 = vpop.f32.mrb[18].mxu0  ;;  %v1042_v59 = vadd.f32 1.0, %v4074_v58 }
0x146d   :  { %v4774_v54 = vpop.f32.mrb[19].mxu0 }
0x146e   :  { %4075 = vrcp.f32 %v1042_v59 }
0x1478   :  { %v4076_v60 = vpop.eup %4075 }
0x14d1   :  { %v1048_v61 = vpop.permute.xlu1 %1047 }
0x14d2   :  { %v1050_v62 = vmul.f32 %v4076_v60, %v1048_v61 }
0x14d4   :  { %1052 = vrot.lane.b32.xlu0 %v1050_v62, %s4383_s18 }
0x1546   :  { %v1053_v63 = vpop.permute.xlu0 %1052 }
0x1547   :  { %v1055_v2 = vadd.f32 %v1053_v63, %v275_v55 }
0x1549   :  { %4077 = vtanh.f32 %v1055_v2 }
0x1553   :  { %v4078_v7 = vpop.eup %4077 }
0x1554   :  { %v1057_v9 = vsub.f32 %v957_v35, %v4078_v7 }
0x1556   :  { %1059 = vrot.lane.b32.xlu1 %v1057_v9, %s4384_s3 }
0x15c8   :  { %v1060_v10 = vpop.permute.xlu1 %1059 }
0x15c9   :  { %v1062_v6 = vmul.f32 %v4076_v60, %v1060_v10  ;;  %v1299_v10 = vadd.f32 %v4764_v49, %v4826_v28 }
0x15cb   :  { %1064 = vrot.lane.b32.xlu0 %v1062_v6, %s4385_s22 }
0x15cf   :  { %1428 = vrot.lane.b32.xlu0 %v3397_v18, %s4383_s18 }
0x163d   :  { %v1065_v19 = vpop.permute.xlu0 %1064 }
0x163e   :  { %v4802_v21 = vadd.f32 %v4078_v7, %v1065_v19 }
0x1640   :  { %1069 = vrot.lane.b32.xlu1 %v4802_v21, %s4383_s18 }
0x1641   :  { %v4822_v25 = vpop.permute.xlu0 %1428 }
0x16b2   :  { %v1070_v8 = vpop.permute.xlu1 %1069 }
0x16b3   :  { %1073 = vst.msk [vmem:[#allocation5 + $0x30] sm:$0xff] %vm302_vm2, %v1070_v8  ;;  %3683 = vmatmul.mubr.msk.f32.vlgmr.msra.gmra.mrb[8].mxu1 %vm302_vm2, %v1070_v8 }
0x16b4   :  { %3938 = vmatpush3.bf16.msra.mxu1 %v4787_v12  ;;  %3713 = vmatprep.mubr.msk.f32.mxu1 %vm4381_vm0, %v4382_v1 }
0x16b5   :  { %3939 = vmatprep.subr.bf16.mxu1 %v4380_v0 }
0x16b8   :  { %3941 = vmatpush3.bf16.msra.mxu1 %v4797_v17 }
0x16b9   :  { %3942 = vmatprep.subr.bf16.mxu1 %v4380_v0 }
0x16ba   :  { %v1190_v22 = vld [vmem:[#allocation5 + $0x30] sm:$0xff] }
0x16bb   :  { %3714 = vmatmul.mubr.f32.vlgmr.msra.gmra.mrb[10].mxu1 %v4382_v1  ;;  %3702 = vmatprep.mubr.msk.f32.mxu0 %vm302_vm2, %v1190_v22 }
0x16bc   :  { %3944 = vmatpush3.bf16.msra.mxu1 %v4787_v12  ;;  %3724 = vmatprep.mubr.msk.f32.mxu1 %vm4381_vm0, %v4382_v1 }
0x16bd   :  { %3945 = vmatprep.subr.bf16.mxu1 %v4380_v0 }
0x16c0   :  { %3947 = vmatpush3.bf16.msra.mxu1 %v4797_v17 }
0x16c1   :  { %3954 = vmatprep.subr.bf16.mxu1 %v4380_v0 }
0x1786   :  { %v1144_v23 = vpop.f32.mrb[8].mxu1 }
0x1787   :  { %v3684_v24 = vpop.f32.mrb[9].mxu1  ;;  %v1155_v42 = vadd.f32 %v1144_v23, %v4617_v16  ;;  %v1148_v44 = vadd.f32 %v1144_v23, %v280_v43 }
0x1789   :  { %v3387_v45 = vmul.f32 -1.442695, %v1148_v44 }
0x178e   :  { %v1417_v13 = vpop.f32.mrb[10].mxu1 }
0x178f   :  { %v1431_v26 = vadd.f32 %v4822_v25, %v1417_v13  ;;  %v3715_v27 = vpop.f32.mrb[11].mxu1  ;;  %v1421_v3 = vadd.f32 %v1417_v13, %v1294_v29 }
0x1791   :  { %1433 = vrot.lane.b32.xlu1 %v1431_v26, %s4383_s18  ;;  %v3398_v30 = vmul.f32 -1.442695, %v1421_v3 }
0x1793   :  { %4079 = vpow2.f32 %v3398_v30 }
0x179d   :  { %v4080_v31 = vpop.eup %4079 }
0x179e   :  { %v1425_v32 = vadd.f32 1.0, %v4080_v31 }
0x17a0   :  { %4081 = vrcp.f32 %v1425_v32 }
0x17aa   :  { %v4082_v33 = vpop.eup %4081 }
0x1803   :  { %v1434_v34 = vpop.permute.xlu1 %1433 }
0x1804   :  { %v1436_v35 = vmul.f32 %v4082_v33, %v1434_v34 }
0x1806   :  { %1438 = vrot.lane.b32.xlu0 %v1436_v35, %s4383_s18  ;;  %v1304_v35 = vadd.f32 %v4826_v28, %v4770_v52 }
0x1878   :  { %v1439_v36 = vpop.permute.xlu0 %1438 }
0x1879   :  { %v1441_v37 = vadd.f32 %v1439_v36, %v1294_v29 }
0x187b   :  { %4083 = vtanh.f32 %v1441_v37 }
0x187c   :  { %4085 = vpow2.f32 %v3387_v45 }
0x1885   :  { %v4084_v38 = vpop.eup %4083 }
0x1886   :  { %v1443_v39 = vsub.f32 0.0, %v4084_v38  ;;  %v4086_v46 = vpop.eup %4085 }
0x1887   :  { %v1152_v47 = vadd.f32 1.0, %v4086_v46 }
0x1888   :  { %1445 = vrot.lane.b32.xlu1 %v1443_v39, %s4384_s3 }
0x1889   :  { %4087 = vrcp.f32 %v1152_v47 }
0x1893   :  { %v4088_v55 = vpop.eup %4087 }
0x18fa   :  { %v1446_v40 = vpop.permute.xlu1 %1445 }
0x18fb   :  { %v1448_v41 = vmul.f32 %v4082_v33, %v1446_v40 }
0x18fd   :  { %1450 = vrot.lane.b32.xlu0 %v1448_v41, %s4385_s22 }
0x1901   :  { %1157 = vrot.lane.b32.xlu0 %v1155_v42, %s4383_s18 }
0x196f   :  { %v1451_v48 = vpop.permute.xlu0 %1450 }
0x1970   :  { %v1453_v50 = vadd.f32 %v4084_v38, %v1451_v48 }
0x1972   :  { %1455 = vrot.lane.b32.xlu1 %v1453_v50, %s4383_s18 }
0x1973   :  { %v1158_v56 = vpop.permute.xlu0 %1157 }
0x1974   :  { %v1160_v57 = vmul.f32 %v4088_v55, %v1158_v56 }
0x1976   :  { %1162 = vrot.lane.b32.xlu0 %v1160_v57, %s4383_s18 }
0x19e4   :  { %v1456_v16 = vpop.permute.xlu1 %1455 }
0x19e5   :  { %1458 = vst.msk [vmem:[#allocation6] sm:$0xff] %vm302_vm2, %v1456_v16  ;;  %3725 = vmatmul.mubr.msk.f32.vlgmr.msra.gmra.mrb[12].mxu1 %vm302_vm2, %v1456_v16 }
0x19e6   :  { %3956 = vmatpush3.bf16.msra.mxu1 %v4787_v12  ;;  %3746 = vmatprep.mubr.msk.f32.mxu1 %vm4381_vm0, %v4382_v1 }
0x19e7   :  { %3957 = vmatprep.subr.bf16.mxu1 %v4380_v0 }
0x19e8   :  { %v1163_v20 = vpop.permute.xlu0 %1162 }
0x19e9   :  { %v1165_v5 = vadd.f32 %v1163_v20, %v280_v43  ;;  %v1309_v20 = vadd.f32 %v4768_v51, %v4826_v28 }
0x19ea   :  { %3959 = vmatpush3.bf16.msra.mxu1 %v4797_v17 }
0x19eb   :  { %4089 = vtanh.f32 %v1165_v5  ;;  %3966 = vmatprep.subr.bf16.mxu1 %v4380_v0 }
0x19f5   :  { %v4090_v58 = vpop.eup %4089 }
0x19f6   :  { %v1167_v59 = vsub.f32 %v4802_v21, %v4090_v58 }
0x19f8   :  { %1169 = vrot.lane.b32.xlu0 %v1167_v59, %s4384_s3 }
0x1a6a   :  { %v1170_v60 = vpop.permute.xlu0 %1169 }
0x1a6b   :  { %v1172_v61 = vmul.f32 %v4088_v55, %v1170_v60 }
0x1a6d   :  { %1174 = vrot.lane.b32.xlu0 %v1172_v61, %s4385_s22 }
0x1ab8   :  { %v1529_v62 = vpop.f32.mrb[12].mxu1 }
0x1ab9   :  { %v1540_v63 = vadd.f32 %v1529_v62, %v4822_v25  ;;  %v3726_v2 = vpop.f32.mrb[13].mxu1  ;;  %v1533_v6 = vadd.f32 %v1529_v62, %v1299_v10 }
0x1abb   :  { %1542 = vrot.lane.b32.xlu1 %v1540_v63, %s4383_s18  ;;  %v3400_v4 = vmul.f32 -1.442695, %v1533_v6 }
0x1abd   :  { %4091 = vpow2.f32 %v3400_v4 }
0x1ac7   :  { %v4092_v11 = vpop.eup %4091 }
0x1ac8   :  { %v1537_v14 = vadd.f32 1.0, %v4092_v11 }
0x1aca   :  { %4093 = vrcp.f32 %v1537_v14 }
0x1ad4   :  { %v4094_v15 = vpop.eup %4093 }
0x1adf   :  { %v1175_v7 = vpop.permute.xlu0 %1174 }
0x1ae0   :  { %v1177_v9 = vadd.f32 %v4090_v58, %v1175_v7 }
0x1ae2   :  { %1179 = vrot.lane.b32.xlu0 %v1177_v9, %s4383_s18 }
0x1b2d   :  { %v1543_v18 = vpop.permute.xlu1 %1542 }
0x1b2e   :  { %v1545_v19 = vmul.f32 %v4094_v15, %v1543_v18 }
0x1b30   :  { %1547 = vrot.lane.b32.xlu1 %v1545_v19, %s4383_s18 }
0x1b54   :  { %v1180_v21 = vpop.permute.xlu0 %1179 }
0x1b55   :  { %1183 = vst.msk [vmem:[#allocation5 + $0x38] sm:$0xff] %vm302_vm2, %v1180_v21  ;;  %v1314_v21 = vadd.f32 %v4826_v28, %v4774_v54 }
0x1b5c   :  { %v1191_v8 = vld [vmem:[#allocation5 + $0x38] sm:$0xff] }
0x1b5d   :  { %3703 = vmatmul.mubr.msk.f32.gmra.mrb[20].mxu0 %vm302_vm2, %v1191_v8 }
0x1b5e   :  { %3735 = vmatprep.mubr.msk.f32.mxu0 %vm4381_vm0, %v4382_v1 }
0x1ba2   :  { %v1548_v49 = vpop.permute.xlu1 %1547 }
0x1ba3   :  { %v1550_v22 = vadd.f32 %v1548_v49, %v1299_v10 }
0x1ba5   :  { %4095 = vtanh.f32 %v1550_v22 }
0x1baf   :  { %v4096_v23 = vpop.eup %4095 }
0x1bb0   :  { %v1552_v24 = vsub.f32 %v1453_v50, %v4096_v23 }
0x1bb2   :  { %1554 = vrot.lane.b32.xlu1 %v1552_v24, %s4384_s3 }
0x1c24   :  { %v1555_v13 = vpop.permute.xlu1 %1554 }
0x1c25   :  { %v1557_v26 = vmul.f32 %v4094_v15, %v1555_v13 }
0x1c27   :  { %1559 = vrot.lane.b32.xlu1 %v1557_v26, %s4385_s22 }
0x1c30   :  { %v4862_v27 = vpop.f32.mrb[20].mxu0 }
0x1c31   :  { %v4864_v29 = vpop.f32.mrb[21].mxu0 }
0x1c99   :  { %v1560_v3 = vpop.permute.xlu1 %1559 }
0x1c9a   :  { %v1562_v30 = vadd.f32 %v4096_v23, %v1560_v3 }
0x1c9c   :  { %1564 = vrot.lane.b32.xlu1 %v1562_v30, %s4383_s18 }
0x1d0e   :  { %v1565_v31 = vpop.permute.xlu1 %1564 }
0x1d0f   :  { %1568 = vst.msk [vmem:[#allocation6 + $0x8] sm:$0xff] %vm302_vm2, %v1565_v31  ;;  %3736 = vmatmul.mubr.msk.f32.vlgmr.msra.gmra.mrb[22].mxu0 %vm302_vm2, %v1565_v31 }
0x1d10   :  { %3962 = vmatpush3.bf16.msra.mxu0 %v4787_v12  ;;  %3757 = vmatprep.mubr.msk.f32.mxu0 %vm4381_vm0, %v4382_v1 }
0x1d11   :  { %3963 = vmatprep.subr.bf16.mxu0 %v4380_v0 }
0x1d14   :  { %3965 = vmatpush3.bf16.msra.mxu0 %v4797_v17 }
0x1d15   :  { %3972 = vmatprep.subr.bf16.mxu0 %v4380_v0 }
0x1de2   :  { %v1639_v32 = vpop.f32.mrb[22].mxu0 }
0x1de3   :  { %v1650_v33 = vadd.f32 %v1639_v32, %v4822_v25  ;;  %v3737_v34 = vpop.f32.mrb[23].mxu0  ;;  %v1643_v36 = vadd.f32 %v1639_v32, %v1304_v35 }
0x1de5   :  { %1652 = vrot.lane.b32.xlu0 %v1650_v33, %s4383_s18  ;;  %v3402_v37 = vmul.f32 -1.442695, %v1643_v36 }
0x1de7   :  { %4097 = vpow2.f32 %v3402_v37 }
0x1df1   :  { %v4098_v38 = vpop.eup %4097 }
0x1df2   :  { %v1647_v39 = vadd.f32 1.0, %v4098_v38 }
0x1df4   :  { %4099 = vrcp.f32 %v1647_v39 }
0x1dfe   :  { %v4100_v40 = vpop.eup %4099 }
0x1e57   :  { %v1653_v41 = vpop.permute.xlu0 %1652 }
0x1e58   :  { %v1655_v42 = vmul.f32 %v4100_v40, %v1653_v41 }
0x1e5a   :  { %1657 = vrot.lane.b32.xlu1 %v1655_v42, %s4383_s18 }
0x1ecc   :  { %v1658_v43 = vpop.permute.xlu1 %1657 }
0x1ecd   :  { %v1660_v44 = vadd.f32 %v1658_v43, %v1304_v35 }
0x1ecf   :  { %4101 = vtanh.f32 %v1660_v44 }
0x1ed9   :  { %v4102_v45 = vpop.eup %4101 }
0x1eda   :  { %v1662_v46 = vsub.f32 %v1562_v30, %v4102_v45 }
0x1edc   :  { %1664 = vrot.lane.b32.xlu0 %v1662_v46, %s4384_s3 }
0x1f4e   :  { %v1665_v47 = vpop.permute.xlu0 %1664 }
0x1f4f   :  { %v1667_v52 = vmul.f32 %v4100_v40, %v1665_v47  ;;  %v1319_v40 = vadd.f32 %v4772_v53, %v4826_v28  ;;  %v2238_v53 = vld [vmem:[#allocation15 + $0x8] sm:$0xff] }
0x1f51   :  { %1669 = vrot.lane.b32.xlu1 %v1667_v52, %s4385_s22 }
0x1fc3   :  { %v1670_v48 = vpop.permute.xlu1 %1669 }
0x1fc4   :  { %v1672_v50 = vadd.f32 %v4102_v45, %v1670_v48 }
0x1fc6   :  { %1674 = vrot.lane.b32.xlu0 %v1672_v50, %s4383_s18 }
0x2038   :  { %v1675_v55 = vpop.permute.xlu0 %1674 }
0x2039   :  { %1678 = vst.msk [vmem:[#allocation6 + $0x10] sm:$0xff] %vm302_vm2, %v1675_v55  ;;  %3747 = vmatmul.mubr.msk.f32.vlgmr.msra.gmra.mrb[14].mxu1 %vm302_vm2, %v1675_v55 }
0x203a   :  { %3968 = vmatpush3.bf16.msra.mxu1 %v4787_v12  ;;  %3768 = vmatprep.mubr.msk.f32.mxu1 %vm4381_vm0, %v4382_v1 }
0x203b   :  { %3969 = vmatprep.subr.bf16.mxu1 %v4380_v0 }
0x203e   :  { %3971 = vmatpush3.bf16.msra.mxu1 %v4797_v17 }
0x203f   :  { %3978 = vmatprep.subr.bf16.mxu1 %v4380_v0 }
0x210c   :  { %v1749_v56 = vpop.f32.mrb[14].mxu1 }
0x210d   :  { %v1760_v57 = vadd.f32 %v1749_v56, %v4822_v25  ;;  %v3748_v16 = vpop.f32.mrb[15].mxu1  ;;  %v1753_v5 = vadd.f32 %v1749_v56, %v1309_v20 }
0x210f   :  { %1762 = vrot.lane.b32.xlu1 %v1760_v57, %s4383_s18  ;;  %v3404_v58 = vmul.f32 -1.442695, %v1753_v5  ;;  %v2239_v5 = vld [vmem:[#allocation15 + $0x10] sm:$0xff] }
0x2111   :  { %4103 = vpow2.f32 %v3404_v58  ;;  %v2240_v58 = vld [vmem:[#allocation15 + $0x18] sm:$0xff] }
0x211b   :  { %v4104_v59 = vpop.eup %4103 }
0x211c   :  { %v1757_v60 = vadd.f32 1.0, %v4104_v59  ;;  %v3988_v59 = vpack.c.bf16 %v2240_v58, %v2239_v5 }
0x211e   :  { %4105 = vrcp.f32 %v1757_v60 }
0x2128   :  { %v4106_v61 = vpop.eup %4105 }
0x2181   :  { %v1763_v62 = vpop.permute.xlu1 %1762 }
0x2182   :  { %v1765_v63 = vmul.f32 %v4106_v61, %v1763_v62  ;;  %v2230_v62 = vld [vmem:[#allocation6 + $0x8] sm:$0xff] }
0x2184   :  { %1767 = vrot.lane.b32.xlu0 %v1765_v63, %s4383_s18  ;;  %v2231_v63 = vld [vmem:[#allocation6 + $0x10] sm:$0xff] }
0x21f6   :  { %v1768_v2 = vpop.permute.xlu0 %1767 }
0x21f7   :  { %v1770_v7 = vadd.f32 %v1768_v2, %v1309_v20 }
0x21f9   :  { %4107 = vtanh.f32 %v1770_v7 }
0x2203   :  { %v4108_v9 = vpop.eup %4107 }
0x2204   :  { %v1772_v10 = vsub.f32 %v1672_v50, %v4108_v9  ;;  %v2237_v50 = vld [vmem:[#allocation15] sm:$0xff] }
0x2205   :  { %v3984_v55 = vpack.c.bf16 %v2238_v53, %v2237_v50 }
0x2206   :  { %1774 = vrot.lane.b32.xlu1 %v1772_v10, %s4384_s3 }
0x2278   :  { %v1775_v6 = vpop.permute.xlu1 %1774 }
0x2279   :  { %v1777_v51 = vmul.f32 %v4106_v61, %v1775_v6  ;;  %v2229_v61 = vld [vmem:[#allocation6] sm:$0xff] }
0x227b   :  { %1779 = vrot.lane.b32.xlu0 %v1777_v51, %s4385_s22 }
0x22ed   :  { %v1780_v4 = vpop.permute.xlu0 %1779 }
0x22ee   :  { %v1782_v11 = vadd.f32 %v4108_v9, %v1780_v4 }
0x22f0   :  { %1784 = vrot.lane.b32.xlu1 %v1782_v11, %s4383_s18 }
0x2362   :  { %v1785_v14 = vpop.permute.xlu1 %1784 }
0x2363   :  { %1788 = vst.msk [vmem:[#allocation6 + $0x18] sm:$0xff] %vm302_vm2, %v1785_v14  ;;  %3758 = vmatmul.mubr.msk.f32.vlgmr.msra.gmra.mrb[24].mxu0 %vm302_vm2, %v1785_v14 }
0x2364   :  { %3974 = vmatpush3.bf16.msra.mxu0 %v4787_v12  ;;  %3779 = vmatprep.mubr.msk.f32.mxu0 %vm4381_vm0, %v4382_v1 }
0x2365   :  { %3975 = vmatprep.subr.bf16.mxu0 %v4380_v0 }
0x2368   :  { %3977 = vmatpush3.bf16.msra.mxu0 %v4797_v17 }
0x2369   :  { %3985 = vmatprep.subr.bf16.mxu0 %v3984_v55 }
0x236a   :  { %v2232_v2 = vld [vmem:[#allocation6 + $0x18] sm:$0xff] }
0x2436   :  { %v1859_v15 = vpop.f32.mrb[24].mxu0 }
0x2437   :  { %v1870_v18 = vadd.f32 %v1859_v15, %v4822_v25  ;;  %v3759_v19 = vpop.f32.mrb[25].mxu0  ;;  %v1863_v8 = vadd.f32 %v1859_v15, %v1314_v21 }
0x2439   :  { %1872 = vrot.lane.b32.xlu0 %v1870_v18, %s4383_s18  ;;  %v3406_v49 = vmul.f32 -1.442695, %v1863_v8 }
0x243b   :  { %4109 = vpow2.f32 %v3406_v49 }
0x2445   :  { %v4110_v22 = vpop.eup %4109 }
0x2446   :  { %v1867_v23 = vadd.f32 1.0, %v4110_v22 }
0x2448   :  { %4111 = vrcp.f32 %v1867_v23 }
0x2452   :  { %v4112_v24 = vpop.eup %4111 }
0x24ab   :  { %v1873_v13 = vpop.permute.xlu0 %1872 }
0x24ac   :  { %v1875_v26 = vmul.f32 %v4112_v24, %v1873_v13 }
0x24ae   :  { %1877 = vrot.lane.b32.xlu1 %v1875_v26, %s4383_s18 }
0x2520   :  { %v1878_v3 = vpop.permute.xlu1 %1877 }
0x2521   :  { %v1880_v30 = vadd.f32 %v1878_v3, %v1314_v21  ;;  %v1324_v21 = vadd.f32 %v4826_v28, %v4864_v29 }
0x2523   :  { %4113 = vtanh.f32 %v1880_v30 }
0x252d   :  { %v4114_v31 = vpop.eup %4113 }
0x252e   :  { %v1882_v32 = vsub.f32 %v1782_v11, %v4114_v31 }
0x2530   :  { %1884 = vrot.lane.b32.xlu0 %v1882_v32, %s4384_s3 }
0x25a2   :  { %v1885_v33 = vpop.permute.xlu0 %1884 }
0x25a3   :  { %v1887_v54 = vmul.f32 %v4112_v24, %v1885_v33 }
0x25a5   :  { %1889 = vrot.lane.b32.xlu1 %v1887_v54, %s4385_s22  ;;  %v2385_v54 = vld [vmem:[%s5134_s10] sm:$0xff] }
0x2617   :  { %v1890_v34 = vpop.permute.xlu1 %1889 }
0x2618   :  { %v1892_v35 = vadd.f32 %v4114_v31, %v1890_v34  ;;  %v2386_v34 = vld [vmem:[%s5134_s10 + $0x8] sm:$0xff]  ;;  %s4386_s10 = smov 112  }
0x261a   :  { %1894 = vrot.lane.b32.xlu0 %v1892_v35, %s4383_s18 }
0x268c   :  { %v1895_v36 = vpop.permute.xlu0 %1894 }
0x268d   :  { %1898 = vst.msk [vmem:[#allocation6 + $0x20] sm:$0xff] %vm302_vm2, %v1895_v36  ;;  %3769 = vmatmul.mubr.msk.f32.vlgmr.msra.gmra.mrb[16].mxu1 %vm302_vm2, %v1895_v36  ;;  %v3422_v36 = vld [vmem:[#allocation18] ss:$0 sm:$0xff] }
0x268e   :  { %3980 = vmatpush3.bf16.msra.mxu1 %v4787_v12  ;;  %3790 = vmatprep.mubr.msk.f32.mxu1 %vm4381_vm0, %v4382_v1 }
0x268f   :  { %3981 = vmatprep.subr.bf16.mxu1 %v4380_v0 }
0x2692   :  { %3983 = vmatpush3.bf16.msra.mxu1 %v4797_v17 }
0x2693   :  { %3992 = vmatprep.subr.bf16.mxu1 %v4380_v0 }
0x2694   :  { %v2233_v7 = vld [vmem:[#allocation6 + $0x20] sm:$0xff] }
0x2760   :  { %v1969_v37 = vpop.f32.mrb[16].mxu1 }
0x2761   :  { %v1980_v38 = vadd.f32 %v1969_v37, %v4822_v25  ;;  %v3770_v39 = vpop.f32.mrb[17].mxu1  ;;  %v1973_v41 = vadd.f32 %v1969_v37, %v1319_v40 }
0x2763   :  { %1982 = vrot.lane.b32.xlu1 %v1980_v38, %s4383_s18  ;;  %v3408_v12 = vmul.f32 -1.442695, %v1973_v41 }
0x2765   :  { %4115 = vpow2.f32 %v3408_v12 }
0x276f   :  { %v4116_v42 = vpop.eup %4115 }
0x2770   :  { %v1977_v43 = vadd.f32 1.0, %v4116_v42 }
0x2772   :  { %4117 = vrcp.f32 %v1977_v43 }
0x277c   :  { %v4118_v44 = vpop.eup %4117 }
0x27d5   :  { %v1983_v45 = vpop.permute.xlu1 %1982 }
0x27d6   :  { %v1985_v17 = vmul.f32 %v4118_v44, %v1983_v45 }
0x27d8   :  { %1987 = vrot.lane.b32.xlu0 %v1985_v17, %s4383_s18  ;;  %v4989_v17 = vld [vmem:[#allocation16] ss:$0 sm:$0xff] }
0x284a   :  { %v1988_v46 = vpop.permute.xlu0 %1987 }
0x284b   :  { %v1990_v47 = vadd.f32 %v1988_v46, %v1319_v40 }
0x284d   :  { %4119 = vtanh.f32 %v1990_v47 }
0x2857   :  { %v4120_v52 = vpop.eup %4119 }
0x2858   :  { %v1992_v48 = vsub.f32 %v1892_v35, %v4120_v52  ;;  %v4962_v35 = vpack.c.bf16 %v2386_v34, %v2385_v54 }
0x285a   :  { %1994 = vrot.lane.b32.xlu1 %v1992_v48, %s4384_s3 }
0x28cc   :  { %v1995_v56 = vpop.permute.xlu1 %1994 }
0x28cd   :  { %v1997_v57 = vmul.f32 %v4118_v44, %v1995_v56 }
0x28cf   :  { %1999 = vrot.lane.b32.xlu0 %v1997_v57, %s4385_s22 }
0x2941   :  { %v2000_v16 = vpop.permute.xlu0 %1999 }
0x2942   :  { %v2002_v20 = vadd.f32 %v4120_v52, %v2000_v16 }
0x2944   :  { %2004 = vrot.lane.b32.xlu1 %v2002_v20, %s4383_s18 }
0x29b6   :  { %v2005_v60 = vpop.permute.xlu1 %2004 }
0x29b7   :  { %2008 = vst.msk [vmem:[#allocation6 + $0x28] sm:$0xff] %vm302_vm2, %v2005_v60  ;;  %3780 = vmatmul.mubr.msk.f32.vlgmr.msra.gmra.mrb[26].mxu0 %vm302_vm2, %v2005_v60 }
0x29b8   :  { %3987 = vmatpush3.bf16.msra.mxu0 %v3984_v55  ;;  %3801 = vmatprep.mubr.msk.f32.mxu0 %vm302_vm2, %v2229_v61 }
0x29b9   :  { %3989 = vmatprep.subr.bf16.mxu0 %v3988_v59 }
0x29bc   :  { %3991 = vmatpush3.bf16.msra.mxu0 %v3988_v59 }
0x29bd   :  { %4004 = vmatprep.subr.bf16.mxu0 %v4380_v0 }
0x29be   :  { %v2234_v9 = vld [vmem:[#allocation6 + $0x28] sm:$0xff] }
0x29bf   :  { %3802 = vmatmul.mubr.msk.f32.vlgmr.msra.gmra.mrb[28].mxu0 %vm302_vm2, %v2230_v62 }
0x29c0   :  { %3804 = vmatprep.mubr.msk.f32.mxu0 %vm302_vm2, %v2231_v63  ;;  %4006 = vmatpush3.bf16.msra.mxu0 %v4962_v35 }
0x29c1   :  { %4010 = vmatprep.subr.bf16.mxu0 %v4380_v0 }
0x29c3   :  { %3805 = vmatmul.mubr.msk.f32.gmra.mrb[30].mxu0 %vm302_vm2, %v2232_v2 }
0x29c4   :  { %3807 = vmatprep.mubr.msk.f32.mxu0 %vm302_vm2, %v2233_v7 }
0x29c7   :  { %3808 = vmatmul.mubr.msk.f32.gmra.mrb[32].mxu0 %vm302_vm2, %v2234_v9 }
0x2a8a   :  { %v2079_v10 = vpop.f32.mrb[26].mxu0 }
0x2a8b   :  { %v2090_v6 = vadd.f32 %v2079_v10, %v4822_v25  ;;  %v3781_v51 = vpop.f32.mrb[27].mxu0  ;;  %v2083_v8 = vadd.f32 %v2079_v10, %v1324_v21 }
0x2a8d   :  { %2092 = vrot.lane.b32.xlu0 %v2090_v6, %s4383_s18  ;;  %v3410_v49 = vmul.f32 -1.442695, %v2083_v8 }
0x2a8f   :  { %4121 = vpow2.f32 %v3410_v49 }
0x2a92   :  { %v4941_v4 = vpop.f32.mrb[28].mxu0 }
0x2a93   :  { %v2338_v11 = vpop.f32.mrb[29].mxu0  ;;  %v2344_v9 = vadd.f32 %v4941_v4, %v4989_v17 }
0x2a94   :  { %v2339_v46 = vadd.f32 %v4989_v17, %v2338_v11 }
0x2a96   :  { %v4943_v14 = vpop.f32.mrb[30].mxu0 }
0x2a97   :  { %v4945_v15 = vpop.f32.mrb[31].mxu0 }
0x2a98   :  { %v2349_v54 = vadd.f32 %v4989_v17, %v4945_v15 }
0x2a99   :  { %v4122_v22 = vpop.eup %4121 }
0x2a9a   :  { %v4947_v18 = vpop.f32.mrb[32].mxu0  ;;  %v2087_v23 = vadd.f32 1.0, %v4122_v22 }
0x2a9b   :  { %v4949_v19 = vpop.f32.mrb[33].mxu0 }
0x2a9c   :  { %4123 = vrcp.f32 %v2087_v23 }
0x2aa6   :  { %v4124_v24 = vpop.eup %4123 }
0x2aff   :  { %v2093_v13 = vpop.permute.xlu0 %2092 }
0x2b00   :  { %v2095_v26 = vmul.f32 %v4124_v24, %v2093_v13 }
0x2b02   :  { %2097 = vrot.lane.b32.xlu1 %v2095_v26, %s4383_s18 }
0x2b74   :  { %v2098_v3 = vpop.permute.xlu1 %2097 }
0x2b75   :  { %v2100_v30 = vadd.f32 %v2098_v3, %v1324_v21 }
0x2b77   :  { %4125 = vtanh.f32 %v2100_v30 }
0x2b81   :  { %v4126_v31 = vpop.eup %4125 }
0x2b82   :  { %v2102_v32 = vsub.f32 %v2002_v20, %v4126_v31 }
0x2b84   :  { %2104 = vrot.lane.b32.xlu0 %v2102_v32, %s4384_s3 }
0x2bf6   :  { %v2105_v33 = vpop.permute.xlu0 %2104 }
0x2bf7   :  { %v2107_v29 = vmul.f32 %v4124_v24, %v2105_v33 }
0x2bf9   :  { %2109 = vrot.lane.b32.xlu1 %v2107_v29, %s4385_s22 }
0x2bfd   :  { %2473 = vrot.lane.b32.xlu1 %v3422_v36, %s4385_s22 }
0x2c6b   :  { %v2110_v37 = vpop.permute.xlu1 %2109 }
0x2c6c   :  { %v4967_v38 = vadd.f32 %v4126_v31, %v2110_v37 }
0x2c6e   :  { %2114 = vrot.lane.b32.xlu0 %v4967_v38, %s4383_s18 }
0x2c6f   :  { %v4985_v42 = vpop.permute.xlu1 %2473 }
0x2ce0   :  { %v2115_v39 = vpop.permute.xlu0 %2114 }
0x2ce1   :  { %2118 = vst.msk [vmem:[#allocation6 + $0x30] sm:$0xff] %vm302_vm2, %v2115_v39  ;;  %3791 = vmatmul.mubr.msk.f32.vlgmr.msra.gmra.mrb[18].mxu1 %vm302_vm2, %v2115_v39 }
0x2ce2   :  { %3994 = vmatpush3.bf16.msra.mxu1 %v4962_v35  ;;  %3817 = vmatprep.mubr.msk.f32.mxu1 %vm4381_vm0, %v4382_v1 }
0x2ce3   :  { %3995 = vmatprep.subr.bf16.mxu1 %v4380_v0 }
0x2ce5   :  { %3818 = vmatmul.mubr.f32.vlgmr.msra.gmra.mrb[20].mxu1 %v4382_v1 }
0x2ce6   :  { %3997 = vmatpush3.bf16.msra.mxu1 %v4962_v35  ;;  %3824 = vmatprep.mubr.msk.f32.mxu1 %vm4381_vm0, %v4382_v1 }
0x2ce7   :  { %3998 = vmatprep.subr.bf16.mxu1 %v4380_v0 }
0x2ce8   :  { %v2235_v40 = vld [vmem:[#allocation6 + $0x30] sm:$0xff] }
0x2ce9   :  { %3810 = vmatprep.mubr.msk.f32.mxu0 %vm302_vm2, %v2235_v40 }
0x2db4   :  { %v4983_v41 = vpop.f32.mrb[18].mxu1 }
0x2db5   :  { %v3792_v12 = vpop.f32.mrb[19].mxu1 }
0x2db8   :  { %v2462_v43 = vpop.f32.mrb[20].mxu1 }
0x2db9   :  { %v3819_v44 = vpop.f32.mrb[21].mxu1  ;;  %v2476_v45 = vadd.f32 %v4985_v42, %v2462_v43  ;;  %v2466_v47 = vadd.f32 %v2462_v43, %v2339_v46 }
0x2dbb   :  { %2478 = vrot.lane.b32.xlu0 %v2476_v45, %s4384_s3  ;;  %v3423_v52 = vmul.f32 -1.442695, %v2466_v47 }
0x2dbd   :  { %4127 = vpow2.f32 %v3423_v52 }
0x2dc7   :  { %v4128_v48 = vpop.eup %4127 }
0x2dc8   :  { %v2470_v50 = vadd.f32 1.0, %v4128_v48  ;;  %v2200_v48 = vadd.f32 %v4983_v41, %v4822_v25 }
0x2dca   :  { %4129 = vrcp.f32 %v2470_v50  ;;  %v1329_v50 = vadd.f32 %v4862_v27, %v4826_v28 }
0x2dd4   :  { %v4130_v53 = vpop.eup %4129 }
0x2e2d   :  { %v2479_v55 = vpop.permute.xlu0 %2478 }
0x2e2e   :  { %v2481_v56 = vmul.f32 %v4130_v53, %v2479_v55 }
0x2e30   :  { %2483 = vrot.lane.b32.xlu1 %v2481_v56, %s4385_s22 }
0x2ea2   :  { %v2484_v57 = vpop.permute.xlu1 %2483 }
0x2ea3   :  { %v2486_v16 = vadd.f32 %v2484_v57, %v2339_v46 }
0x2ea5   :  { %4131 = vtanh.f32 %v2486_v16 }
0x2eaf   :  { %v4132_v20 = vpop.eup %4131 }
0x2eb0   :  { %v2488_v5 = vsub.f32 0.0, %v4132_v20 }
0x2eb2   :  { %2490 = vrot.lane.b32.xlu0 %v2488_v5, %s4386_s10 }
0x2f24   :  { %v2491_v58 = vpop.permute.xlu0 %2490 }
0x2f25   :  { %v2493_v59 = vmul.f32 %v4130_v53, %v2491_v58  ;;  %v2193_v53 = vadd.f32 %v4983_v41, %v1329_v50 }
0x2f27   :  { %2495 = vrot.lane.b32.xlu1 %v2493_v59, %s4387_s27  ;;  %v3412_v55 = vmul.f32 -1.442695, %v2193_v53 }
0x2f99   :  { %v2496_v60 = vpop.permute.xlu1 %2495 }
0x2f9a   :  { %v2498_v61 = vadd.f32 %v4132_v20, %v2496_v60 }
0x2f9c   :  { %2502 = vrot.lane.b32.xlu0 %v2498_v61, %s4384_s3 }
0x300e   :  { %v2503_v62 = vpop.permute.xlu0 %2502 }
0x300f   :  { %3825 = vmatmul.mubr.msk.f32.vlgmr.msra.gmra.mrb[22].mxu1 %vm153_vm1, %v2503_v62 }
0x3010   :  { %4000 = vmatpush3.bf16.msra.mxu1 %v4962_v35  ;;  %3831 = vmatprep.mubr.msk.f32.mxu1 %vm4381_vm0, %v4382_v1 }
0x3011   :  { %4001 = vmatprep.subr.bf16.mxu1 %v4380_v0 }
0x30e2   :  { %v2572_v63 = vpop.f32.mrb[22].mxu1 }
0x30e3   :  { %v2583_v2 = vadd.f32 %v2572_v63, %v4985_v42  ;;  %v3826_v7 = vpop.f32.mrb[23].mxu1  ;;  %v2576_v10 = vadd.f32 %v2572_v63, %v2344_v9 }
0x30e5   :  { %2585 = vrot.lane.b32.xlu1 %v2583_v2, %s4384_s3  ;;  %v3425_v6 = vmul.f32 -1.442695, %v2576_v10 }
0x30e7   :  { %4133 = vpow2.f32 %v3425_v6  ;;  %v2354_v6 = vadd.f32 %v4943_v14, %v4989_v17 }
0x30f1   :  { %v4134_v51 = vpop.eup %4133 }
0x30f2   :  { %v2580_v11 = vadd.f32 1.0, %v4134_v51 }
0x30f4   :  { %4135 = vrcp.f32 %v2580_v11 }
0x30fe   :  { %v4136_v21 = vpop.eup %4135 }
0x3157   :  { %v2586_v8 = vpop.permute.xlu1 %2585 }
0x3158   :  { %v2588_v49 = vmul.f32 %v4136_v21, %v2586_v8 }
0x315a   :  { %2590 = vrot.lane.b32.xlu0 %v2588_v49, %s4385_s22 }
0x31cc   :  { %v2591_v22 = vpop.permute.xlu0 %2590 }
0x31cd   :  { %v2593_v23 = vadd.f32 %v2591_v22, %v2344_v9 }
0x31cf   :  { %4137 = vtanh.f32 %v2593_v23 }
0x31d9   :  { %v4138_v24 = vpop.eup %4137 }
0x31da   :  { %v2595_v13 = vsub.f32 %v2498_v61, %v4138_v24 }
0x31dc   :  { %2597 = vrot.lane.b32.xlu1 %v2595_v13, %s4386_s10 }
0x324e   :  { %v2598_v26 = vpop.permute.xlu1 %2597 }
0x324f   :  { %v2600_v4 = vmul.f32 %v4136_v21, %v2598_v26 }
0x3251   :  { %2602 = vrot.lane.b32.xlu0 %v2600_v4, %s4387_s27 }
0x32c3   :  { %v2603_v3 = vpop.permute.xlu0 %2602 }
0x32c4   :  { %v2605_v30 = vadd.f32 %v4138_v24, %v2603_v3 }
0x32c6   :  { %2609 = vrot.lane.b32.xlu1 %v2605_v30, %s4384_s3 }
0x3338   :  { %v2610_v31 = vpop.permute.xlu1 %2609 }
0x3339   :  { %3832 = vmatmul.mubr.msk.f32.vlgmr.msra.gmra.mrb[24].mxu1 %vm153_vm1, %v2610_v31 }
0x333a   :  { %4003 = vmatpush3.bf16.msra.mxu1 %v4962_v35  ;;  %3838 = vmatprep.mubr.msk.f32.mxu1 %vm4381_vm0, %v4382_v1 }
0x333b   :  { %4007 = vmatprep.subr.bf16.mxu1 %v4380_v0 }
0x340c   :  { %v2679_v32 = vpop.f32.mrb[24].mxu1 }
0x340d   :  { %v2690_v33 = vadd.f32 %v2679_v32, %v4985_v42  ;;  %v3833_v29 = vpop.f32.mrb[25].mxu1  ;;  %v2683_v34 = vadd.f32 %v2679_v32, %v2349_v54 }
0x340f   :  { %2692 = vrot.lane.b32.xlu0 %v2690_v33, %s4384_s3  ;;  %v3427_v36 = vmul.f32 -1.442695, %v2683_v34 }
0x3411   :  { %4139 = vpow2.f32 %v3427_v36 }
0x341b   :  { %v4140_v37 = vpop.eup %4139 }
0x341c   :  { %v2687_v39 = vadd.f32 1.0, %v4140_v37 }
0x341e   :  { %4141 = vrcp.f32 %v2687_v39  ;;  %v2359_v39 = vadd.f32 %v4989_v17, %v4949_v19 }
0x3428   :  { %v4142_v40 = vpop.eup %4141 }
0x3481   :  { %v2693_v12 = vpop.permute.xlu0 %2692 }
0x3482   :  { %v2695_v43 = vmul.f32 %v4142_v40, %v2693_v12 }
0x3484   :  { %2697 = vrot.lane.b32.xlu1 %v2695_v43, %s4385_s22 }
0x34f6   :  { %v2698_v44 = vpop.permute.xlu1 %2697 }
0x34f7   :  { %v2700_v45 = vadd.f32 %v2698_v44, %v2349_v54 }
0x34f9   :  { %4143 = vtanh.f32 %v2700_v45 }
0x34fa   :  { %4145 = vpow2.f32 %v3412_v55 }
0x3503   :  { %v4144_v46 = vpop.eup %4143 }
0x3504   :  { %v2702_v47 = vsub.f32 %v2605_v30, %v4144_v46  ;;  %v4146_v56 = vpop.eup %4145 }
0x3505   :  { %v2197_v57 = vadd.f32 1.0, %v4146_v56 }
0x3506   :  { %2704 = vrot.lane.b32.xlu0 %v2702_v47, %s4386_s10 }
0x3507   :  { %4147 = vrcp.f32 %v2197_v57 }
0x3511   :  { %v4148_v5 = vpop.eup %4147 }
0x3578   :  { %v2705_v52 = vpop.permute.xlu0 %2704 }
0x3579   :  { %v2707_v15 = vmul.f32 %v4142_v40, %v2705_v52 }
0x357b   :  { %2709 = vrot.lane.b32.xlu1 %v2707_v15, %s4387_s27 }
0x357f   :  { %2202 = vrot.lane.b32.xlu1 %v2200_v48, %s4383_s18 }
0x35ed   :  { %v2710_v16 = vpop.permute.xlu1 %2709 }
0x35ee   :  { %v2712_v20 = vadd.f32 %v4144_v46, %v2710_v16 }
0x35f0   :  { %2716 = vrot.lane.b32.xlu0 %v2712_v20, %s4384_s3 }
0x35f1   :  { %v2203_v58 = vpop.permute.xlu1 %2202 }
0x35f2   :  { %v2205_v59 = vmul.f32 %v4148_v5, %v2203_v58 }
0x35f4   :  { %2207 = vrot.lane.b32.xlu1 %v2205_v59, %s4383_s18 }
0x3662   :  { %v2717_v25 = vpop.permute.xlu0 %2716 }
0x3663   :  { %3839 = vmatmul.mubr.msk.f32.vlgmr.msra.gmra.mrb[26].mxu1 %vm153_vm1, %v2717_v25 }
0x3664   :  { %4009 = vmatpush3.bf16.msra.mxu1 %v4962_v35  ;;  %3852 = vmatprep.mubr.msk.f32.mxu1 %vm4381_vm0, %v4382_v1 }
0x3665   :  { %4013 = vmatprep.subr.bf16.mxu1 %v4380_v0 }
0x3666   :  { %v2208_v28 = vpop.permute.xlu1 %2207 }
0x3667   :  { %v2210_v27 = vadd.f32 %v2208_v28, %v1329_v50 }
0x3669   :  { %4149 = vtanh.f32 %v2210_v27 }
0x3673   :  { %v4150_v41 = vpop.eup %4149 }
0x3674   :  { %v2212_v60 = vsub.f32 %v4967_v38, %v4150_v41 }
0x3676   :  { %2214 = vrot.lane.b32.xlu1 %v2212_v60, %s4384_s3 }
0x36e8   :  { %v2215_v61 = vpop.permute.xlu1 %2214 }
0x36e9   :  { %v2217_v62 = vmul.f32 %v4148_v5, %v2215_v61  ;;  %v2364_v5 = vadd.f32 %v4947_v18, %v4989_v17 }
0x36eb   :  { %2219 = vrot.lane.b32.xlu1 %v2217_v62, %s4385_s22 }
0x3736   :  { %v2786_v63 = vpop.f32.mrb[26].mxu1 }
0x3737   :  { %v2797_v2 = vadd.f32 %v2786_v63, %v4985_v42  ;;  %v3840_v7 = vpop.f32.mrb[27].mxu1  ;;  %v2790_v38 = vadd.f32 %v2786_v63, %v2354_v6 }
0x3739   :  { %2799 = vrot.lane.b32.xlu0 %v2797_v2, %s4384_s3  ;;  %v3429_v51 = vmul.f32 -1.442695, %v2790_v38 }
0x373b   :  { %4151 = vpow2.f32 %v3429_v51 }
0x3745   :  { %v4152_v11 = vpop.eup %4151 }
0x3746   :  { %v2794_v21 = vadd.f32 1.0, %v4152_v11 }
0x3748   :  { %4153 = vrcp.f32 %v2794_v21 }
0x3752   :  { %v4154_v8 = vpop.eup %4153 }
0x375d   :  { %v2220_v9 = vpop.permute.xlu1 %2219 }
0x375e   :  { %v2222_v10 = vadd.f32 %v4150_v41, %v2220_v9 }
0x3760   :  { %2224 = vrot.lane.b32.xlu1 %v2222_v10, %s4383_s18 }
0x37ab   :  { %v2800_v49 = vpop.permute.xlu0 %2799 }
0x37ac   :  { %v2802_v22 = vmul.f32 %v4154_v8, %v2800_v49 }
0x37ae   :  { %2804 = vrot.lane.b32.xlu0 %v2802_v22, %s4385_s22 }
0x37d2   :  { %v2225_v23 = vpop.permute.xlu1 %2224 }
0x37d3   :  { %2228 = vst.msk [vmem:[#allocation6 + $0x38] sm:$0xff] %vm302_vm2, %v2225_v23 }
0x37da   :  { %v2236_v24 = vld [vmem:[#allocation6 + $0x38] sm:$0xff] }
0x37db   :  { %3811 = vmatmul.mubr.msk.f32.gmra.mrb[34].mxu0 %vm302_vm2, %v2236_v24 }
0x37dc   :  { %3845 = vmatprep.mubr.msk.f32.mxu0 %vm4381_vm0, %v4382_v1 }
0x3820   :  { %v2805_v14 = vpop.permute.xlu0 %2804 }
0x3821   :  { %v2807_v13 = vadd.f32 %v2805_v14, %v2354_v6 }
0x3823   :  { %4155 = vtanh.f32 %v2807_v13 }
0x382d   :  { %v4156_v26 = vpop.eup %4155 }
0x382e   :  { %v2809_v4 = vsub.f32 %v2712_v20, %v4156_v26 }
0x3830   :  { %2811 = vrot.lane.b32.xlu0 %v2809_v4, %s4386_s10 }
0x38a2   :  { %v2812_v3 = vpop.permute.xlu0 %2811 }
0x38a3   :  { %v2814_v30 = vmul.f32 %v4154_v8, %v2812_v3 }
0x38a5   :  { %2816 = vrot.lane.b32.xlu0 %v2814_v30, %s4387_s27 }
0x38ae   :  { %v5049_v31 = vpop.f32.mrb[34].mxu0 }
0x38af   :  { %v5051_v32 = vpop.f32.mrb[35].mxu0 }
0x38b0   :  { %v2369_v11 = vadd.f32 %v4989_v17, %v5051_v32 }
0x3917   :  { %v2817_v33 = vpop.permute.xlu0 %2816 }
0x3918   :  { %v2819_v29 = vadd.f32 %v4156_v26, %v2817_v33 }
0x391a   :  { %2823 = vrot.lane.b32.xlu0 %v2819_v29, %s4384_s3 }
0x398c   :  { %v2824_v54 = vpop.permute.xlu0 %2823 }
0x398d   :  { %3846 = vmatmul.mubr.msk.f32.vlgmr.msra.gmra.mrb[36].mxu0 %vm153_vm1, %v2824_v54 }
0x398e   :  { %4012 = vmatpush3.bf16.msra.mxu0 %v4962_v35  ;;  %3859 = vmatprep.mubr.msk.f32.mxu0 %vm4381_vm0, %v4382_v1 }
0x398f   :  { %4016 = vmatprep.subr.bf16.mxu0 %v4380_v0 }
0x3a60   :  { %v2893_v34 = vpop.f32.mrb[36].mxu0 }
0x3a61   :  { %v2904_v36 = vadd.f32 %v2893_v34, %v4985_v42  ;;  %v3847_v37 = vpop.f32.mrb[37].mxu0  ;;  %v2897_v40 = vadd.f32 %v2893_v34, %v2359_v39 }
0x3a62   :  { %v2374_v37 = vadd.f32 %v5049_v31, %v4989_v17  ;;  %v3248_v17 = vld [vmem:[%s5137_s13] sm:$0xff]  ;;  %v3249_v31 = vld [vmem:[%s5137_s13 + $0x8] sm:$0xff]  ;;  %s4388_s13 = smov [#allocation19]  }
0x3a63   :  { %2906 = vrot.lane.b32.xlu1 %v2904_v36, %s4384_s3  ;;  %v3431_v12 = vmul.f32 -1.442695, %v2897_v40 }
0x3a65   :  { %4157 = vpow2.f32 %v3431_v12 }
0x3a6f   :  { %v4158_v43 = vpop.eup %4157 }
0x3a70   :  { %v2901_v44 = vadd.f32 1.0, %v4158_v43 }
0x3a72   :  { %4159 = vrcp.f32 %v2901_v44 }
0x3a7c   :  { %v4160_v45 = vpop.eup %4159 }
0x3ad5   :  { %v2907_v46 = vpop.permute.xlu1 %2906 }
0x3ad6   :  { %v2909_v47 = vmul.f32 %v4160_v45, %v2907_v46 }
0x3ad8   :  { %2911 = vrot.lane.b32.xlu0 %v2909_v47, %s4385_s22 }
0x3b4a   :  { %v2912_v0 = vpop.permute.xlu0 %2911 }
0x3b4b   :  { %v2914_v52 = vadd.f32 %v2912_v0, %v2359_v39 }
0x3b4d   :  { %4161 = vtanh.f32 %v2914_v52 }
0x3b57   :  { %v4162_v15 = vpop.eup %4161 }
0x3b58   :  { %v2916_v48 = vsub.f32 %v2819_v29, %v4162_v15 }
0x3b5a   :  { %2918 = vrot.lane.b32.xlu1 %v2916_v48, %s4386_s10 }
0x3bcc   :  { %v2919_v50 = vpop.permute.xlu1 %2918 }
0x3bcd   :  { %v2921_v19 = vmul.f32 %v4160_v45, %v2919_v50 }
0x3bcf   :  { %2923 = vrot.lane.b32.xlu0 %v2921_v19, %s4387_s27 }
0x3c41   :  { %v2924_v53 = vpop.permute.xlu0 %2923 }
0x3c42   :  { %v2926_v55 = vadd.f32 %v4162_v15, %v2924_v53  ;;  %v4017_v15 = vpack.c.bf16 %v3249_v31, %v3248_v17 }
0x3c44   :  { %2930 = vrot.lane.b32.xlu1 %v2926_v55, %s4384_s3 }
0x3cb6   :  { %v2931_v56 = vpop.permute.xlu1 %2930 }
0x3cb7   :  { %3853 = vmatmul.mubr.msk.f32.vlgmr.msra.gmra.mrb[28].mxu1 %vm153_vm1, %v2931_v56  ;;  %v3438_v56 = vld [vmem:[%s5138_s14] ss:$0 sm:$0xff] }
0x3cb8   :  { %4015 = vmatpush3.bf16.msra.mxu1 %v4962_v35  ;;  %3866 = vmatprep.mubr.msk.f32.mxu1 %vm4381_vm0, %v4382_v1 }
0x3d8a   :  { %v3000_v57 = vpop.f32.mrb[28].mxu1 }
0x3d8b   :  { %v3011_v16 = vadd.f32 %v3000_v57, %v4985_v42  ;;  %v3854_v20 = vpop.f32.mrb[29].mxu1  ;;  %v3004_v58 = vadd.f32 %v3000_v57, %v2364_v5 }
0x3d8d   :  { %3013 = vrot.lane.b32.xlu0 %v3011_v16, %s4384_s3  ;;  %v3433_v59 = vmul.f32 -1.442695, %v3004_v58 }
0x3d8f   :  { %4163 = vpow2.f32 %v3433_v59 }
0x3d99   :  { %v4164_v25 = vpop.eup %4163 }
0x3d9a   :  { %v3008_v28 = vadd.f32 1.0, %v4164_v25 }
0x3d9c   :  { %4165 = vrcp.f32 %v3008_v28 }
0x3da6   :  { %v4166_v27 = vpop.eup %4165 }
0x3dff   :  { %v3014_v35 = vpop.permute.xlu0 %3013 }
0x3e00   :  { %v3016_v41 = vmul.f32 %v4166_v27, %v3014_v35 }
0x3e02   :  { %3018 = vrot.lane.b32.xlu1 %v3016_v41, %s4385_s22 }
0x3e74   :  { %v3019_v60 = vpop.permute.xlu1 %3018 }
0x3e75   :  { %v3021_v61 = vadd.f32 %v3019_v60, %v2364_v5 }
0x3e77   :  { %4167 = vtanh.f32 %v3021_v61 }
0x3e81   :  { %v4168_v62 = vpop.eup %4167 }
0x3e82   :  { %v3023_v63 = vsub.f32 %v2926_v55, %v4168_v62 }
0x3e84   :  { %3025 = vrot.lane.b32.xlu0 %v3023_v63, %s4386_s10 }
0x3ef6   :  { %v3026_v2 = vpop.permute.xlu0 %3025 }
0x3ef7   :  { %v3028_v18 = vmul.f32 %v4166_v27, %v3026_v2 }
0x3ef9   :  { %3030 = vrot.lane.b32.xlu1 %v3028_v18, %s4387_s27 }
0x3f6b   :  { %v3031_v7 = vpop.permute.xlu1 %3030 }
0x3f6c   :  { %v3033_v9 = vadd.f32 %v4168_v62, %v3031_v7 }
0x3f6e   :  { %3037 = vrot.lane.b32.xlu0 %v3033_v9, %s4384_s3 }
0x3fe0   :  { %v3038_v10 = vpop.permute.xlu0 %3037 }
0x3fe1   :  { %3860 = vmatmul.mubr.msk.f32.vlgmr.msra.gmra.mrb[38].mxu0 %vm153_vm1, %v3038_v10 }
0x3fe2   :  { %3873 = vmatprep.mubr.msk.f32.mxu0 %vm4381_vm0, %v4382_v1  ;;  %4018 = vmatpush3.bf16.msra.mxu0 %v4017_v15 }
0x40b4   :  { %v3107_v6 = vpop.f32.mrb[38].mxu0 }
0x40b5   :  { %v3118_v38 = vadd.f32 %v3107_v6, %v4985_v42  ;;  %v3861_v51 = vpop.f32.mrb[39].mxu0  ;;  %v3111_v21 = vadd.f32 %v3107_v6, %v2369_v11 }
0x40b7   :  { %3120 = vrot.lane.b32.xlu1 %v3118_v38, %s4384_s3  ;;  %v3435_v8 = vmul.f32 -1.442695, %v3111_v21 }
0x40b9   :  { %4169 = vpow2.f32 %v3435_v8 }
0x40c3   :  { %v4170_v49 = vpop.eup %4169 }
0x40c4   :  { %v3115_v22 = vadd.f32 1.0, %v4170_v49 }
0x40c6   :  { %4171 = vrcp.f32 %v3115_v22 }
0x40d0   :  { %v4172_v23 = vpop.eup %4171 }
0x4129   :  { %v3121_v24 = vpop.permute.xlu1 %3120 }
0x412a   :  { %v3123_v14 = vmul.f32 %v4172_v23, %v3121_v24 }
0x412c   :  { %3125 = vrot.lane.b32.xlu0 %v3123_v14, %s4385_s22 }
0x419e   :  { %v3126_v1 = vpop.permute.xlu0 %3125 }
0x419f   :  { %v3128_v13 = vadd.f32 %v3126_v1, %v2369_v11 }
0x41a1   :  { %4173 = vtanh.f32 %v3128_v13 }
0x41ab   :  { %v4174_v26 = vpop.eup %4173 }
0x41ac   :  { %v3130_v4 = vsub.f32 %v3033_v9, %v4174_v26 }
0x41ae   :  { %3132 = vrot.lane.b32.xlu1 %v3130_v4, %s4386_s10 }
0x4220   :  { %v3133_v3 = vpop.permute.xlu1 %3132 }
0x4221   :  { %v3135_v30 = vmul.f32 %v4172_v23, %v3133_v3 }
0x4223   :  { %3137 = vrot.lane.b32.xlu0 %v3135_v30, %s4387_s27 }
0x4295   :  { %v3138_v32 = vpop.permute.xlu0 %3137 }
0x4296   :  { %v3140_v33 = vadd.f32 %v4174_v26, %v3138_v32 }
0x4298   :  { %3144 = vrot.lane.b32.xlu1 %v3140_v33, %s4384_s3 }
0x430a   :  { %v3145_v29 = vpop.permute.xlu1 %3144 }
0x430b   :  { %3867 = vmatmul.mubr.msk.f32.vlgmr.msra.gmra.mrb[30].mxu1 %vm153_vm1, %v3145_v29 }
0x43de   :  { %v3214_v54 = vpop.f32.mrb[30].mxu1 }
0x43df   :  { %v3225_v34 = vadd.f32 %v3214_v54, %v4985_v42  ;;  %v3868_v36 = vpop.f32.mrb[31].mxu1  ;;  %v3218_v39 = vadd.f32 %v3214_v54, %v2374_v37 }
0x43e1   :  { %3227 = vrot.lane.b32.xlu0 %v3225_v34, %s4384_s3  ;;  %v3437_v40 = vmul.f32 -1.442695, %v3218_v39 }
0x43e3   :  { %4175 = vpow2.f32 %v3437_v40 }
0x43ed   :  { %v4176_v12 = vpop.eup %4175 }
0x43ee   :  { %v3222_v43 = vadd.f32 1.0, %v4176_v12 }
0x43f0   :  { %4177 = vrcp.f32 %v3222_v43 }
0x43fa   :  { %v4178_v44 = vpop.eup %4177 }
0x4453   :  { %v3228_v45 = vpop.permute.xlu0 %3227 }
0x4454   :  { %v3230_v46 = vmul.f32 %v4178_v44, %v3228_v45 }
0x4456   :  { %3232 = vrot.lane.b32.xlu1 %v3230_v46, %s4385_s22 }
0x44c8   :  { %v3233_v47 = vpop.permute.xlu1 %3232 }
0x44c9   :  { %v3235_v0 = vadd.f32 %v3233_v47, %v2374_v37 }
0x44cb   :  { %4179 = vtanh.f32 %v3235_v0 }
0x44d5   :  { %v4180_v42 = vpop.eup %4179 }
0x44d6   :  { %v3237_v52 = vsub.f32 %v3140_v33, %v4180_v42 }
0x44d8   :  { %3239 = vrot.lane.b32.xlu0 %v3237_v52, %s4386_s10 }
0x454a   :  { %v3240_v48 = vpop.permute.xlu0 %3239 }
0x454b   :  { %v3242_v50 = vmul.f32 %v4178_v44, %v3240_v48 }
0x454d   :  { %3244 = vrot.lane.b32.xlu1 %v3242_v50, %s4387_s27 }
0x45bf   :  { %v3245_v19 = vpop.permute.xlu1 %3244 }
0x45c0   :  { %v3247_v53 = vadd.f32 %v4180_v42, %v3245_v19 }
0x45c2   :  { %3258 = vrot.lane.b32.xlu0 %v3247_v53, %s4384_s3  ;;  %s3351_s3 = sshll.u32 %s4388_s13, 4  ;;  %s3352_s3 = int_to_ptr.vmem [resolvable:$true] %s3351_s3 }
0x45c3   :  { %s4339_s14 = scalar_lea.vmem %s3352_s3, 128  ;;  %p4344_p1 = scmp.lt.s32.totalorder %s3352_s3, %s3352_s3 }
0x45c4   :  { %p4340_p0 = scmp.ne.s32.totalorder %s3352_s3, %s4339_s14  ;;  %p4345_p2 = scmp.lt.s32.totalorder %s4339_s14, %s4339_s14 }
0x45c6   :  { %p4346_p3 = por %p4345_p2, %p4344_p1 }
0x45c8   :  { %p4347_p4 = pnand %p4346_p3, %p4340_p0 }
0x4634   :  { %v3259_v55 = vpop.permute.xlu0 %3258 }
0x4635   :  { %3874 = vmatmul.mubr.msk.f32.vlgmr.msra.gmra.mrb[40].mxu0 %vm153_vm1, %v3259_v55 }
0x4708   :  { %v3328_v57 = vpop.f32.mrb[40].mxu0 }
0x4709   :  { %v3329_v16 = vadd.f32 %v3438_v56, %v3328_v57  ;;  %v3875_v20 = vpop.f32.mrb[41].mxu0 }
0x470b   :  { %v3332_v5 = vsel %vm153_vm1, %v3329_v16, -inf }
0x470c   :  { %3333 = vmax.xlane.f32.xlu1 %v3332_v5 }
0x4799   :  { %v3334_v58 = vpop.xlane.xlu1 %3333 }
0x479a   :  { %v3335_v59 = vsub.f32 %v3329_v16, %v3334_v58 }
0x479c   :  { %v3336_v25 = vmul.f32 1.442695, %v3335_v59 }
0x479e   :  { %4181 = vpow2.f32 %v3336_v25 }
0x47a8   :  { %v4182_v28 = vpop.eup %4181 }
0x47a9   :  { %v3338_v27 = vsel %vm153_vm1, %v4182_v28, 0.0 }
0x47aa   :  { %3339 = vadd.xlane.f32.xlu0 %v3338_v27 }
0x4837   :  { %v3340_v35 = vpop.xlane.xlu0 %3339 }
0x4838   :  { %4183 = vlog2.f32 %v3340_v35 }
0x4842   :  { %v4184_v41 = vpop.eup %4183 }
0x4843   :  { %v3342_v60 = vmul.f32 0.6931472, %v4184_v41 }
0x4845   :  { %v3343_v61 = vsub.f32 %v3335_v59, %v3342_v60 }
0x4847   :  { %3344 = vst.msk [vmem:[#allocation19] sm:$0xff] %vm153_vm1, %v3343_v61 }
0x4848   :  { %4350 = shalt.err (!%p4347_p4)
}
0x4849   :  { %s4351_s7 = scalar_lea.hbm %s5139_s15, 128 }
0x484a   :  { %p4352_p5 = scmp.ne.s32.totalorder %s5139_s15, %s4351_s7  ;;  %p4355_p6 = scmp.lt.u32.totalorder %s4351_s7, %s5139_s15 }
0x484c   :  { %p4357_p7 = pnand %p4355_p6, %p4352_p5 }
0x484e   :  { %4360 = shalt.err (!%p4357_p7)
}
0x484f   :  { %3354 = dma.vmem_to_hbm [thread:$0]  %s3352_s3, 128, %s5139_s15, [#allocation9]  }
0x4850   :  { %4369 = dma.done.wait [#allocation9], 128  }
0x4851   :  { %4370 = vsyncadd [#allocation9], 4294967168 }
0x4852   :  { %3358 = vsyncpa [#allocation8], 1 }
0x4853   :  { %3359 = vsyncpa [#allocation11], 1 }
0x4854   :  { %3360 = vsyncpa [#allocation14], 1 }
0x4855   :  { %3361 = vsyncpa [#allocation17], 1 }
0x4856   :  { %3362 = vsyncpa [#allocation9], 1 }

</bundles_post_ra>
